<compile_context>
chip_gen: v7x
topology: tpu7x:2x2x1
jax: 0.10.0
libtpu: 0.0.40
codegen_flags: <defaults>
</compile_context>

<pallas_src>
import math
import numpy as np
import jax
import jax.numpy as jnp
from jax.experimental import pallas as pl
from jax.experimental.pallas import tpu as pltpu


def shift_params(small_kernel, big_kernel):
    mink, maxk = small_kernel, big_kernel
    nk = math.ceil(maxk / mink)
    padding = mink - 1
    mid = maxk // 2
    real_pad = [mid - i * mink - padding for i in range(nk)]
    return padding, real_pad, nk


def make_params(in_channels, big_kernel, small_kernel, n_rep, seed=123):
    # TODO(synk): torch.manual_seed(123)'s RNG stream cannot be bit-replicated in numpy; the
    # permutations are frozen parameters, so a fixed deterministic choice preserves structure.
    padding, real_pad, nk = shift_params(small_kernel, big_kernel)
    rep_n = in_channels                      # c_out of each lora module
    rng = np.random.RandomState(seed)
    lora1 = [np.concatenate([rng.permutation(nk) + i * nk for i in range(rep_n)]).astype(np.int32)
             for _ in range(n_rep)]
    lora2 = [np.concatenate([rng.permutation(nk) + i * nk for i in range(rep_n)]).astype(np.int32)
             for _ in range(n_rep)]
    small = [(rng.randint(0, nk, size=rep_n) + np.arange(rep_n) * nk).astype(np.int32)
             for _ in range(n_rep)]
    return dict(
        rep_n=rep_n, nk=nk, n_rep=n_rep,
        padding=padding, real_pad=real_pad,
        extra_pad=padding - small_kernel // 2,
        lora1=lora1, lora2=lora2, small=small,
    )


def build_weight_tables(cfg):
    """Block-diagonal gather weights (counts over repetitions), flattened for SMEM access.
       w1/w2[oc*nk*nk + j*nk + k] = #reps with loraX[oc*nk + j] == oc*nk + k
       w3[oc*nk + k]              = #reps with small[oc]        == oc*nk + k"""
    nk, c_out = cfg["nk"], cfg["rep_n"]
    w1 = np.zeros((c_out, nk, nk), np.int32)
    w2 = np.zeros((c_out, nk, nk), np.int32)
    w3 = np.zeros((c_out, nk), np.int32)
    for r in range(cfg["n_rep"]):
        l1, l2, sm = cfg["lora1"][r], cfg["lora2"][r], cfg["small"][r]
        for oc in range(c_out):
            for j in range(nk):
                w1[oc, j, int(l1[oc * nk + j]) - oc * nk] += 1
                w2[oc, j, int(l2[oc * nk + j]) - oc * nk] += 1
            w3[oc, int(sm[oc]) - oc * nk] += 1
    return w1.reshape(-1), w2.reshape(-1), w3.reshape(-1)


def build_kernel(nk, gb, ori_h, ori_w, hin, win, ep, real_pad):
    """x_ref: (1, gb, nk, hin, win) un-padded input planes of one (batch, group) cell.
       w*_ref: flat int32 weight tables in SMEM (scalar prefetch).
       o*_ref: (1, gb, ori_h, ori_w) final-layout output tiles.
       acc_ref: (gb, ori_h, ori_w) f32 scratch, reused across the three paths."""
    nk2 = nk * nk

    def kernel(w1_ref, w2_ref, w3_ref, x_ref, o1_ref, o2_ref, o3_ref, acc_ref):
        g = pl.program_id(1)
        oc0 = g * gb                                   # first absolute output channel here

        # ---------- lora1: vertical (H) shifts, fixed W crop [ep:ep+ori_w] ----------
        acc_ref[...] = jnp.zeros_like(acc_ref)
        for ocl in range(gb):                          # static unroll: gb * nk * nk bodies
            base = (oc0 + ocl) * nk2
            for j in range(nk):
                sp = real_pad[j]
                lo, hi = max(0, sp), min(ori_h, hin + sp)
                if hi <= lo:
                    continue
                for k in range(nk):
                    w = w1_ref[base + j * nk + k].astype(jnp.float32)
                    xw = x_ref[0, ocl, k, lo - sp:hi - sp, ep:ep + ori_w]
                    acc_ref[ocl, lo:hi, :] += w * xw
        o1_ref[0] = acc_ref[...].astype(o1_ref.dtype)

        # ---------- lora2: horizontal (W) shifts, fixed H crop [ep:ep+ori_h] ----------
        acc_ref[...] = jnp.zeros_like(acc_ref)
        for ocl in range(gb):
            base = (oc0 + ocl) * nk2
            for j in range(nk):
                sp = real_pad[j]
                lo, hi = max(0, sp), min(ori_w, win + sp)
                if hi <= lo:
                    continue
                for k in range(nk):
                    w = w2_ref[base + j * nk + k].astype(jnp.float32)
                    xw = x_ref[0, ocl, k, ep:ep + ori_h, lo - sp:hi - sp]
                    acc_ref[ocl, :, lo:hi] += w * xw
        o2_ref[0] = acc_ref[...].astype(o2_ref.dtype)

        # ---------- small: one selected plane per rep, crop ep on both dims ----------
        acc_ref[...] = jnp.zeros_like(acc_ref)
        for ocl in range(gb):
            base = (oc0 + ocl) * nk
            for k in range(nk):
                w = w3_ref[base + k].astype(jnp.float32)
                xw = x_ref[0, ocl, k, ep:ep + ori_h, ep:ep + ori_w]
                acc_ref[ocl] += w * xw
        o3_ref[0] = acc_ref[...].astype(o3_ref.dtype)

    return kernel


def pick_group_size(c_out):
    """Output-channel group size: a pure leading block dim (no MXU / sublane constraint
    any more), small enough that per-step VMEM stays tiny on every TPU generation."""
    if c_out % 8 == 0:
        return 8
    if c_out <= 8:
        return c_out
    for d in (7, 6, 5, 4, 3, 2):
        if c_out % d == 0:
            return d
    return 1


def lora_convs_forward(x, ori_h, ori_w, cfg):
    """Equivalent of LoRAConvsByRandom_cu_clone.forward(inputs, ori_h, ori_w)."""
    b, c_in, hin, win = x.shape
    nk, c_out = cfg["nk"], cfg["rep_n"]
    padding, real_pad, ep = cfg["padding"], cfg["real_pad"], cfg["extra_pad"]
    assert c_in == c_out * nk
    assert hin == ori_h + padding and win == ori_w + padding

    gb = pick_group_size(c_out)
    G = c_out // gb

    # Free view: channel oc*nk + k -> [oc, k].  No zero-padding: all shifted windows are
    # in-bounds static slices; out-of-range output rows/cols stay at the accumulator's zero.
    x5 = x.reshape(b, c_out, nk, hin, win)

    w1, w2, w3 = build_weight_tables(cfg)
    w1 = jnp.asarray(w1)
    w2 = jnp.asarray(w2)
    w3 = jnp.asarray(w3)

    kernel = build_kernel(nk, gb, ori_h, ori_w, hin, win, ep, real_pad)
    out_shape = tuple(jax.ShapeDtypeStruct((b, c_out, ori_h, ori_w), x.dtype) for _ in range(3))

    # Scoped-VMEM budget derived from the actual (8,128)-padded blocks (+ double buffering).
    def _pad(v, m):
        return ((v + m - 1) // m) * m
    itm = jnp.dtype(x.dtype).itemsize
    x_blk = gb * nk * _pad(hin, 8) * _pad(win, 128) * itm
    o_blk = gb * _pad(ori_h, 8) * _pad(ori_w, 128) * itm
    acc_blk = gb * _pad(ori_h, 8) * _pad(ori_w, 128) * 4
    need = 2 * x_blk + 3 * 2 * o_blk + acc_blk + (2 << 20)
    vmem_limit = int(min(110 * 1024 * 1024, max(32 * 1024 * 1024, 2 * need)))

    f = pl.pallas_call(
        kernel,
        out_shape=out_shape,
        grid_spec=pltpu.PrefetchScalarGridSpec(
            num_scalar_prefetch=3,                      # w1, w2, w3 -> SMEM, fetched once
            grid=(b, G),
            in_specs=[
                pl.BlockSpec((1, gb, nk, hin, win), lambda bi, gi, *_: (bi, gi, 0, 0, 0)),
            ],
            out_specs=tuple(
                pl.BlockSpec((1, gb, ori_h, ori_w), lambda bi, gi, *_: (bi, gi, 0, 0))
                for _ in range(3)
            ),
            scratch_shapes=[pltpu.VMEM((gb, ori_h, ori_w), jnp.float32)],
        ),
        compiler_params=pltpu.CompilerParams(
            dimension_semantics=("parallel", "parallel"),
            vmem_limit_bytes=vmem_limit,
        ),
    )
    return f(w1, w2, w3, x5)


def reference_np(x, ori_h, ori_w, cfg):
    """Pure-numpy reference of the reconstructed AddShift_ops / forward_small semantics."""
    x = np.asarray(x)
    b, c_in, hin, win = x.shape
    nk, c_out, ep, rp = cfg["nk"], cfg["rep_n"], cfg["extra_pad"], cfg["real_pad"]
    o1 = np.zeros((b, c_out, ori_h, ori_w), np.float32)
    o2 = np.zeros_like(o1)
    o3 = np.zeros_like(o1)
    for r in range(cfg["n_rep"]):
        for oc in range(c_out):
            for j in range(nk):
                sp = rp[j]
                c1 = cfg["lora1"][r][oc * nk + j]
                lo, hi = max(0, sp), min(ori_h, hin + sp)
                if hi > lo:
                    o1[:, oc, lo:hi, :] += x[:, c1, lo - sp:hi - sp, ep:ep + ori_w]
                c2 = cfg["lora2"][r][oc * nk + j]
                lo, hi = max(0, sp), min(ori_w, win + sp)
                if hi > lo:
                    o2[:, oc, :, lo:hi] += x[:, c2, ep:ep + ori_h, lo - sp:hi - sp]
            cs = cfg["small"][r][oc]
            o3[:, oc] += x[:, cs, ep:ep + ori_h, ep:ep + ori_w]
    return o1, o2, o3


if __name__ == "__main__":
    # Module config: LoRAConvsByRandom_cu_clone(in_channels=4, big_kernel=9, small_kernel=3, N_rep=2)
    in_channels, big_kernel, small_kernel, n_rep = 4, 9, 3, 2
    cfg = make_params(in_channels, big_kernel, small_kernel, n_rep)

    ori_h = ori_w = 16
    batch = 2
    c_in = in_channels * cfg["nk"]                  # 12
    hin = ori_h + cfg["padding"]                    # 18
    win = ori_w + cfg["padding"]                    # 18

    key = jax.random.PRNGKey(0)
    x = jax.random.normal(key, (batch, c_in, hin, win), dtype=jnp.float32)

    lora1_x, lora2_x, small_x = jax.block_until_ready(
        lora_convs_forward(x, ori_h, ori_w, cfg)
    )

    r1, r2, r3 = reference_np(x, ori_h, ori_w, cfg)
    np.testing.assert_allclose(np.asarray(lora1_x), r1, rtol=1e-5, atol=1e-5)
    np.testing.assert_allclose(np.asarray(lora2_x), r2, rtol=1e-5, atol=1e-5)
    np.testing.assert_allclose(np.asarray(small_x), r3, rtol=1e-5, atol=1e-5)

    print("KERNEL_OK")
</pallas_src>

<mosaic_0001>
module attributes {stable_mosaic.version = 11 : i64} {
  func.func @kernel(%arg0: i32, %arg1: i32, %arg2: memref<36xi32, #tpu.memory_space<smem>>, %arg3: memref<36xi32, #tpu.memory_space<smem>>, %arg4: memref<12xi32, #tpu.memory_space<smem>>, %arg5: memref<1x4x3x18x18xf32, #tpu.memory_space<vmem>>, %arg6: memref<1x4x16x16xf32, #tpu.memory_space<vmem>>, %arg7: memref<1x4x16x16xf32, #tpu.memory_space<vmem>>, %arg8: memref<1x4x16x16xf32, #tpu.memory_space<vmem>>, %arg9: memref<4x16x16xf32, #tpu.memory_space<vmem>>) attributes {dimension_semantics = [#tpu.dimension_semantics<parallel>, #tpu.dimension_semantics<parallel>], iteration_bounds = array<i64: 2, 1>, scalar_prefetch = 3 : i64, scratch_operands = 1 : i64, tpu.core_type = #tpu.core_type<tc>, window_params = [{transform_indices = @transform_0, window_bounds = array<i64: 1, 4, 3, 18, 18>}, {transform_indices = @transform_1, window_bounds = array<i64: 1, 4, 16, 16>}, {transform_indices = @transform_2, window_bounds = array<i64: 1, 4, 16, 16>}, {transform_indices = @transform_3, window_bounds = array<i64: 1, 4, 16, 16>}]} {
    %c4_i32 = arith.constant 4 : i32
    %0 = arith.muli %arg1, %c4_i32 : i32
    %cst = arith.constant 0.000000e+00 : f32
    %1 = vector.broadcast %cst : f32 to vector<4x16x16xf32>
    %c0 = arith.constant 0 : index
    %c0_0 = arith.constant 0 : index
    %c0_1 = arith.constant 0 : index
    %2 = vector.load %arg9[%c0, %c0_0, %c0_1] : memref<4x16x16xf32, #tpu.memory_space<vmem>>, vector<4x16x16xf32>
    tpu.vector_store %arg9[%c0, %c0_0, %c0_1], %1 {strides = array<i32>} : memref<4x16x16xf32, #tpu.memory_space<vmem>>, vector<4x16x16xf32>,
    %c0_i32 = arith.constant 0 : i32
    %3 = arith.addi %0, %c0_i32 : i32
    %c9_i32 = arith.constant 9 : i32
    %4 = arith.muli %3, %c9_i32 : i32
    %c0_i32_2 = arith.constant 0 : i32
    %5 = arith.addi %4, %c0_i32_2 : i32
    %c0_i32_3 = arith.constant 0 : i32
    %6 = arith.addi %5, %c0_i32_3 : i32
    %7 = arith.index_cast %6 : i32 to index
    %8 = memref.load %arg2[%7] : memref<36xi32, #tpu.memory_space<smem>>
    %9 = arith.sitofp %8 : i32 to f32
    %c0_4 = arith.constant 0 : index
    %c0_5 = arith.constant 0 : index
    %c0_6 = arith.constant 0 : index
    %c0_7 = arith.constant 0 : index
    %c1 = arith.constant 1 : index
    %10 = vector.load %arg5[%c0_4, %c0_5, %c0_6, %c0_7, %c1] : memref<1x4x3x18x18xf32, #tpu.memory_space<vmem>>, vector<1x1x1x14x16xf32>
    %11 = vector.shape_cast %10 : vector<1x1x1x14x16xf32> to vector<14x16xf32>
    %c0_8 = arith.constant 0 : index
    %c2 = arith.constant 2 : index
    %c0_9 = arith.constant 0 : index
    %12 = vector.load %arg9[%c0_8, %c2, %c0_9] : memref<4x16x16xf32, #tpu.memory_space<vmem>>, vector<1x14x16xf32>
    %13 = vector.shape_cast %12 : vector<1x14x16xf32> to vector<14x16xf32>
    %14 = vector.broadcast %9 : f32 to vector<14x16xf32>
    %15 = arith.mulf %14, %11 : vector<14x16xf32>
    %16 = arith.addf %13, %15 : vector<14x16xf32>
    %c0_10 = arith.constant 0 : index
    %c2_11 = arith.constant 2 : index
    %c0_12 = arith.constant 0 : index
    %17 = vector.load %arg9[%c0_10, %c2_11, %c0_12] : memref<4x16x16xf32, #tpu.memory_space<vmem>>, vector<1x14x16xf32>
    %18 = vector.shape_cast %17 : vector<1x14x16xf32> to vector<14x16xf32>
    %19 = vector.shape_cast %16 : vector<14x16xf32> to vector<1x14x16xf32>
    tpu.vector_store %arg9[%c0_10, %c2_11, %c0_12], %19 {strides = array<i32>} : memref<4x16x16xf32, #tpu.memory_space<vmem>>, vector<1x14x16xf32>,
    %c0_i32_13 = arith.constant 0 : i32
    %20 = arith.addi %4, %c0_i32_13 : i32
    %c1_i32 = arith.constant 1 : i32
    %21 = arith.addi %20, %c1_i32 : i32
    %22 = arith.index_cast %21 : i32 to index
    %23 = memref.load %arg2[%22] : memref<36xi32, #tpu.memory_space<smem>>
    %24 = arith.sitofp %23 : i32 to f32
    %c0_14 = arith.constant 0 : index
    %c0_15 = arith.constant 0 : index
    %c1_16 = arith.constant 1 : index
    %c0_17 = arith.constant 0 : index
    %c1_18 = arith.constant 1 : index
    %25 = vector.load %arg5[%c0_14, %c0_15, %c1_16, %c0_17, %c1_18] : memref<1x4x3x18x18xf32, #tpu.memory_space<vmem>>, vector<1x1x1x14x16xf32>
    %26 = vector.shape_cast %25 : vector<1x1x1x14x16xf32> to vector<14x16xf32>
    %c0_19 = arith.constant 0 : index
    %c2_20 = arith.constant 2 : index
    %c0_21 = arith.constant 0 : index
    %27 = vector.load %arg9[%c0_19, %c2_20, %c0_21] : memref<4x16x16xf32, #tpu.memory_space<vmem>>, vector<1x14x16xf32>
    %28 = vector.shape_cast %27 : vector<1x14x16xf32> to vector<14x16xf32>
    %29 = vector.broadcast %24 : f32 to vector<14x16xf32>
    %30 = arith.mulf %29, %26 : vector<14x16xf32>
    %31 = arith.addf %28, %30 : vector<14x16xf32>
    %c0_22 = arith.constant 0 : index
    %c2_23 = arith.constant 2 : index
    %c0_24 = arith.constant 0 : index
    %32 = vector.load %arg9[%c0_22, %c2_23, %c0_24] : memref<4x16x16xf32, #tpu.memory_space<vmem>>, vector<1x14x16xf32>
    %33 = vector.shape_cast %32 : vector<1x14x16xf32> to vector<14x16xf32>
    %34 = vector.shape_cast %31 : vector<14x16xf32> to vector<1x14x16xf32>
    tpu.vector_store %arg9[%c0_22, %c2_23, %c0_24], %34 {strides = array<i32>} : memref<4x16x16xf32, #tpu.memory_space<vmem>>, vector<1x14x16xf32>,
    %c0_i32_25 = arith.constant 0 : i32
    %35 = arith.addi %4, %c0_i32_25 : i32
    %c2_i32 = arith.constant 2 : i32
    %36 = arith.addi %35, %c2_i32 : i32
    %37 = arith.index_cast %36 : i32 to index
    %38 = memref.load %arg2[%37] : memref<36xi32, #tpu.memory_space<smem>>
    %39 = arith.sitofp %38 : i32 to f32
    %c0_26 = arith.constant 0 : index
    %c0_27 = arith.constant 0 : index
    %c2_28 = arith.constant 2 : index
    %c0_29 = arith.constant 0 : index
    %c1_30 = arith.constant 1 : index
    %40 = vector.load %arg5[%c0_26, %c0_27, %c2_28, %c0_29, %c1_30] : memref<1x4x3x18x18xf32, #tpu.memory_space<vmem>>, vector<1x1x1x14x16xf32>
    %41 = vector.shape_cast %40 : vector<1x1x1x14x16xf32> to vector<14x16xf32>
    %c0_31 = arith.constant 0 : index
    %c2_32 = arith.constant 2 : index
    %c0_33 = arith.constant 0 : index
    %42 = vector.load %arg9[%c0_31, %c2_32, %c0_33] : memref<4x16x16xf32, #tpu.memory_space<vmem>>, vector<1x14x16xf32>
    %43 = vector.shape_cast %42 : vector<1x14x16xf32> to vector<14x16xf32>
    %44 = vector.broadcast %39 : f32 to vector<14x16xf32>
    %45 = arith.mulf %44, %41 : vector<14x16xf32>
    %46 = arith.addf %43, %45 : vector<14x16xf32>
    %c0_34 = arith.constant 0 : index
    %c2_35 = arith.constant 2 : index
    %c0_36 = arith.constant 0 : index
    %47 = vector.load %arg9[%c0_34, %c2_35, %c0_36] : memref<4x16x16xf32, #tpu.memory_space<vmem>>, vector<1x14x16xf32>
    %48 = vector.shape_cast %47 : vector<1x14x16xf32> to vector<14x16xf32>
    %49 = vector.shape_cast %46 : vector<14x16xf32> to vector<1x14x16xf32>
    tpu.vector_store %arg9[%c0_34, %c2_35, %c0_36], %49 {strides = array<i32>} : memref<4x16x16xf32, #tpu.memory_space<vmem>>, vector<1x14x16xf32>,
    %c3_i32 = arith.constant 3 : i32
    %50 = arith.addi %4, %c3_i32 : i32
    %c0_i32_37 = arith.constant 0 : i32
    %51 = arith.addi %50, %c0_i32_37 : i32
    %52 = arith.index_cast %51 : i32 to index
    %53 = memref.load %arg2[%52] : memref<36xi32, #tpu.memory_space<smem>>
    %54 = arith.sitofp %53 : i32 to f32
    %c0_38 = arith.constant 0 : index
    %c0_39 = arith.constant 0 : index
    %c0_40 = arith.constant 0 : index
    %c1_41 = arith.constant 1 : index
    %c1_42 = arith.constant 1 : index
    %55 = vector.load %arg5[%c0_38, %c0_39, %c0_40, %c1_41, %c1_42] : memref<1x4x3x18x18xf32, #tpu.memory_space<vmem>>, vector<1x1x1x16x16xf32>
    %56 = vector.shape_cast %55 : vector<1x1x1x16x16xf32> to vector<16x16xf32>
    %c0_43 = arith.constant 0 : index
    %c0_44 = arith.constant 0 : index
    %c0_45 = arith.constant 0 : index
    %57 = vector.load %arg9[%c0_43, %c0_44, %c0_45] : memref<4x16x16xf32, #tpu.memory_space<vmem>>, vector<1x16x16xf32>
    %58 = vector.shape_cast %57 : vector<1x16x16xf32> to vector<16x16xf32>
    %59 = vector.broadcast %54 : f32 to vector<16x16xf32>
    %60 = arith.mulf %59, %56 : vector<16x16xf32>
    %61 = arith.addf %58, %60 : vector<16x16xf32>
    %c0_46 = arith.constant 0 : index
    %c0_47 = arith.constant 0 : index
    %c0_48 = arith.constant 0 : index
    %62 = vector.load %arg9[%c0_46, %c0_47, %c0_48] : memref<4x16x16xf32, #tpu.memory_space<vmem>>, vector<1x16x16xf32>
    %63 = vector.shape_cast %62 : vector<1x16x16xf32> to vector<16x16xf32>
    %64 = vector.shape_cast %61 : vector<16x16xf32> to vector<1x16x16xf32>
    tpu.vector_store %arg9[%c0_46, %c0_47, %c0_48], %64 {strides = array<i32>} : memref<4x16x16xf32, #tpu.memory_space<vmem>>, vector<1x16x16xf32>,
    %c3_i32_49 = arith.constant 3 : i32
    %65 = arith.addi %4, %c3_i32_49 : i32
    %c1_i32_50 = arith.constant 1 : i32
    %66 = arith.addi %65, %c1_i32_50 : i32
    %67 = arith.index_cast %66 : i32 to index
    %68 = memref.load %arg2[%67] : memref<36xi32, #tpu.memory_space<smem>>
    %69 = arith.sitofp %68 : i32 to f32
    %c0_51 = arith.constant 0 : index
    %c0_52 = arith.constant 0 : index
    %c1_53 = arith.constant 1 : index
    %c1_54 = arith.constant 1 : index
    %c1_55 = arith.constant 1 : index
    %70 = vector.load %arg5[%c0_51, %c0_52, %c1_53, %c1_54, %c1_55] : memref<1x4x3x18x18xf32, #tpu.memory_space<vmem>>, vector<1x1x1x16x16xf32>
    %71 = vector.shape_cast %70 : vector<1x1x1x16x16xf32> to vector<16x16xf32>
    %c0_56 = arith.constant 0 : index
    %c0_57 = arith.constant 0 : index
    %c0_58 = arith.constant 0 : index
    %72 = vector.load %arg9[%c0_56, %c0_57, %c0_58] : memref<4x16x16xf32, #tpu.memory_space<vmem>>, vector<1x16x16xf32>
    %73 = vector.shape_cast %72 : vector<1x16x16xf32> to vector<16x16xf32>
    %74 = vector.broadcast %69 : f32 to vector<16x16xf32>
    %75 = arith.mulf %74, %71 : vector<16x16xf32>
    %76 = arith.addf %73, %75 : vector<16x16xf32>
    %c0_59 = arith.constant 0 : index
    %c0_60 = arith.constant 0 : index
    %c0_61 = arith.constant 0 : index
    %77 = vector.load %arg9[%c0_59, %c0_60, %c0_61] : memref<4x16x16xf32, #tpu.memory_space<vmem>>, vector<1x16x16xf32>
    %78 = vector.shape_cast %77 : vector<1x16x16xf32> to vector<16x16xf32>
    %79 = vector.shape_cast %76 : vector<16x16xf32> to vector<1x16x16xf32>
    tpu.vector_store %arg9[%c0_59, %c0_60, %c0_61], %79 {strides = array<i32>} : memref<4x16x16xf32, #tpu.memory_space<vmem>>, vector<1x16x16xf32>,
    %c3_i32_62 = arith.constant 3 : i32
    %80 = arith.addi %4, %c3_i32_62 : i32
    %c2_i32_63 = arith.constant 2 : i32
    %81 = arith.addi %80, %c2_i32_63 : i32
    %82 = arith.index_cast %81 : i32 to index
    %83 = memref.load %arg2[%82] : memref<36xi32, #tpu.memory_space<smem>>
    %84 = arith.sitofp %83 : i32 to f32
    %c0_64 = arith.constant 0 : index
    %c0_65 = arith.constant 0 : index
    %c2_66 = arith.constant 2 : index
    %c1_67 = arith.constant 1 : index
    %c1_68 = arith.constant 1 : index
    %85 = vector.load %arg5[%c0_64, %c0_65, %c2_66, %c1_67, %c1_68] : memref<1x4x3x18x18xf32, #tpu.memory_space<vmem>>, vector<1x1x1x16x16xf32>
    %86 = vector.shape_cast %85 : vector<1x1x1x16x16xf32> to vector<16x16xf32>
    %c0_69 = arith.constant 0 : index
    %c0_70 = arith.constant 0 : index
    %c0_71 = arith.constant 0 : index
    %87 = vector.load %arg9[%c0_69, %c0_70, %c0_71] : memref<4x16x16xf32, #tpu.memory_space<vmem>>, vector<1x16x16xf32>
    %88 = vector.shape_cast %87 : vector<1x16x16xf32> to vector<16x16xf32>
    %89 = vector.broadcast %84 : f32 to vector<16x16xf32>
    %90 = arith.mulf %89, %86 : vector<16x16xf32>
    %91 = arith.addf %88, %90 : vector<16x16xf32>
    %c0_72 = arith.constant 0 : index
    %c0_73 = arith.constant 0 : index
    %c0_74 = arith.constant 0 : index
    %92 = vector.load %arg9[%c0_72, %c0_73, %c0_74] : memref<4x16x16xf32, #tpu.memory_space<vmem>>, vector<1x16x16xf32>
    %93 = vector.shape_cast %92 : vector<1x16x16xf32> to vector<16x16xf32>
    %94 = vector.shape_cast %91 : vector<16x16xf32> to vector<1x16x16xf32>
    tpu.vector_store %arg9[%c0_72, %c0_73, %c0_74], %94 {strides = array<i32>} : memref<4x16x16xf32, #tpu.memory_space<vmem>>, vector<1x16x16xf32>,
    %c6_i32 = arith.constant 6 : i32
    %95 = arith.addi %4, %c6_i32 : i32
    %c0_i32_75 = arith.constant 0 : i32
    %96 = arith.addi %95, %c0_i32_75 : i32
    %97 = arith.index_cast %96 : i32 to index
    %98 = memref.load %arg2[%97] : memref<36xi32, #tpu.memory_space<smem>>
    %99 = arith.sitofp %98 : i32 to f32
    %c0_76 = arith.constant 0 : index
    %c0_77 = arith.constant 0 : index
    %c0_78 = arith.constant 0 : index
    %c4 = arith.constant 4 : index
    %c1_79 = arith.constant 1 : index
    %100 = vector.load %arg5[%c0_76, %c0_77, %c0_78, %c4, %c1_79] : memref<1x4x3x18x18xf32, #tpu.memory_space<vmem>>, vector<1x1x1x14x16xf32>
    %101 = vector.shape_cast %100 : vector<1x1x1x14x16xf32> to vector<14x16xf32>
    %c0_80 = arith.constant 0 : index
    %c0_81 = arith.constant 0 : index
    %c0_82 = arith.constant 0 : index
    %102 = vector.load %arg9[%c0_80, %c0_81, %c0_82] : memref<4x16x16xf32, #tpu.memory_space<vmem>>, vector<1x14x16xf32>
    %103 = vector.shape_cast %102 : vector<1x14x16xf32> to vector<14x16xf32>
    %104 = vector.broadcast %99 : f32 to vector<14x16xf32>
    %105 = arith.mulf %104, %101 : vector<14x16xf32>
    %106 = arith.addf %103, %105 : vector<14x16xf32>
    %c0_83 = arith.constant 0 : index
    %c0_84 = arith.constant 0 : index
    %c0_85 = arith.constant 0 : index
    %107 = vector.load %arg9[%c0_83, %c0_84, %c0_85] : memref<4x16x16xf32, #tpu.memory_space<vmem>>, vector<1x14x16xf32>
    %108 = vector.shape_cast %107 : vector<1x14x16xf32> to vector<14x16xf32>
    %109 = vector.shape_cast %106 : vector<14x16xf32> to vector<1x14x16xf32>
    tpu.vector_store %arg9[%c0_83, %c0_84, %c0_85], %109 {strides = array<i32>} : memref<4x16x16xf32, #tpu.memory_space<vmem>>, vector<1x14x16xf32>,
    %c6_i32_86 = arith.constant 6 : i32
    %110 = arith.addi %4, %c6_i32_86 : i32
    %c1_i32_87 = arith.constant 1 : i32
    %111 = arith.addi %110, %c1_i32_87 : i32
    %112 = arith.index_cast %111 : i32 to index
    %113 = memref.load %arg2[%112] : memref<36xi32, #tpu.memory_space<smem>>
    %114 = arith.sitofp %113 : i32 to f32
    %c0_88 = arith.constant 0 : index
    %c0_89 = arith.constant 0 : index
    %c1_90 = arith.constant 1 : index
    %c4_91 = arith.constant 4 : index
    %c1_92 = arith.constant 1 : index
    %115 = vector.load %arg5[%c0_88, %c0_89, %c1_90, %c4_91, %c1_92] : memref<1x4x3x18x18xf32, #tpu.memory_space<vmem>>, vector<1x1x1x14x16xf32>
    %116 = vector.shape_cast %115 : vector<1x1x1x14x16xf32> to vector<14x16xf32>
    %c0_93 = arith.constant 0 : index
    %c0_94 = arith.constant 0 : index
    %c0_95 = arith.constant 0 : index
    %117 = vector.load %arg9[%c0_93, %c0_94, %c0_95] : memref<4x16x16xf32, #tpu.memory_space<vmem>>, vector<1x14x16xf32>
    %118 = vector.shape_cast %117 : vector<1x14x16xf32> to vector<14x16xf32>
    %119 = vector.broadcast %114 : f32 to vector<14x16xf32>
    %120 = arith.mulf %119, %116 : vector<14x16xf32>
    %121 = arith.addf %118, %120 : vector<14x16xf32>
    %c0_96 = arith.constant 0 : index
    %c0_97 = arith.constant 0 : index
    %c0_98 = arith.constant 0 : index
    %122 = vector.load %arg9[%c0_96, %c0_97, %c0_98] : memref<4x16x16xf32, #tpu.memory_space<vmem>>, vector<1x14x16xf32>
    %123 = vector.shape_cast %122 : vector<1x14x16xf32> to vector<14x16xf32>
    %124 = vector.shape_cast %121 : vector<14x16xf32> to vector<1x14x16xf32>
    tpu.vector_store %arg9[%c0_96, %c0_97, %c0_98], %124 {strides = array<i32>} : memref<4x16x16xf32, #tpu.memory_space<vmem>>, vector<1x14x16xf32>,
    %c6_i32_99 = arith.constant 6 : i32
    %125 = arith.addi %4, %c6_i32_99 : i32
    %c2_i32_100 = arith.constant 2 : i32
    %126 = arith.addi %125, %c2_i32_100 : i32
    %127 = arith.index_cast %126 : i32 to index
    %128 = memref.load %arg2[%127] : memref<36xi32, #tpu.memory_space<smem>>
    %129 = arith.sitofp %128 : i32 to f32
    %c0_101 = arith.constant 0 : index
    %c0_102 = arith.constant 0 : index
    %c2_103 = arith.constant 2 : index
    %c4_104 = arith.constant 4 : index
    %c1_105 = arith.constant 1 : index
    %130 = vector.load %arg5[%c0_101, %c0_102, %c2_103, %c4_104, %c1_105] : memref<1x4x3x18x18xf32, #tpu.memory_space<vmem>>, vector<1x1x1x14x16xf32>
    %131 = vector.shape_cast %130 : vector<1x1x1x14x16xf32> to vector<14x16xf32>
    %c0_106 = arith.constant 0 : index
    %c0_107 = arith.constant 0 : index
    %c0_108 = arith.constant 0 : index
    %132 = vector.load %arg9[%c0_106, %c0_107, %c0_108] : memref<4x16x16xf32, #tpu.memory_space<vmem>>, vector<1x14x16xf32>
    %133 = vector.shape_cast %132 : vector<1x14x16xf32> to vector<14x16xf32>
    %134 = vector.broadcast %129 : f32 to vector<14x16xf32>
    %135 = arith.mulf %134, %131 : vector<14x16xf32>
    %136 = arith.addf %133, %135 : vector<14x16xf32>
    %c0_109 = arith.constant 0 : index
    %c0_110 = arith.constant 0 : index
    %c0_111 = arith.constant 0 : index
    %137 = vector.load %arg9[%c0_109, %c0_110, %c0_111] : memref<4x16x16xf32, #tpu.memory_space<vmem>>, vector<1x14x16xf32>
    %138 = vector.shape_cast %137 : vector<1x14x16xf32> to vector<14x16xf32>
    %139 = vector.shape_cast %136 : vector<14x16xf32> to vector<1x14x16xf32>
    tpu.vector_store %arg9[%c0_109, %c0_110, %c0_111], %139 {strides = array<i32>} : memref<4x16x16xf32, #tpu.memory_space<vmem>>, vector<1x14x16xf32>,
    %c1_i32_112 = arith.constant 1 : i32
    %140 = arith.addi %0, %c1_i32_112 : i32
    %c9_i32_113 = arith.constant 9 : i32
    %141 = arith.muli %140, %c9_i32_113 : i32
    %c0_i32_114 = arith.constant 0 : i32
    %142 = arith.addi %141, %c0_i32_114 : i32
    %c0_i32_115 = arith.constant 0 : i32
    %143 = arith.addi %142, %c0_i32_115 : i32
    %144 = arith.index_cast %143 : i32 to index
    %145 = memref.load %arg2[%144] : memref<36xi32, #tpu.memory_space<smem>>
    %146 = arith.sitofp %145 : i32 to f32
    %c0_116 = arith.constant 0 : index
    %c1_117 = arith.constant 1 : index
    %c0_118 = arith.constant 0 : index
    %c0_119 = arith.constant 0 : index
    %c1_120 = arith.constant 1 : index
    %147 = vector.load %arg5[%c0_116, %c1_117, %c0_118, %c0_119, %c1_120] : memref<1x4x3x18x18xf32, #tpu.memory_space<vmem>>, vector<1x1x1x14x16xf32>
    %148 = vector.shape_cast %147 : vector<1x1x1x14x16xf32> to vector<14x16xf32>
    %c1_121 = arith.constant 1 : index
    %c2_122 = arith.constant 2 : index
    %c0_123 = arith.constant 0 : index
    %149 = vector.load %arg9[%c1_121, %c2_122, %c0_123] : memref<4x16x16xf32, #tpu.memory_space<vmem>>, vector<1x14x16xf32>
    %150 = vector.shape_cast %149 : vector<1x14x16xf32> to vector<14x16xf32>
    %151 = vector.broadcast %146 : f32 to vector<14x16xf32>
    %152 = arith.mulf %151, %148 : vector<14x16xf32>
    %153 = arith.addf %150, %152 : vector<14x16xf32>
    %c1_124 = arith.constant 1 : index
    %c2_125 = arith.constant 2 : index
    %c0_126 = arith.constant 0 : index
    %154 = vector.load %arg9[%c1_124, %c2_125, %c0_126] : memref<4x16x16xf32, #tpu.memory_space<vmem>>, vector<1x14x16xf32>
    %155 = vector.shape_cast %154 : vector<1x14x16xf32> to vector<14x16xf32>
    %156 = vector.shape_cast %153 : vector<14x16xf32> to vector<1x14x16xf32>
    tpu.vector_store %arg9[%c1_124, %c2_125, %c0_126], %156 {strides = array<i32>} : memref<4x16x16xf32, #tpu.memory_space<vmem>>, vector<1x14x16xf32>,
    %c0_i32_127 = arith.constant 0 : i32
    %157 = arith.addi %141, %c0_i32_127 : i32
    %c1_i32_128 = arith.constant 1 : i32
    %158 = arith.addi %157, %c1_i32_128 : i32
    %159 = arith.index_cast %158 : i32 to index
    %160 = memref.load %arg2[%159] : memref<36xi32, #tpu.memory_space<smem>>
    %161 = arith.sitofp %160 : i32 to f32
    %c0_129 = arith.constant 0 : index
    %c1_130 = arith.constant 1 : index
    %c1_131 = arith.constant 1 : index
    %c0_132 = arith.constant 0 : index
    %c1_133 = arith.constant 1 : index
    %162 = vector.load %arg5[%c0_129, %c1_130, %c1_131, %c0_132, %c1_133] : memref<1x4x3x18x18xf32, #tpu.memory_space<vmem>>, vector<1x1x1x14x16xf32>
    %163 = vector.shape_cast %162 : vector<1x1x1x14x16xf32> to vector<14x16xf32>
    %c1_134 = arith.constant 1 : index
    %c2_135 = arith.constant 2 : index
    %c0_136 = arith.constant 0 : index
    %164 = vector.load %arg9[%c1_134, %c2_135, %c0_136] : memref<4x16x16xf32, #tpu.memory_space<vmem>>, vector<1x14x16xf32>
    %165 = vector.shape_cast %164 : vector<1x14x16xf32> to vector<14x16xf32>
    %166 = vector.broadcast %161 : f32 to vector<14x16xf32>
    %167 = arith.mulf %166, %163 : vector<14x16xf32>
    %168 = arith.addf %165, %167 : vector<14x16xf32>
    %c1_137 = arith.constant 1 : index
    %c2_138 = arith.constant 2 : index
    %c0_139 = arith.constant 0 : index
    %169 = vector.load %arg9[%c1_137, %c2_138, %c0_139] : memref<4x16x16xf32, #tpu.memory_space<vmem>>, vector<1x14x16xf32>
    %170 = vector.shape_cast %169 : vector<1x14x16xf32> to vector<14x16xf32>
    %171 = vector.shape_cast %168 : vector<14x16xf32> to vector<1x14x16xf32>
    tpu.vector_store %arg9[%c1_137, %c2_138, %c0_139], %171 {strides = array<i32>} : memref<4x16x16xf32, #tpu.memory_space<vmem>>, vector<1x14x16xf32>,
    %c0_i32_140 = arith.constant 0 : i32
    %172 = arith.addi %141, %c0_i32_140 : i32
    %c2_i32_141 = arith.constant 2 : i32
    %173 = arith.addi %172, %c2_i32_141 : i32
    %174 = arith.index_cast %173 : i32 to index
    %175 = memref.load %arg2[%174] : memref<36xi32, #tpu.memory_space<smem>>
    %176 = arith.sitofp %175 : i32 to f32
    %c0_142 = arith.constant 0 : index
    %c1_143 = arith.constant 1 : index
    %c2_144 = arith.constant 2 : index
    %c0_145 = arith.constant 0 : index
    %c1_146 = arith.constant 1 : index
    %177 = vector.load %arg5[%c0_142, %c1_143, %c2_144, %c0_145, %c1_146] : memref<1x4x3x18x18xf32, #tpu.memory_space<vmem>>, vector<1x1x1x14x16xf32>
    %178 = vector.shape_cast %177 : vector<1x1x1x14x16xf32> to vector<14x16xf32>
    %c1_147 = arith.constant 1 : index
    %c2_148 = arith.constant 2 : index
    %c0_149 = arith.constant 0 : index
    %179 = vector.load %arg9[%c1_147, %c2_148, %c0_149] : memref<4x16x16xf32, #tpu.memory_space<vmem>>, vector<1x14x16xf32>
    %180 = vector.shape_cast %179 : vector<1x14x16xf32> to vector<14x16xf32>
    %181 = vector.broadcast %176 : f32 to vector<14x16xf32>
    %182 = arith.mulf %181, %178 : vector<14x16xf32>
    %183 = arith.addf %180, %182 : vector<14x16xf32>
    %c1_150 = arith.constant 1 : index
    %c2_151 = arith.constant 2 : index
    %c0_152 = arith.constant 0 : index
    %184 = vector.load %arg9[%c1_150, %c2_151, %c0_152] : memref<4x16x16xf32, #tpu.memory_space<vmem>>, vector<1x14x16xf32>
    %185 = vector.shape_cast %184 : vector<1x14x16xf32> to vector<14x16xf32>
    %186 = vector.shape_cast %183 : vector<14x16xf32> to vector<1x14x16xf32>
    tpu.vector_store %arg9[%c1_150, %c2_151, %c0_152], %186 {strides = array<i32>} : memref<4x16x16xf32, #tpu.memory_space<vmem>>, vector<1x14x16xf32>,
    %c3_i32_153 = arith.constant 3 : i32
    %187 = arith.addi %141, %c3_i32_153 : i32
    %c0_i32_154 = arith.constant 0 : i32
    %188 = arith.addi %187, %c0_i32_154 : i32
    %189 = arith.index_cast %188 : i32 to index
    %190 = memref.load %arg2[%189] : memref<36xi32, #tpu.memory_space<smem>>
    %191 = arith.sitofp %190 : i32 to f32
    %c0_155 = arith.constant 0 : index
    %c1_156 = arith.constant 1 : index
    %c0_157 = arith.constant 0 : index
    %c1_158 = arith.constant 1 : index
    %c1_159 = arith.constant 1 : index
    %192 = vector.load %arg5[%c0_155, %c1_156, %c0_157, %c1_158, %c1_159] : memref<1x4x3x18x18xf32, #tpu.memory_space<vmem>>, vector<1x1x1x16x16xf32>
    %193 = vector.shape_cast %192 : vector<1x1x1x16x16xf32> to vector<16x16xf32>
    %c1_160 = arith.constant 1 : index
    %c0_161 = arith.constant 0 : index
    %c0_162 = arith.constant 0 : index
    %194 = vector.load %arg9[%c1_160, %c0_161, %c0_162] : memref<4x16x16xf32, #tpu.memory_space<vmem>>, vector<1x16x16xf32>
    %195 = vector.shape_cast %194 : vector<1x16x16xf32> to vector<16x16xf32>
    %196 = vector.broadcast %191 : f32 to vector<16x16xf32>
    %197 = arith.mulf %196, %193 : vector<16x16xf32>
    %198 = arith.addf %195, %197 : vector<16x16xf32>
    %c1_163 = arith.constant 1 : index
    %c0_164 = arith.constant 0 : index
    %c0_165 = arith.constant 0 : index
    %199 = vector.load %arg9[%c1_163, %c0_164, %c0_165] : memref<4x16x16xf32, #tpu.memory_space<vmem>>, vector<1x16x16xf32>
    %200 = vector.shape_cast %199 : vector<1x16x16xf32> to vector<16x16xf32>
    %201 = vector.shape_cast %198 : vector<16x16xf32> to vector<1x16x16xf32>
    tpu.vector_store %arg9[%c1_163, %c0_164, %c0_165], %201 {strides = array<i32>} : memref<4x16x16xf32, #tpu.memory_space<vmem>>, vector<1x16x16xf32>,
    %c3_i32_166 = arith.constant 3 : i32
    %202 = arith.addi %141, %c3_i32_166 : i32
    %c1_i32_167 = arith.constant 1 : i32
    %203 = arith.addi %202, %c1_i32_167 : i32
    %204 = arith.index_cast %203 : i32 to index
    %205 = memref.load %arg2[%204] : memref<36xi32, #tpu.memory_space<smem>>
    %206 = arith.sitofp %205 : i32 to f32
    %c0_168 = arith.constant 0 : index
    %c1_169 = arith.constant 1 : index
    %c1_170 = arith.constant 1 : index
    %c1_171 = arith.constant 1 : index
    %c1_172 = arith.constant 1 : index
    %207 = vector.load %arg5[%c0_168, %c1_169, %c1_170, %c1_171, %c1_172] : memref<1x4x3x18x18xf32, #tpu.memory_space<vmem>>, vector<1x1x1x16x16xf32>
    %208 = vector.shape_cast %207 : vector<1x1x1x16x16xf32> to vector<16x16xf32>
    %c1_173 = arith.constant 1 : index
    %c0_174 = arith.constant 0 : index
    %c0_175 = arith.constant 0 : index
    %209 = vector.load %arg9[%c1_173, %c0_174, %c0_175] : memref<4x16x16xf32, #tpu.memory_space<vmem>>, vector<1x16x16xf32>
    %210 = vector.shape_cast %209 : vector<1x16x16xf32> to vector<16x16xf32>
    %211 = vector.broadcast %206 : f32 to vector<16x16xf32>
    %212 = arith.mulf %211, %208 : vector<16x16xf32>
    %213 = arith.addf %210, %212 : vector<16x16xf32>
    %c1_176 = arith.constant 1 : index
    %c0_177 = arith.constant 0 : index
    %c0_178 = arith.constant 0 : index
    %214 = vector.load %arg9[%c1_176, %c0_177, %c0_178] : memref<4x16x16xf32, #tpu.memory_space<vmem>>, vector<1x16x16xf32>
    %215 = vector.shape_cast %214 : vector<1x16x16xf32> to vector<16x16xf32>
    %216 = vector.shape_cast %213 : vector<16x16xf32> to vector<1x16x16xf32>
    tpu.vector_store %arg9[%c1_176, %c0_177, %c0_178], %216 {strides = array<i32>} : memref<4x16x16xf32, #tpu.memory_space<vmem>>, vector<1x16x16xf32>,
    %c3_i32_179 = arith.constant 3 : i32
    %217 = arith.addi %141, %c3_i32_179 : i32
    %c2_i32_180 = arith.constant 2 : i32
    %218 = arith.addi %217, %c2_i32_180 : i32
    %219 = arith.index_cast %218 : i32 to index
    %220 = memref.load %arg2[%219] : memref<36xi32, #tpu.memory_space<smem>>
    %221 = arith.sitofp %220 : i32 to f32
    %c0_181 = arith.constant 0 : index
    %c1_182 = arith.constant 1 : index
    %c2_183 = arith.constant 2 : index
    %c1_184 = arith.constant 1 : index
    %c1_185 = arith.constant 1 : index
    %222 = vector.load %arg5[%c0_181, %c1_182, %c2_183, %c1_184, %c1_185] : memref<1x4x3x18x18xf32, #tpu.memory_space<vmem>>, vector<1x1x1x16x16xf32>
    %223 = vector.shape_cast %222 : vector<1x1x1x16x16xf32> to vector<16x16xf32>
    %c1_186 = arith.constant 1 : index
    %c0_187 = arith.constant 0 : index
    %c0_188 = arith.constant 0 : index
    %224 = vector.load %arg9[%c1_186, %c0_187, %c0_188] : memref<4x16x16xf32, #tpu.memory_space<vmem>>, vector<1x16x16xf32>
    %225 = vector.shape_cast %224 : vector<1x16x16xf32> to vector<16x16xf32>
    %226 = vector.broadcast %221 : f32 to vector<16x16xf32>
    %227 = arith.mulf %226, %223 : vector<16x16xf32>
    %228 = arith.addf %225, %227 : vector<16x16xf32>
    %c1_189 = arith.constant 1 : index
    %c0_190 = arith.constant 0 : index
    %c0_191 = arith.constant 0 : index
    %229 = vector.load %arg9[%c1_189, %c0_190, %c0_191] : memref<4x16x16xf32, #tpu.memory_space<vmem>>, vector<1x16x16xf32>
    %230 = vector.shape_cast %229 : vector<1x16x16xf32> to vector<16x16xf32>
    %231 = vector.shape_cast %228 : vector<16x16xf32> to vector<1x16x16xf32>
    tpu.vector_store %arg9[%c1_189, %c0_190, %c0_191], %231 {strides = array<i32>} : memref<4x16x16xf32, #tpu.memory_space<vmem>>, vector<1x16x16xf32>,
    %c6_i32_192 = arith.constant 6 : i32
    %232 = arith.addi %141, %c6_i32_192 : i32
    %c0_i32_193 = arith.constant 0 : i32
    %233 = arith.addi %232, %c0_i32_193 : i32
    %234 = arith.index_cast %233 : i32 to index
    %235 = memref.load %arg2[%234] : memref<36xi32, #tpu.memory_space<smem>>
    %236 = arith.sitofp %235 : i32 to f32
    %c0_194 = arith.constant 0 : index
    %c1_195 = arith.constant 1 : index
    %c0_196 = arith.constant 0 : index
    %c4_197 = arith.constant 4 : index
    %c1_198 = arith.constant 1 : index
    %237 = vector.load %arg5[%c0_194, %c1_195, %c0_196, %c4_197, %c1_198] : memref<1x4x3x18x18xf32, #tpu.memory_space<vmem>>, vector<1x1x1x14x16xf32>
    %238 = vector.shape_cast %237 : vector<1x1x1x14x16xf32> to vector<14x16xf32>
    %c1_199 = arith.constant 1 : index
    %c0_200 = arith.constant 0 : index
    %c0_201 = arith.constant 0 : index
    %239 = vector.load %arg9[%c1_199, %c0_200, %c0_201] : memref<4x16x16xf32, #tpu.memory_space<vmem>>, vector<1x14x16xf32>
    %240 = vector.shape_cast %239 : vector<1x14x16xf32> to vector<14x16xf32>
    %241 = vector.broadcast %236 : f32 to vector<14x16xf32>
    %242 = arith.mulf %241, %238 : vector<14x16xf32>
    %243 = arith.addf %240, %242 : vector<14x16xf32>
    %c1_202 = arith.constant 1 : index
    %c0_203 = arith.constant 0 : index
    %c0_204 = arith.constant 0 : index
    %244 = vector.load %arg9[%c1_202, %c0_203, %c0_204] : memref<4x16x16xf32, #tpu.memory_space<vmem>>, vector<1x14x16xf32>
    %245 = vector.shape_cast %244 : vector<1x14x16xf32> to vector<14x16xf32>
    %246 = vector.shape_cast %243 : vector<14x16xf32> to vector<1x14x16xf32>
    tpu.vector_store %arg9[%c1_202, %c0_203, %c0_204], %246 {strides = array<i32>} : memref<4x16x16xf32, #tpu.memory_space<vmem>>, vector<1x14x16xf32>,
    %c6_i32_205 = arith.constant 6 : i32
    %247 = arith.addi %141, %c6_i32_205 : i32
    %c1_i32_206 = arith.constant 1 : i32
    %248 = arith.addi %247, %c1_i32_206 : i32
    %249 = arith.index_cast %248 : i32 to index
    %250 = memref.load %arg2[%249] : memref<36xi32, #tpu.memory_space<smem>>
    %251 = arith.sitofp %250 : i32 to f32
    %c0_207 = arith.constant 0 : index
    %c1_208 = arith.constant 1 : index
    %c1_209 = arith.constant 1 : index
    %c4_210 = arith.constant 4 : index
    %c1_211 = arith.constant 1 : index
    %252 = vector.load %arg5[%c0_207, %c1_208, %c1_209, %c4_210, %c1_211] : memref<1x4x3x18x18xf32, #tpu.memory_space<vmem>>, vector<1x1x1x14x16xf32>
    %253 = vector.shape_cast %252 : vector<1x1x1x14x16xf32> to vector<14x16xf32>
    %c1_212 = arith.constant 1 : index
    %c0_213 = arith.constant 0 : index
    %c0_214 = arith.constant 0 : index
    %254 = vector.load %arg9[%c1_212, %c0_213, %c0_214] : memref<4x16x16xf32, #tpu.memory_space<vmem>>, vector<1x14x16xf32>
    %255 = vector.shape_cast %254 : vector<1x14x16xf32> to vector<14x16xf32>
    %256 = vector.broadcast %251 : f32 to vector<14x16xf32>
    %257 = arith.mulf %256, %253 : vector<14x16xf32>
    %258 = arith.addf %255, %257 : vector<14x16xf32>
    %c1_215 = arith.constant 1 : index
    %c0_216 = arith.constant 0 : index
    %c0_217 = arith.constant 0 : index
    %259 = vector.load %arg9[%c1_215, %c0_216, %c0_217] : memref<4x16x16xf32, #tpu.memory_space<vmem>>, vector<1x14x16xf32>
    %260 = vector.shape_cast %259 : vector<1x14x16xf32> to vector<14x16xf32>
    %261 = vector.shape_cast %258 : vector<14x16xf32> to vector<1x14x16xf32>
    tpu.vector_store %arg9[%c1_215, %c0_216, %c0_217], %261 {strides = array<i32>} : memref<4x16x16xf32, #tpu.memory_space<vmem>>, vector<1x14x16xf32>,
    %c6_i32_218 = arith.constant 6 : i32
    %262 = arith.addi %141, %c6_i32_218 : i32
    %c2_i32_219 = arith.constant 2 : i32
    %263 = arith.addi %262, %c2_i32_219 : i32
    %264 = arith.index_cast %263 : i32 to index
    %265 = memref.load %arg2[%264] : memref<36xi32, #tpu.memory_space<smem>>
    %266 = arith.sitofp %265 : i32 to f32
    %c0_220 = arith.constant 0 : index
    %c1_221 = arith.constant 1 : index
    %c2_222 = arith.constant 2 : index
    %c4_223 = arith.constant 4 : index
    %c1_224 = arith.constant 1 : index
    %267 = vector.load %arg5[%c0_220, %c1_221, %c2_222, %c4_223, %c1_224] : memref<1x4x3x18x18xf32, #tpu.memory_space<vmem>>, vector<1x1x1x14x16xf32>
    %268 = vector.shape_cast %267 : vector<1x1x1x14x16xf32> to vector<14x16xf32>
    %c1_225 = arith.constant 1 : index
    %c0_226 = arith.constant 0 : index
    %c0_227 = arith.constant 0 : index
    %269 = vector.load %arg9[%c1_225, %c0_226, %c0_227] : memref<4x16x16xf32, #tpu.memory_space<vmem>>, vector<1x14x16xf32>
    %270 = vector.shape_cast %269 : vector<1x14x16xf32> to vector<14x16xf32>
    %271 = vector.broadcast %266 : f32 to vector<14x16xf32>
    %272 = arith.mulf %271, %268 : vector<14x16xf32>
    %273 = arith.addf %270, %272 : vector<14x16xf32>
    %c1_228 = arith.constant 1 : index
    %c0_229 = arith.constant 0 : index
    %c0_230 = arith.constant 0 : index
    %274 = vector.load %arg9[%c1_228, %c0_229, %c0_230] : memref<4x16x16xf32, #tpu.memory_space<vmem>>, vector<1x14x16xf32>
    %275 = vector.shape_cast %274 : vector<1x14x16xf32> to vector<14x16xf32>
    %276 = vector.shape_cast %273 : vector<14x16xf32> to vector<1x14x16xf32>
    tpu.vector_store %arg9[%c1_228, %c0_229, %c0_230], %276 {strides = array<i32>} : memref<4x16x16xf32, #tpu.memory_space<vmem>>, vector<1x14x16xf32>,
    %c2_i32_231 = arith.constant 2 : i32
    %277 = arith.addi %0, %c2_i32_231 : i32
    %c9_i32_232 = arith.constant 9 : i32
    %278 = arith.muli %277, %c9_i32_232 : i32
    %c0_i32_233 = arith.constant 0 : i32
    %279 = arith.addi %278, %c0_i32_233 : i32
    %c0_i32_234 = arith.constant 0 : i32
    %280 = arith.addi %279, %c0_i32_234 : i32
    %281 = arith.index_cast %280 : i32 to index
    %282 = memref.load %arg2[%281] : memref<36xi32, #tpu.memory_space<smem>>
    %283 = arith.sitofp %282 : i32 to f32
    %c0_235 = arith.constant 0 : index
    %c2_236 = arith.constant 2 : index
    %c0_237 = arith.constant 0 : index
    %c0_238 = arith.constant 0 : index
    %c1_239 = arith.constant 1 : index
    %284 = vector.load %arg5[%c0_235, %c2_236, %c0_237, %c0_238, %c1_239] : memref<1x4x3x18x18xf32, #tpu.memory_space<vmem>>, vector<1x1x1x14x16xf32>
    %285 = vector.shape_cast %284 : vector<1x1x1x14x16xf32> to vector<14x16xf32>
    %c2_240 = arith.constant 2 : index
    %c2_241 = arith.constant 2 : index
    %c0_242 = arith.constant 0 : index
    %286 = vector.load %arg9[%c2_240, %c2_241, %c0_242] : memref<4x16x16xf32, #tpu.memory_space<vmem>>, vector<1x14x16xf32>
    %287 = vector.shape_cast %286 : vector<1x14x16xf32> to vector<14x16xf32>
    %288 = vector.broadcast %283 : f32 to vector<14x16xf32>
    %289 = arith.mulf %288, %285 : vector<14x16xf32>
    %290 = arith.addf %287, %289 : vector<14x16xf32>
    %c2_243 = arith.constant 2 : index
    %c2_244 = arith.constant 2 : index
    %c0_245 = arith.constant 0 : index
    %291 = vector.load %arg9[%c2_243, %c2_244, %c0_245] : memref<4x16x16xf32, #tpu.memory_space<vmem>>, vector<1x14x16xf32>
    %292 = vector.shape_cast %291 : vector<1x14x16xf32> to vector<14x16xf32>
    %293 = vector.shape_cast %290 : vector<14x16xf32> to vector<1x14x16xf32>
    tpu.vector_store %arg9[%c2_243, %c2_244, %c0_245], %293 {strides = array<i32>} : memref<4x16x16xf32, #tpu.memory_space<vmem>>, vector<1x14x16xf32>,
    %c0_i32_246 = arith.constant 0 : i32
    %294 = arith.addi %278, %c0_i32_246 : i32
    %c1_i32_247 = arith.constant 1 : i32
    %295 = arith.addi %294, %c1_i32_247 : i32
    %296 = arith.index_cast %295 : i32 to index
    %297 = memref.load %arg2[%296] : memref<36xi32, #tpu.memory_space<smem>>
    %298 = arith.sitofp %297 : i32 to f32
    %c0_248 = arith.constant 0 : index
    %c2_249 = arith.constant 2 : index
    %c1_250 = arith.constant 1 : index
    %c0_251 = arith.constant 0 : index
    %c1_252 = arith.constant 1 : index
    %299 = vector.load %arg5[%c0_248, %c2_249, %c1_250, %c0_251, %c1_252] : memref<1x4x3x18x18xf32, #tpu.memory_space<vmem>>, vector<1x1x1x14x16xf32>
    %300 = vector.shape_cast %299 : vector<1x1x1x14x16xf32> to vector<14x16xf32>
    %c2_253 = arith.constant 2 : index
    %c2_254 = arith.constant 2 : index
    %c0_255 = arith.constant 0 : index
    %301 = vector.load %arg9[%c2_253, %c2_254, %c0_255] : memref<4x16x16xf32, #tpu.memory_space<vmem>>, vector<1x14x16xf32>
    %302 = vector.shape_cast %301 : vector<1x14x16xf32> to vector<14x16xf32>
    %303 = vector.broadcast %298 : f32 to vector<14x16xf32>
    %304 = arith.mulf %303, %300 : vector<14x16xf32>
    %305 = arith.addf %302, %304 : vector<14x16xf32>
    %c2_256 = arith.constant 2 : index
    %c2_257 = arith.constant 2 : index
    %c0_258 = arith.constant 0 : index
    %306 = vector.load %arg9[%c2_256, %c2_257, %c0_258] : memref<4x16x16xf32, #tpu.memory_space<vmem>>, vector<1x14x16xf32>
    %307 = vector.shape_cast %306 : vector<1x14x16xf32> to vector<14x16xf32>
    %308 = vector.shape_cast %305 : vector<14x16xf32> to vector<1x14x16xf32>
    tpu.vector_store %arg9[%c2_256, %c2_257, %c0_258], %308 {strides = array<i32>} : memref<4x16x16xf32, #tpu.memory_space<vmem>>, vector<1x14x16xf32>,
    %c0_i32_259 = arith.constant 0 : i32
    %309 = arith.addi %278, %c0_i32_259 : i32
    %c2_i32_260 = arith.constant 2 : i32
    %310 = arith.addi %309, %c2_i32_260 : i32
    %311 = arith.index_cast %310 : i32 to index
    %312 = memref.load %arg2[%311] : memref<36xi32, #tpu.memory_space<smem>>
    %313 = arith.sitofp %312 : i32 to f32
    %c0_261 = arith.constant 0 : index
    %c2_262 = arith.constant 2 : index
    %c2_263 = arith.constant 2 : index
    %c0_264 = arith.constant 0 : index
    %c1_265 = arith.constant 1 : index
    %314 = vector.load %arg5[%c0_261, %c2_262, %c2_263, %c0_264, %c1_265] : memref<1x4x3x18x18xf32, #tpu.memory_space<vmem>>, vector<1x1x1x14x16xf32>
    %315 = vector.shape_cast %314 : vector<1x1x1x14x16xf32> to vector<14x16xf32>
    %c2_266 = arith.constant 2 : index
    %c2_267 = arith.constant 2 : index
    %c0_268 = arith.constant 0 : index
    %316 = vector.load %arg9[%c2_266, %c2_267, %c0_268] : memref<4x16x16xf32, #tpu.memory_space<vmem>>, vector<1x14x16xf32>
    %317 = vector.shape_cast %316 : vector<1x14x16xf32> to vector<14x16xf32>
    %318 = vector.broadcast %313 : f32 to vector<14x16xf32>
    %319 = arith.mulf %318, %315 : vector<14x16xf32>
    %320 = arith.addf %317, %319 : vector<14x16xf32>
    %c2_269 = arith.constant 2 : index
    %c2_270 = arith.constant 2 : index
    %c0_271 = arith.constant 0 : index
    %321 = vector.load %arg9[%c2_269, %c2_270, %c0_271] : memref<4x16x16xf32, #tpu.memory_space<vmem>>, vector<1x14x16xf32>
    %322 = vector.shape_cast %321 : vector<1x14x16xf32> to vector<14x16xf32>
    %323 = vector.shape_cast %320 : vector<14x16xf32> to vector<1x14x16xf32>
    tpu.vector_store %arg9[%c2_269, %c2_270, %c0_271], %323 {strides = array<i32>} : memref<4x16x16xf32, #tpu.memory_space<vmem>>, vector<1x14x16xf32>,
    %c3_i32_272 = arith.constant 3 : i32
    %324 = arith.addi %278, %c3_i32_272 : i32
    %c0_i32_273 = arith.constant 0 : i32
    %325 = arith.addi %324, %c0_i32_273 : i32
    %326 = arith.index_cast %325 : i32 to index
    %327 = memref.load %arg2[%326] : memref<36xi32, #tpu.memory_space<smem>>
    %328 = arith.sitofp %327 : i32 to f32
    %c0_274 = arith.constant 0 : index
    %c2_275 = arith.constant 2 : index
    %c0_276 = arith.constant 0 : index
    %c1_277 = arith.constant 1 : index
    %c1_278 = arith.constant 1 : index
    %329 = vector.load %arg5[%c0_274, %c2_275, %c0_276, %c1_277, %c1_278] : memref<1x4x3x18x18xf32, #tpu.memory_space<vmem>>, vector<1x1x1x16x16xf32>
    %330 = vector.shape_cast %329 : vector<1x1x1x16x16xf32> to vector<16x16xf32>
    %c2_279 = arith.constant 2 : index
    %c0_280 = arith.constant 0 : index
    %c0_281 = arith.constant 0 : index
    %331 = vector.load %arg9[%c2_279, %c0_280, %c0_281] : memref<4x16x16xf32, #tpu.memory_space<vmem>>, vector<1x16x16xf32>
    %332 = vector.shape_cast %331 : vector<1x16x16xf32> to vector<16x16xf32>
    %333 = vector.broadcast %328 : f32 to vector<16x16xf32>
    %334 = arith.mulf %333, %330 : vector<16x16xf32>
    %335 = arith.addf %332, %334 : vector<16x16xf32>
    %c2_282 = arith.constant 2 : index
    %c0_283 = arith.constant 0 : index
    %c0_284 = arith.constant 0 : index
    %336 = vector.load %arg9[%c2_282, %c0_283, %c0_284] : memref<4x16x16xf32, #tpu.memory_space<vmem>>, vector<1x16x16xf32>
    %337 = vector.shape_cast %336 : vector<1x16x16xf32> to vector<16x16xf32>
    %338 = vector.shape_cast %335 : vector<16x16xf32> to vector<1x16x16xf32>
    tpu.vector_store %arg9[%c2_282, %c0_283, %c0_284], %338 {strides = array<i32>} : memref<4x16x16xf32, #tpu.memory_space<vmem>>, vector<1x16x16xf32>,
    %c3_i32_285 = arith.constant 3 : i32
    %339 = arith.addi %278, %c3_i32_285 : i32
    %c1_i32_286 = arith.constant 1 : i32
    %340 = arith.addi %339, %c1_i32_286 : i32
    %341 = arith.index_cast %340 : i32 to index
    %342 = memref.load %arg2[%341] : memref<36xi32, #tpu.memory_space<smem>>
    %343 = arith.sitofp %342 : i32 to f32
    %c0_287 = arith.constant 0 : index
    %c2_288 = arith.constant 2 : index
    %c1_289 = arith.constant 1 : index
    %c1_290 = arith.constant 1 : index
    %c1_291 = arith.constant 1 : index
    %344 = vector.load %arg5[%c0_287, %c2_288, %c1_289, %c1_290, %c1_291] : memref<1x4x3x18x18xf32, #tpu.memory_space<vmem>>, vector<1x1x1x16x16xf32>
    %345 = vector.shape_cast %344 : vector<1x1x1x16x16xf32> to vector<16x16xf32>
    %c2_292 = arith.constant 2 : index
    %c0_293 = arith.constant 0 : index
    %c0_294 = arith.constant 0 : index
    %346 = vector.load %arg9[%c2_292, %c0_293, %c0_294] : memref<4x16x16xf32, #tpu.memory_space<vmem>>, vector<1x16x16xf32>
    %347 = vector.shape_cast %346 : vector<1x16x16xf32> to vector<16x16xf32>
    %348 = vector.broadcast %343 : f32 to vector<16x16xf32>
    %349 = arith.mulf %348, %345 : vector<16x16xf32>
    %350 = arith.addf %347, %349 : vector<16x16xf32>
    %c2_295 = arith.constant 2 : index
    %c0_296 = arith.constant 0 : index
    %c0_297 = arith.constant 0 : index
    %351 = vector.load %arg9[%c2_295, %c0_296, %c0_297] : memref<4x16x16xf32, #tpu.memory_space<vmem>>, vector<1x16x16xf32>
    %352 = vector.shape_cast %351 : vector<1x16x16xf32> to vector<16x16xf32>
    %353 = vector.shape_cast %350 : vector<16x16xf32> to vector<1x16x16xf32>
    tpu.vector_store %arg9[%c2_295, %c0_296, %c0_297], %353 {strides = array<i32>} : memref<4x16x16xf32, #tpu.memory_space<vmem>>, vector<1x16x16xf32>,
    %c3_i32_298 = arith.constant 3 : i32
    %354 = arith.addi %278, %c3_i32_298 : i32
    %c2_i32_299 = arith.constant 2 : i32
    %355 = arith.addi %354, %c2_i32_299 : i32
    %356 = arith.index_cast %355 : i32 to index
    %357 = memref.load %arg2[%356] : memref<36xi32, #tpu.memory_space<smem>>
    %358 = arith.sitofp %357 : i32 to f32
    %c0_300 = arith.constant 0 : index
    %c2_301 = arith.constant 2 : index
    %c2_302 = arith.constant 2 : index
    %c1_303 = arith.constant 1 : index
    %c1_304 = arith.constant 1 : index
    %359 = vector.load %arg5[%c0_300, %c2_301, %c2_302, %c1_303, %c1_304] : memref<1x4x3x18x18xf32, #tpu.memory_space<vmem>>, vector<1x1x1x16x16xf32>
    %360 = vector.shape_cast %359 : vector<1x1x1x16x16xf32> to vector<16x16xf32>
    %c2_305 = arith.constant 2 : index
    %c0_306 = arith.constant 0 : index
    %c0_307 = arith.constant 0 : index
    %361 = vector.load %arg9[%c2_305, %c0_306, %c0_307] : memref<4x16x16xf32, #tpu.memory_space<vmem>>, vector<1x16x16xf32>
    %362 = vector.shape_cast %361 : vector<1x16x16xf32> to vector<16x16xf32>
    %363 = vector.broadcast %358 : f32 to vector<16x16xf32>
    %364 = arith.mulf %363, %360 : vector<16x16xf32>
    %365 = arith.addf %362, %364 : vector<16x16xf32>
    %c2_308 = arith.constant 2 : index
    %c0_309 = arith.constant 0 : index
    %c0_310 = arith.constant 0 : index
    %366 = vector.load %arg9[%c2_308, %c0_309, %c0_310] : memref<4x16x16xf32, #tpu.memory_space<vmem>>, vector<1x16x16xf32>
    %367 = vector.shape_cast %366 : vector<1x16x16xf32> to vector<16x16xf32>
    %368 = vector.shape_cast %365 : vector<16x16xf32> to vector<1x16x16xf32>
    tpu.vector_store %arg9[%c2_308, %c0_309, %c0_310], %368 {strides = array<i32>} : memref<4x16x16xf32, #tpu.memory_space<vmem>>, vector<1x16x16xf32>,
    %c6_i32_311 = arith.constant 6 : i32
    %369 = arith.addi %278, %c6_i32_311 : i32
    %c0_i32_312 = arith.constant 0 : i32
    %370 = arith.addi %369, %c0_i32_312 : i32
    %371 = arith.index_cast %370 : i32 to index
    %372 = memref.load %arg2[%371] : memref<36xi32, #tpu.memory_space<smem>>
    %373 = arith.sitofp %372 : i32 to f32
    %c0_313 = arith.constant 0 : index
    %c2_314 = arith.constant 2 : index
    %c0_315 = arith.constant 0 : index
    %c4_316 = arith.constant 4 : index
    %c1_317 = arith.constant 1 : index
    %374 = vector.load %arg5[%c0_313, %c2_314, %c0_315, %c4_316, %c1_317] : memref<1x4x3x18x18xf32, #tpu.memory_space<vmem>>, vector<1x1x1x14x16xf32>
    %375 = vector.shape_cast %374 : vector<1x1x1x14x16xf32> to vector<14x16xf32>
    %c2_318 = arith.constant 2 : index
    %c0_319 = arith.constant 0 : index
    %c0_320 = arith.constant 0 : index
    %376 = vector.load %arg9[%c2_318, %c0_319, %c0_320] : memref<4x16x16xf32, #tpu.memory_space<vmem>>, vector<1x14x16xf32>
    %377 = vector.shape_cast %376 : vector<1x14x16xf32> to vector<14x16xf32>
    %378 = vector.broadcast %373 : f32 to vector<14x16xf32>
    %379 = arith.mulf %378, %375 : vector<14x16xf32>
    %380 = arith.addf %377, %379 : vector<14x16xf32>
    %c2_321 = arith.constant 2 : index
    %c0_322 = arith.constant 0 : index
    %c0_323 = arith.constant 0 : index
    %381 = vector.load %arg9[%c2_321, %c0_322, %c0_323] : memref<4x16x16xf32, #tpu.memory_space<vmem>>, vector<1x14x16xf32>
    %382 = vector.shape_cast %381 : vector<1x14x16xf32> to vector<14x16xf32>
    %383 = vector.shape_cast %380 : vector<14x16xf32> to vector<1x14x16xf32>
    tpu.vector_store %arg9[%c2_321, %c0_322, %c0_323], %383 {strides = array<i32>} : memref<4x16x16xf32, #tpu.memory_space<vmem>>, vector<1x14x16xf32>,
    %c6_i32_324 = arith.constant 6 : i32
    %384 = arith.addi %278, %c6_i32_324 : i32
    %c1_i32_325 = arith.constant 1 : i32
    %385 = arith.addi %384, %c1_i32_325 : i32
    %386 = arith.index_cast %385 : i32 to index
    %387 = memref.load %arg2[%386] : memref<36xi32, #tpu.memory_space<smem>>
    %388 = arith.sitofp %387 : i32 to f32
    %c0_326 = arith.constant 0 : index
    %c2_327 = arith.constant 2 : index
    %c1_328 = arith.constant 1 : index
    %c4_329 = arith.constant 4 : index
    %c1_330 = arith.constant 1 : index
    %389 = vector.load %arg5[%c0_326, %c2_327, %c1_328, %c4_329, %c1_330] : memref<1x4x3x18x18xf32, #tpu.memory_space<vmem>>, vector<1x1x1x14x16xf32>
    %390 = vector.shape_cast %389 : vector<1x1x1x14x16xf32> to vector<14x16xf32>
    %c2_331 = arith.constant 2 : index
    %c0_332 = arith.constant 0 : index
    %c0_333 = arith.constant 0 : index
    %391 = vector.load %arg9[%c2_331, %c0_332, %c0_333] : memref<4x16x16xf32, #tpu.memory_space<vmem>>, vector<1x14x16xf32>
    %392 = vector.shape_cast %391 : vector<1x14x16xf32> to vector<14x16xf32>
    %393 = vector.broadcast %388 : f32 to vector<14x16xf32>
    %394 = arith.mulf %393, %390 : vector<14x16xf32>
    %395 = arith.addf %392, %394 : vector<14x16xf32>
    %c2_334 = arith.constant 2 : index
    %c0_335 = arith.constant 0 : index
    %c0_336 = arith.constant 0 : index
    %396 = vector.load %arg9[%c2_334, %c0_335, %c0_336] : memref<4x16x16xf32, #tpu.memory_space<vmem>>, vector<1x14x16xf32>
    %397 = vector.shape_cast %396 : vector<1x14x16xf32> to vector<14x16xf32>
    %398 = vector.shape_cast %395 : vector<14x16xf32> to vector<1x14x16xf32>
    tpu.vector_store %arg9[%c2_334, %c0_335, %c0_336], %398 {strides = array<i32>} : memref<4x16x16xf32, #tpu.memory_space<vmem>>, vector<1x14x16xf32>,
    %c6_i32_337 = arith.constant 6 : i32
    %399 = arith.addi %278, %c6_i32_337 : i32
    %c2_i32_338 = arith.constant 2 : i32
    %400 = arith.addi %399, %c2_i32_338 : i32
    %401 = arith.index_cast %400 : i32 to index
    %402 = memref.load %arg2[%401] : memref<36xi32, #tpu.memory_space<smem>>
    %403 = arith.sitofp %402 : i32 to f32
    %c0_339 = arith.constant 0 : index
    %c2_340 = arith.constant 2 : index
    %c2_341 = arith.constant 2 : index
    %c4_342 = arith.constant 4 : index
    %c1_343 = arith.constant 1 : index
    %404 = vector.load %arg5[%c0_339, %c2_340, %c2_341, %c4_342, %c1_343] : memref<1x4x3x18x18xf32, #tpu.memory_space<vmem>>, vector<1x1x1x14x16xf32>
    %405 = vector.shape_cast %404 : vector<1x1x1x14x16xf32> to vector<14x16xf32>
    %c2_344 = arith.constant 2 : index
    %c0_345 = arith.constant 0 : index
    %c0_346 = arith.constant 0 : index
    %406 = vector.load %arg9[%c2_344, %c0_345, %c0_346] : memref<4x16x16xf32, #tpu.memory_space<vmem>>, vector<1x14x16xf32>
    %407 = vector.shape_cast %406 : vector<1x14x16xf32> to vector<14x16xf32>
    %408 = vector.broadcast %403 : f32 to vector<14x16xf32>
    %409 = arith.mulf %408, %405 : vector<14x16xf32>
    %410 = arith.addf %407, %409 : vector<14x16xf32>
    %c2_347 = arith.constant 2 : index
    %c0_348 = arith.constant 0 : index
    %c0_349 = arith.constant 0 : index
    %411 = vector.load %arg9[%c2_347, %c0_348, %c0_349] : memref<4x16x16xf32, #tpu.memory_space<vmem>>, vector<1x14x16xf32>
    %412 = vector.shape_cast %411 : vector<1x14x16xf32> to vector<14x16xf32>
    %413 = vector.shape_cast %410 : vector<14x16xf32> to vector<1x14x16xf32>
    tpu.vector_store %arg9[%c2_347, %c0_348, %c0_349], %413 {strides = array<i32>} : memref<4x16x16xf32, #tpu.memory_space<vmem>>, vector<1x14x16xf32>,
    %c3_i32_350 = arith.constant 3 : i32
    %414 = arith.addi %0, %c3_i32_350 : i32
    %c9_i32_351 = arith.constant 9 : i32
    %415 = arith.muli %414, %c9_i32_351 : i32
    %c0_i32_352 = arith.constant 0 : i32
    %416 = arith.addi %415, %c0_i32_352 : i32
    %c0_i32_353 = arith.constant 0 : i32
    %417 = arith.addi %416, %c0_i32_353 : i32
    %418 = arith.index_cast %417 : i32 to index
    %419 = memref.load %arg2[%418] : memref<36xi32, #tpu.memory_space<smem>>
    %420 = arith.sitofp %419 : i32 to f32
    %c0_354 = arith.constant 0 : index
    %c3 = arith.constant 3 : index
    %c0_355 = arith.constant 0 : index
    %c0_356 = arith.constant 0 : index
    %c1_357 = arith.constant 1 : index
    %421 = vector.load %arg5[%c0_354, %c3, %c0_355, %c0_356, %c1_357] : memref<1x4x3x18x18xf32, #tpu.memory_space<vmem>>, vector<1x1x1x14x16xf32>
    %422 = vector.shape_cast %421 : vector<1x1x1x14x16xf32> to vector<14x16xf32>
    %c3_358 = arith.constant 3 : index
    %c2_359 = arith.constant 2 : index
    %c0_360 = arith.constant 0 : index
    %423 = vector.load %arg9[%c3_358, %c2_359, %c0_360] : memref<4x16x16xf32, #tpu.memory_space<vmem>>, vector<1x14x16xf32>
    %424 = vector.shape_cast %423 : vector<1x14x16xf32> to vector<14x16xf32>
    %425 = vector.broadcast %420 : f32 to vector<14x16xf32>
    %426 = arith.mulf %425, %422 : vector<14x16xf32>
    %427 = arith.addf %424, %426 : vector<14x16xf32>
    %c3_361 = arith.constant 3 : index
    %c2_362 = arith.constant 2 : index
    %c0_363 = arith.constant 0 : index
    %428 = vector.load %arg9[%c3_361, %c2_362, %c0_363] : memref<4x16x16xf32, #tpu.memory_space<vmem>>, vector<1x14x16xf32>
    %429 = vector.shape_cast %428 : vector<1x14x16xf32> to vector<14x16xf32>
    %430 = vector.shape_cast %427 : vector<14x16xf32> to vector<1x14x16xf32>
    tpu.vector_store %arg9[%c3_361, %c2_362, %c0_363], %430 {strides = array<i32>} : memref<4x16x16xf32, #tpu.memory_space<vmem>>, vector<1x14x16xf32>,
    %c0_i32_364 = arith.constant 0 : i32
    %431 = arith.addi %415, %c0_i32_364 : i32
    %c1_i32_365 = arith.constant 1 : i32
    %432 = arith.addi %431, %c1_i32_365 : i32
    %433 = arith.index_cast %432 : i32 to index
    %434 = memref.load %arg2[%433] : memref<36xi32, #tpu.memory_space<smem>>
    %435 = arith.sitofp %434 : i32 to f32
    %c0_366 = arith.constant 0 : index
    %c3_367 = arith.constant 3 : index
    %c1_368 = arith.constant 1 : index
    %c0_369 = arith.constant 0 : index
    %c1_370 = arith.constant 1 : index
    %436 = vector.load %arg5[%c0_366, %c3_367, %c1_368, %c0_369, %c1_370] : memref<1x4x3x18x18xf32, #tpu.memory_space<vmem>>, vector<1x1x1x14x16xf32>
    %437 = vector.shape_cast %436 : vector<1x1x1x14x16xf32> to vector<14x16xf32>
    %c3_371 = arith.constant 3 : index
    %c2_372 = arith.constant 2 : index
    %c0_373 = arith.constant 0 : index
    %438 = vector.load %arg9[%c3_371, %c2_372, %c0_373] : memref<4x16x16xf32, #tpu.memory_space<vmem>>, vector<1x14x16xf32>
    %439 = vector.shape_cast %438 : vector<1x14x16xf32> to vector<14x16xf32>
    %440 = vector.broadcast %435 : f32 to vector<14x16xf32>
    %441 = arith.mulf %440, %437 : vector<14x16xf32>
    %442 = arith.addf %439, %441 : vector<14x16xf32>
    %c3_374 = arith.constant 3 : index
    %c2_375 = arith.constant 2 : index
    %c0_376 = arith.constant 0 : index
    %443 = vector.load %arg9[%c3_374, %c2_375, %c0_376] : memref<4x16x16xf32, #tpu.memory_space<vmem>>, vector<1x14x16xf32>
    %444 = vector.shape_cast %443 : vector<1x14x16xf32> to vector<14x16xf32>
    %445 = vector.shape_cast %442 : vector<14x16xf32> to vector<1x14x16xf32>
    tpu.vector_store %arg9[%c3_374, %c2_375, %c0_376], %445 {strides = array<i32>} : memref<4x16x16xf32, #tpu.memory_space<vmem>>, vector<1x14x16xf32>,
    %c0_i32_377 = arith.constant 0 : i32
    %446 = arith.addi %415, %c0_i32_377 : i32
    %c2_i32_378 = arith.constant 2 : i32
    %447 = arith.addi %446, %c2_i32_378 : i32
    %448 = arith.index_cast %447 : i32 to index
    %449 = memref.load %arg2[%448] : memref<36xi32, #tpu.memory_space<smem>>
    %450 = arith.sitofp %449 : i32 to f32
    %c0_379 = arith.constant 0 : index
    %c3_380 = arith.constant 3 : index
    %c2_381 = arith.constant 2 : index
    %c0_382 = arith.constant 0 : index
    %c1_383 = arith.constant 1 : index
    %451 = vector.load %arg5[%c0_379, %c3_380, %c2_381, %c0_382, %c1_383] : memref<1x4x3x18x18xf32, #tpu.memory_space<vmem>>, vector<1x1x1x14x16xf32>
    %452 = vector.shape_cast %451 : vector<1x1x1x14x16xf32> to vector<14x16xf32>
    %c3_384 = arith.constant 3 : index
    %c2_385 = arith.constant 2 : index
    %c0_386 = arith.constant 0 : index
    %453 = vector.load %arg9[%c3_384, %c2_385, %c0_386] : memref<4x16x16xf32, #tpu.memory_space<vmem>>, vector<1x14x16xf32>
    %454 = vector.shape_cast %453 : vector<1x14x16xf32> to vector<14x16xf32>
    %455 = vector.broadcast %450 : f32 to vector<14x16xf32>
    %456 = arith.mulf %455, %452 : vector<14x16xf32>
    %457 = arith.addf %454, %456 : vector<14x16xf32>
    %c3_387 = arith.constant 3 : index
    %c2_388 = arith.constant 2 : index
    %c0_389 = arith.constant 0 : index
    %458 = vector.load %arg9[%c3_387, %c2_388, %c0_389] : memref<4x16x16xf32, #tpu.memory_space<vmem>>, vector<1x14x16xf32>
    %459 = vector.shape_cast %458 : vector<1x14x16xf32> to vector<14x16xf32>
    %460 = vector.shape_cast %457 : vector<14x16xf32> to vector<1x14x16xf32>
    tpu.vector_store %arg9[%c3_387, %c2_388, %c0_389], %460 {strides = array<i32>} : memref<4x16x16xf32, #tpu.memory_space<vmem>>, vector<1x14x16xf32>,
    %c3_i32_390 = arith.constant 3 : i32
    %461 = arith.addi %415, %c3_i32_390 : i32
    %c0_i32_391 = arith.constant 0 : i32
    %462 = arith.addi %461, %c0_i32_391 : i32
    %463 = arith.index_cast %462 : i32 to index
    %464 = memref.load %arg2[%463] : memref<36xi32, #tpu.memory_space<smem>>
    %465 = arith.sitofp %464 : i32 to f32
    %c0_392 = arith.constant 0 : index
    %c3_393 = arith.constant 3 : index
    %c0_394 = arith.constant 0 : index
    %c1_395 = arith.constant 1 : index
    %c1_396 = arith.constant 1 : index
    %466 = vector.load %arg5[%c0_392, %c3_393, %c0_394, %c1_395, %c1_396] : memref<1x4x3x18x18xf32, #tpu.memory_space<vmem>>, vector<1x1x1x16x16xf32>
    %467 = vector.shape_cast %466 : vector<1x1x1x16x16xf32> to vector<16x16xf32>
    %c3_397 = arith.constant 3 : index
    %c0_398 = arith.constant 0 : index
    %c0_399 = arith.constant 0 : index
    %468 = vector.load %arg9[%c3_397, %c0_398, %c0_399] : memref<4x16x16xf32, #tpu.memory_space<vmem>>, vector<1x16x16xf32>
    %469 = vector.shape_cast %468 : vector<1x16x16xf32> to vector<16x16xf32>
    %470 = vector.broadcast %465 : f32 to vector<16x16xf32>
    %471 = arith.mulf %470, %467 : vector<16x16xf32>
    %472 = arith.addf %469, %471 : vector<16x16xf32>
    %c3_400 = arith.constant 3 : index
    %c0_401 = arith.constant 0 : index
    %c0_402 = arith.constant 0 : index
    %473 = vector.load %arg9[%c3_400, %c0_401, %c0_402] : memref<4x16x16xf32, #tpu.memory_space<vmem>>, vector<1x16x16xf32>
    %474 = vector.shape_cast %473 : vector<1x16x16xf32> to vector<16x16xf32>
    %475 = vector.shape_cast %472 : vector<16x16xf32> to vector<1x16x16xf32>
    tpu.vector_store %arg9[%c3_400, %c0_401, %c0_402], %475 {strides = array<i32>} : memref<4x16x16xf32, #tpu.memory_space<vmem>>, vector<1x16x16xf32>,
    %c3_i32_403 = arith.constant 3 : i32
    %476 = arith.addi %415, %c3_i32_403 : i32
    %c1_i32_404 = arith.constant 1 : i32
    %477 = arith.addi %476, %c1_i32_404 : i32
    %478 = arith.index_cast %477 : i32 to index
    %479 = memref.load %arg2[%478] : memref<36xi32, #tpu.memory_space<smem>>
    %480 = arith.sitofp %479 : i32 to f32
    %c0_405 = arith.constant 0 : index
    %c3_406 = arith.constant 3 : index
    %c1_407 = arith.constant 1 : index
    %c1_408 = arith.constant 1 : index
    %c1_409 = arith.constant 1 : index
    %481 = vector.load %arg5[%c0_405, %c3_406, %c1_407, %c1_408, %c1_409] : memref<1x4x3x18x18xf32, #tpu.memory_space<vmem>>, vector<1x1x1x16x16xf32>
    %482 = vector.shape_cast %481 : vector<1x1x1x16x16xf32> to vector<16x16xf32>
    %c3_410 = arith.constant 3 : index
    %c0_411 = arith.constant 0 : index
    %c0_412 = arith.constant 0 : index
    %483 = vector.load %arg9[%c3_410, %c0_411, %c0_412] : memref<4x16x16xf32, #tpu.memory_space<vmem>>, vector<1x16x16xf32>
    %484 = vector.shape_cast %483 : vector<1x16x16xf32> to vector<16x16xf32>
    %485 = vector.broadcast %480 : f32 to vector<16x16xf32>
    %486 = arith.mulf %485, %482 : vector<16x16xf32>
    %487 = arith.addf %484, %486 : vector<16x16xf32>
    %c3_413 = arith.constant 3 : index
    %c0_414 = arith.constant 0 : index
    %c0_415 = arith.constant 0 : index
    %488 = vector.load %arg9[%c3_413, %c0_414, %c0_415] : memref<4x16x16xf32, #tpu.memory_space<vmem>>, vector<1x16x16xf32>
    %489 = vector.shape_cast %488 : vector<1x16x16xf32> to vector<16x16xf32>
    %490 = vector.shape_cast %487 : vector<16x16xf32> to vector<1x16x16xf32>
    tpu.vector_store %arg9[%c3_413, %c0_414, %c0_415], %490 {strides = array<i32>} : memref<4x16x16xf32, #tpu.memory_space<vmem>>, vector<1x16x16xf32>,
    %c3_i32_416 = arith.constant 3 : i32
    %491 = arith.addi %415, %c3_i32_416 : i32
    %c2_i32_417 = arith.constant 2 : i32
    %492 = arith.addi %491, %c2_i32_417 : i32
    %493 = arith.index_cast %492 : i32 to index
    %494 = memref.load %arg2[%493] : memref<36xi32, #tpu.memory_space<smem>>
    %495 = arith.sitofp %494 : i32 to f32
    %c0_418 = arith.constant 0 : index
    %c3_419 = arith.constant 3 : index
    %c2_420 = arith.constant 2 : index
    %c1_421 = arith.constant 1 : index
    %c1_422 = arith.constant 1 : index
    %496 = vector.load %arg5[%c0_418, %c3_419, %c2_420, %c1_421, %c1_422] : memref<1x4x3x18x18xf32, #tpu.memory_space<vmem>>, vector<1x1x1x16x16xf32>
    %497 = vector.shape_cast %496 : vector<1x1x1x16x16xf32> to vector<16x16xf32>
    %c3_423 = arith.constant 3 : index
    %c0_424 = arith.constant 0 : index
    %c0_425 = arith.constant 0 : index
    %498 = vector.load %arg9[%c3_423, %c0_424, %c0_425] : memref<4x16x16xf32, #tpu.memory_space<vmem>>, vector<1x16x16xf32>
    %499 = vector.shape_cast %498 : vector<1x16x16xf32> to vector<16x16xf32>
    %500 = vector.broadcast %495 : f32 to vector<16x16xf32>
    %501 = arith.mulf %500, %497 : vector<16x16xf32>
    %502 = arith.addf %499, %501 : vector<16x16xf32>
    %c3_426 = arith.constant 3 : index
    %c0_427 = arith.constant 0 : index
    %c0_428 = arith.constant 0 : index
    %503 = vector.load %arg9[%c3_426, %c0_427, %c0_428] : memref<4x16x16xf32, #tpu.memory_space<vmem>>, vector<1x16x16xf32>
    %504 = vector.shape_cast %503 : vector<1x16x16xf32> to vector<16x16xf32>
    %505 = vector.shape_cast %502 : vector<16x16xf32> to vector<1x16x16xf32>
    tpu.vector_store %arg9[%c3_426, %c0_427, %c0_428], %505 {strides = array<i32>} : memref<4x16x16xf32, #tpu.memory_space<vmem>>, vector<1x16x16xf32>,
    %c6_i32_429 = arith.constant 6 : i32
    %506 = arith.addi %415, %c6_i32_429 : i32
    %c0_i32_430 = arith.constant 0 : i32
    %507 = arith.addi %506, %c0_i32_430 : i32
    %508 = arith.index_cast %507 : i32 to index
    %509 = memref.load %arg2[%508] : memref<36xi32, #tpu.memory_space<smem>>
    %510 = arith.sitofp %509 : i32 to f32
    %c0_431 = arith.constant 0 : index
    %c3_432 = arith.constant 3 : index
    %c0_433 = arith.constant 0 : index
    %c4_434 = arith.constant 4 : index
    %c1_435 = arith.constant 1 : index
    %511 = vector.load %arg5[%c0_431, %c3_432, %c0_433, %c4_434, %c1_435] : memref<1x4x3x18x18xf32, #tpu.memory_space<vmem>>, vector<1x1x1x14x16xf32>
    %512 = vector.shape_cast %511 : vector<1x1x1x14x16xf32> to vector<14x16xf32>
    %c3_436 = arith.constant 3 : index
    %c0_437 = arith.constant 0 : index
    %c0_438 = arith.constant 0 : index
    %513 = vector.load %arg9[%c3_436, %c0_437, %c0_438] : memref<4x16x16xf32, #tpu.memory_space<vmem>>, vector<1x14x16xf32>
    %514 = vector.shape_cast %513 : vector<1x14x16xf32> to vector<14x16xf32>
    %515 = vector.broadcast %510 : f32 to vector<14x16xf32>
    %516 = arith.mulf %515, %512 : vector<14x16xf32>
    %517 = arith.addf %514, %516 : vector<14x16xf32>
    %c3_439 = arith.constant 3 : index
    %c0_440 = arith.constant 0 : index
    %c0_441 = arith.constant 0 : index
    %518 = vector.load %arg9[%c3_439, %c0_440, %c0_441] : memref<4x16x16xf32, #tpu.memory_space<vmem>>, vector<1x14x16xf32>
    %519 = vector.shape_cast %518 : vector<1x14x16xf32> to vector<14x16xf32>
    %520 = vector.shape_cast %517 : vector<14x16xf32> to vector<1x14x16xf32>
    tpu.vector_store %arg9[%c3_439, %c0_440, %c0_441], %520 {strides = array<i32>} : memref<4x16x16xf32, #tpu.memory_space<vmem>>, vector<1x14x16xf32>,
    %c6_i32_442 = arith.constant 6 : i32
    %521 = arith.addi %415, %c6_i32_442 : i32
    %c1_i32_443 = arith.constant 1 : i32
    %522 = arith.addi %521, %c1_i32_443 : i32
    %523 = arith.index_cast %522 : i32 to index
    %524 = memref.load %arg2[%523] : memref<36xi32, #tpu.memory_space<smem>>
    %525 = arith.sitofp %524 : i32 to f32
    %c0_444 = arith.constant 0 : index
    %c3_445 = arith.constant 3 : index
    %c1_446 = arith.constant 1 : index
    %c4_447 = arith.constant 4 : index
    %c1_448 = arith.constant 1 : index
    %526 = vector.load %arg5[%c0_444, %c3_445, %c1_446, %c4_447, %c1_448] : memref<1x4x3x18x18xf32, #tpu.memory_space<vmem>>, vector<1x1x1x14x16xf32>
    %527 = vector.shape_cast %526 : vector<1x1x1x14x16xf32> to vector<14x16xf32>
    %c3_449 = arith.constant 3 : index
    %c0_450 = arith.constant 0 : index
    %c0_451 = arith.constant 0 : index
    %528 = vector.load %arg9[%c3_449, %c0_450, %c0_451] : memref<4x16x16xf32, #tpu.memory_space<vmem>>, vector<1x14x16xf32>
    %529 = vector.shape_cast %528 : vector<1x14x16xf32> to vector<14x16xf32>
    %530 = vector.broadcast %525 : f32 to vector<14x16xf32>
    %531 = arith.mulf %530, %527 : vector<14x16xf32>
    %532 = arith.addf %529, %531 : vector<14x16xf32>
    %c3_452 = arith.constant 3 : index
    %c0_453 = arith.constant 0 : index
    %c0_454 = arith.constant 0 : index
    %533 = vector.load %arg9[%c3_452, %c0_453, %c0_454] : memref<4x16x16xf32, #tpu.memory_space<vmem>>, vector<1x14x16xf32>
    %534 = vector.shape_cast %533 : vector<1x14x16xf32> to vector<14x16xf32>
    %535 = vector.shape_cast %532 : vector<14x16xf32> to vector<1x14x16xf32>
    tpu.vector_store %arg9[%c3_452, %c0_453, %c0_454], %535 {strides = array<i32>} : memref<4x16x16xf32, #tpu.memory_space<vmem>>, vector<1x14x16xf32>,
    %c6_i32_455 = arith.constant 6 : i32
    %536 = arith.addi %415, %c6_i32_455 : i32
    %c2_i32_456 = arith.constant 2 : i32
    %537 = arith.addi %536, %c2_i32_456 : i32
    %538 = arith.index_cast %537 : i32 to index
    %539 = memref.load %arg2[%538] : memref<36xi32, #tpu.memory_space<smem>>
    %540 = arith.sitofp %539 : i32 to f32
    %c0_457 = arith.constant 0 : index
    %c3_458 = arith.constant 3 : index
    %c2_459 = arith.constant 2 : index
    %c4_460 = arith.constant 4 : index
    %c1_461 = arith.constant 1 : index
    %541 = vector.load %arg5[%c0_457, %c3_458, %c2_459, %c4_460, %c1_461] : memref<1x4x3x18x18xf32, #tpu.memory_space<vmem>>, vector<1x1x1x14x16xf32>
    %542 = vector.shape_cast %541 : vector<1x1x1x14x16xf32> to vector<14x16xf32>
    %c3_462 = arith.constant 3 : index
    %c0_463 = arith.constant 0 : index
    %c0_464 = arith.constant 0 : index
    %543 = vector.load %arg9[%c3_462, %c0_463, %c0_464] : memref<4x16x16xf32, #tpu.memory_space<vmem>>, vector<1x14x16xf32>
    %544 = vector.shape_cast %543 : vector<1x14x16xf32> to vector<14x16xf32>
    %545 = vector.broadcast %540 : f32 to vector<14x16xf32>
    %546 = arith.mulf %545, %542 : vector<14x16xf32>
    %547 = arith.addf %544, %546 : vector<14x16xf32>
    %c3_465 = arith.constant 3 : index
    %c0_466 = arith.constant 0 : index
    %c0_467 = arith.constant 0 : index
    %548 = vector.load %arg9[%c3_465, %c0_466, %c0_467] : memref<4x16x16xf32, #tpu.memory_space<vmem>>, vector<1x14x16xf32>
    %549 = vector.shape_cast %548 : vector<1x14x16xf32> to vector<14x16xf32>
    %550 = vector.shape_cast %547 : vector<14x16xf32> to vector<1x14x16xf32>
    tpu.vector_store %arg9[%c3_465, %c0_466, %c0_467], %550 {strides = array<i32>} : memref<4x16x16xf32, #tpu.memory_space<vmem>>, vector<1x14x16xf32>,
    %c0_468 = arith.constant 0 : index
    %c0_469 = arith.constant 0 : index
    %c0_470 = arith.constant 0 : index
    %551 = vector.load %arg9[%c0_468, %c0_469, %c0_470] : memref<4x16x16xf32, #tpu.memory_space<vmem>>, vector<4x16x16xf32>
    %c0_471 = arith.constant 0 : index
    %c0_472 = arith.constant 0 : index
    %c0_473 = arith.constant 0 : index
    %c0_474 = arith.constant 0 : index
    %552 = vector.load %arg6[%c0_471, %c0_472, %c0_473, %c0_474] : memref<1x4x16x16xf32, #tpu.memory_space<vmem>>, vector<1x4x16x16xf32>
    %553 = vector.shape_cast %552 : vector<1x4x16x16xf32> to vector<4x16x16xf32>
    %554 = vector.shape_cast %551 : vector<4x16x16xf32> to vector<1x4x16x16xf32>
    tpu.vector_store %arg6[%c0_471, %c0_472, %c0_473, %c0_474], %554 {strides = array<i32>} : memref<1x4x16x16xf32, #tpu.memory_space<vmem>>, vector<1x4x16x16xf32>,
    %cst_475 = arith.constant 0.000000e+00 : f32
    %555 = vector.broadcast %cst_475 : f32 to vector<4x16x16xf32>
    %c0_476 = arith.constant 0 : index
    %c0_477 = arith.constant 0 : index
    %c0_478 = arith.constant 0 : index
    %556 = vector.load %arg9[%c0_476, %c0_477, %c0_478] : memref<4x16x16xf32, #tpu.memory_space<vmem>>, vector<4x16x16xf32>
    tpu.vector_store %arg9[%c0_476, %c0_477, %c0_478], %555 {strides = array<i32>} : memref<4x16x16xf32, #tpu.memory_space<vmem>>, vector<4x16x16xf32>,
    %c0_i32_479 = arith.constant 0 : i32
    %557 = arith.addi %0, %c0_i32_479 : i32
    %c9_i32_480 = arith.constant 9 : i32
    %558 = arith.muli %557, %c9_i32_480 : i32
    %c0_i32_481 = arith.constant 0 : i32
    %559 = arith.addi %558, %c0_i32_481 : i32
    %c0_i32_482 = arith.constant 0 : i32
    %560 = arith.addi %559, %c0_i32_482 : i32
    %561 = arith.index_cast %560 : i32 to index
    %562 = memref.load %arg3[%561] : memref<36xi32, #tpu.memory_space<smem>>
    %563 = arith.sitofp %562 : i32 to f32
    %c0_483 = arith.constant 0 : index
    %c0_484 = arith.constant 0 : index
    %c0_485 = arith.constant 0 : index
    %c1_486 = arith.constant 1 : index
    %c0_487 = arith.constant 0 : index
    %564 = vector.load %arg5[%c0_483, %c0_484, %c0_485, %c1_486, %c0_487] : memref<1x4x3x18x18xf32, #tpu.memory_space<vmem>>, vector<1x1x1x16x14xf32>
    %565 = vector.shape_cast %564 : vector<1x1x1x16x14xf32> to vector<16x14xf32>
    %c0_488 = arith.constant 0 : index
    %c0_489 = arith.constant 0 : index
    %c2_490 = arith.constant 2 : index
    %566 = vector.load %arg9[%c0_488, %c0_489, %c2_490] : memref<4x16x16xf32, #tpu.memory_space<vmem>>, vector<1x16x14xf32>
    %567 = vector.shape_cast %566 : vector<1x16x14xf32> to vector<16x14xf32>
    %568 = vector.broadcast %563 : f32 to vector<16x14xf32>
    %569 = arith.mulf %568, %565 : vector<16x14xf32>
    %570 = arith.addf %567, %569 : vector<16x14xf32>
    %c0_491 = arith.constant 0 : index
    %c0_492 = arith.constant 0 : index
    %c2_493 = arith.constant 2 : index
    %571 = vector.load %arg9[%c0_491, %c0_492, %c2_493] : memref<4x16x16xf32, #tpu.memory_space<vmem>>, vector<1x16x14xf32>
    %572 = vector.shape_cast %571 : vector<1x16x14xf32> to vector<16x14xf32>
    %573 = vector.shape_cast %570 : vector<16x14xf32> to vector<1x16x14xf32>
    tpu.vector_store %arg9[%c0_491, %c0_492, %c2_493], %573 {strides = array<i32>} : memref<4x16x16xf32, #tpu.memory_space<vmem>>, vector<1x16x14xf32>,
    %c0_i32_494 = arith.constant 0 : i32
    %574 = arith.addi %558, %c0_i32_494 : i32
    %c1_i32_495 = arith.constant 1 : i32
    %575 = arith.addi %574, %c1_i32_495 : i32
    %576 = arith.index_cast %575 : i32 to index
    %577 = memref.load %arg3[%576] : memref<36xi32, #tpu.memory_space<smem>>
    %578 = arith.sitofp %577 : i32 to f32
    %c0_496 = arith.constant 0 : index
    %c0_497 = arith.constant 0 : index
    %c1_498 = arith.constant 1 : index
    %c1_499 = arith.constant 1 : index
    %c0_500 = arith.constant 0 : index
    %579 = vector.load %arg5[%c0_496, %c0_497, %c1_498, %c1_499, %c0_500] : memref<1x4x3x18x18xf32, #tpu.memory_space<vmem>>, vector<1x1x1x16x14xf32>
    %580 = vector.shape_cast %579 : vector<1x1x1x16x14xf32> to vector<16x14xf32>
    %c0_501 = arith.constant 0 : index
    %c0_502 = arith.constant 0 : index
    %c2_503 = arith.constant 2 : index
    %581 = vector.load %arg9[%c0_501, %c0_502, %c2_503] : memref<4x16x16xf32, #tpu.memory_space<vmem>>, vector<1x16x14xf32>
    %582 = vector.shape_cast %581 : vector<1x16x14xf32> to vector<16x14xf32>
    %583 = vector.broadcast %578 : f32 to vector<16x14xf32>
    %584 = arith.mulf %583, %580 : vector<16x14xf32>
    %585 = arith.addf %582, %584 : vector<16x14xf32>
    %c0_504 = arith.constant 0 : index
    %c0_505 = arith.constant 0 : index
    %c2_506 = arith.constant 2 : index
    %586 = vector.load %arg9[%c0_504, %c0_505, %c2_506] : memref<4x16x16xf32, #tpu.memory_space<vmem>>, vector<1x16x14xf32>
    %587 = vector.shape_cast %586 : vector<1x16x14xf32> to vector<16x14xf32>
    %588 = vector.shape_cast %585 : vector<16x14xf32> to vector<1x16x14xf32>
    tpu.vector_store %arg9[%c0_504, %c0_505, %c2_506], %588 {strides = array<i32>} : memref<4x16x16xf32, #tpu.memory_space<vmem>>, vector<1x16x14xf32>,
    %c0_i32_507 = arith.constant 0 : i32
    %589 = arith.addi %558, %c0_i32_507 : i32
    %c2_i32_508 = arith.constant 2 : i32
    %590 = arith.addi %589, %c2_i32_508 : i32
    %591 = arith.index_cast %590 : i32 to index
    %592 = memref.load %arg3[%591] : memref<36xi32, #tpu.memory_space<smem>>
    %593 = arith.sitofp %592 : i32 to f32
    %c0_509 = arith.constant 0 : index
    %c0_510 = arith.constant 0 : index
    %c2_511 = arith.constant 2 : index
    %c1_512 = arith.constant 1 : index
    %c0_513 = arith.constant 0 : index
    %594 = vector.load %arg5[%c0_509, %c0_510, %c2_511, %c1_512, %c0_513] : memref<1x4x3x18x18xf32, #tpu.memory_space<vmem>>, vector<1x1x1x16x14xf32>
    %595 = vector.shape_cast %594 : vector<1x1x1x16x14xf32> to vector<16x14xf32>
    %c0_514 = arith.constant 0 : index
    %c0_515 = arith.constant 0 : index
    %c2_516 = arith.constant 2 : index
    %596 = vector.load %arg9[%c0_514, %c0_515, %c2_516] : memref<4x16x16xf32, #tpu.memory_space<vmem>>, vector<1x16x14xf32>
    %597 = vector.shape_cast %596 : vector<1x16x14xf32> to vector<16x14xf32>
    %598 = vector.broadcast %593 : f32 to vector<16x14xf32>
    %599 = arith.mulf %598, %595 : vector<16x14xf32>
    %600 = arith.addf %597, %599 : vector<16x14xf32>
    %c0_517 = arith.constant 0 : index
    %c0_518 = arith.constant 0 : index
    %c2_519 = arith.constant 2 : index
    %601 = vector.load %arg9[%c0_517, %c0_518, %c2_519] : memref<4x16x16xf32, #tpu.memory_space<vmem>>, vector<1x16x14xf32>
    %602 = vector.shape_cast %601 : vector<1x16x14xf32> to vector<16x14xf32>
    %603 = vector.shape_cast %600 : vector<16x14xf32> to vector<1x16x14xf32>
    tpu.vector_store %arg9[%c0_517, %c0_518, %c2_519], %603 {strides = array<i32>} : memref<4x16x16xf32, #tpu.memory_space<vmem>>, vector<1x16x14xf32>,
    %c3_i32_520 = arith.constant 3 : i32
    %604 = arith.addi %558, %c3_i32_520 : i32
    %c0_i32_521 = arith.constant 0 : i32
    %605 = arith.addi %604, %c0_i32_521 : i32
    %606 = arith.index_cast %605 : i32 to index
    %607 = memref.load %arg3[%606] : memref<36xi32, #tpu.memory_space<smem>>
    %608 = arith.sitofp %607 : i32 to f32
    %c0_522 = arith.constant 0 : index
    %c0_523 = arith.constant 0 : index
    %c0_524 = arith.constant 0 : index
    %c1_525 = arith.constant 1 : index
    %c1_526 = arith.constant 1 : index
    %609 = vector.load %arg5[%c0_522, %c0_523, %c0_524, %c1_525, %c1_526] : memref<1x4x3x18x18xf32, #tpu.memory_space<vmem>>, vector<1x1x1x16x16xf32>
    %610 = vector.shape_cast %609 : vector<1x1x1x16x16xf32> to vector<16x16xf32>
    %c0_527 = arith.constant 0 : index
    %c0_528 = arith.constant 0 : index
    %c0_529 = arith.constant 0 : index
    %611 = vector.load %arg9[%c0_527, %c0_528, %c0_529] : memref<4x16x16xf32, #tpu.memory_space<vmem>>, vector<1x16x16xf32>
    %612 = vector.shape_cast %611 : vector<1x16x16xf32> to vector<16x16xf32>
    %613 = vector.broadcast %608 : f32 to vector<16x16xf32>
    %614 = arith.mulf %613, %610 : vector<16x16xf32>
    %615 = arith.addf %612, %614 : vector<16x16xf32>
    %c0_530 = arith.constant 0 : index
    %c0_531 = arith.constant 0 : index
    %c0_532 = arith.constant 0 : index
    %616 = vector.load %arg9[%c0_530, %c0_531, %c0_532] : memref<4x16x16xf32, #tpu.memory_space<vmem>>, vector<1x16x16xf32>
    %617 = vector.shape_cast %616 : vector<1x16x16xf32> to vector<16x16xf32>
    %618 = vector.shape_cast %615 : vector<16x16xf32> to vector<1x16x16xf32>
    tpu.vector_store %arg9[%c0_530, %c0_531, %c0_532], %618 {strides = array<i32>} : memref<4x16x16xf32, #tpu.memory_space<vmem>>, vector<1x16x16xf32>,
    %c3_i32_533 = arith.constant 3 : i32
    %619 = arith.addi %558, %c3_i32_533 : i32
    %c1_i32_534 = arith.constant 1 : i32
    %620 = arith.addi %619, %c1_i32_534 : i32
    %621 = arith.index_cast %620 : i32 to index
    %622 = memref.load %arg3[%621] : memref<36xi32, #tpu.memory_space<smem>>
    %623 = arith.sitofp %622 : i32 to f32
    %c0_535 = arith.constant 0 : index
    %c0_536 = arith.constant 0 : index
    %c1_537 = arith.constant 1 : index
    %c1_538 = arith.constant 1 : index
    %c1_539 = arith.constant 1 : index
    %624 = vector.load %arg5[%c0_535, %c0_536, %c1_537, %c1_538, %c1_539] : memref<1x4x3x18x18xf32, #tpu.memory_space<vmem>>, vector<1x1x1x16x16xf32>
    %625 = vector.shape_cast %624 : vector<1x1x1x16x16xf32> to vector<16x16xf32>
    %c0_540 = arith.constant 0 : index
    %c0_541 = arith.constant 0 : index
    %c0_542 = arith.constant 0 : index
    %626 = vector.load %arg9[%c0_540, %c0_541, %c0_542] : memref<4x16x16xf32, #tpu.memory_space<vmem>>, vector<1x16x16xf32>
    %627 = vector.shape_cast %626 : vector<1x16x16xf32> to vector<16x16xf32>
    %628 = vector.broadcast %623 : f32 to vector<16x16xf32>
    %629 = arith.mulf %628, %625 : vector<16x16xf32>
    %630 = arith.addf %627, %629 : vector<16x16xf32>
    %c0_543 = arith.constant 0 : index
    %c0_544 = arith.constant 0 : index
    %c0_545 = arith.constant 0 : index
    %631 = vector.load %arg9[%c0_543, %c0_544, %c0_545] : memref<4x16x16xf32, #tpu.memory_space<vmem>>, vector<1x16x16xf32>
    %632 = vector.shape_cast %631 : vector<1x16x16xf32> to vector<16x16xf32>
    %633 = vector.shape_cast %630 : vector<16x16xf32> to vector<1x16x16xf32>
    tpu.vector_store %arg9[%c0_543, %c0_544, %c0_545], %633 {strides = array<i32>} : memref<4x16x16xf32, #tpu.memory_space<vmem>>, vector<1x16x16xf32>,
    %c3_i32_546 = arith.constant 3 : i32
    %634 = arith.addi %558, %c3_i32_546 : i32
    %c2_i32_547 = arith.constant 2 : i32
    %635 = arith.addi %634, %c2_i32_547 : i32
    %636 = arith.index_cast %635 : i32 to index
    %637 = memref.load %arg3[%636] : memref<36xi32, #tpu.memory_space<smem>>
    %638 = arith.sitofp %637 : i32 to f32
    %c0_548 = arith.constant 0 : index
    %c0_549 = arith.constant 0 : index
    %c2_550 = arith.constant 2 : index
    %c1_551 = arith.constant 1 : index
    %c1_552 = arith.constant 1 : index
    %639 = vector.load %arg5[%c0_548, %c0_549, %c2_550, %c1_551, %c1_552] : memref<1x4x3x18x18xf32, #tpu.memory_space<vmem>>, vector<1x1x1x16x16xf32>
    %640 = vector.shape_cast %639 : vector<1x1x1x16x16xf32> to vector<16x16xf32>
    %c0_553 = arith.constant 0 : index
    %c0_554 = arith.constant 0 : index
    %c0_555 = arith.constant 0 : index
    %641 = vector.load %arg9[%c0_553, %c0_554, %c0_555] : memref<4x16x16xf32, #tpu.memory_space<vmem>>, vector<1x16x16xf32>
    %642 = vector.shape_cast %641 : vector<1x16x16xf32> to vector<16x16xf32>
    %643 = vector.broadcast %638 : f32 to vector<16x16xf32>
    %644 = arith.mulf %643, %640 : vector<16x16xf32>
    %645 = arith.addf %642, %644 : vector<16x16xf32>
    %c0_556 = arith.constant 0 : index
    %c0_557 = arith.constant 0 : index
    %c0_558 = arith.constant 0 : index
    %646 = vector.load %arg9[%c0_556, %c0_557, %c0_558] : memref<4x16x16xf32, #tpu.memory_space<vmem>>, vector<1x16x16xf32>
    %647 = vector.shape_cast %646 : vector<1x16x16xf32> to vector<16x16xf32>
    %648 = vector.shape_cast %645 : vector<16x16xf32> to vector<1x16x16xf32>
    tpu.vector_store %arg9[%c0_556, %c0_557, %c0_558], %648 {strides = array<i32>} : memref<4x16x16xf32, #tpu.memory_space<vmem>>, vector<1x16x16xf32>,
    %c6_i32_559 = arith.constant 6 : i32
    %649 = arith.addi %558, %c6_i32_559 : i32
    %c0_i32_560 = arith.constant 0 : i32
    %650 = arith.addi %649, %c0_i32_560 : i32
    %651 = arith.index_cast %650 : i32 to index
    %652 = memref.load %arg3[%651] : memref<36xi32, #tpu.memory_space<smem>>
    %653 = arith.sitofp %652 : i32 to f32
    %c0_561 = arith.constant 0 : index
    %c0_562 = arith.constant 0 : index
    %c0_563 = arith.constant 0 : index
    %c1_564 = arith.constant 1 : index
    %c4_565 = arith.constant 4 : index
    %654 = vector.load %arg5[%c0_561, %c0_562, %c0_563, %c1_564, %c4_565] : memref<1x4x3x18x18xf32, #tpu.memory_space<vmem>>, vector<1x1x1x16x14xf32>
    %655 = vector.shape_cast %654 : vector<1x1x1x16x14xf32> to vector<16x14xf32>
    %c0_566 = arith.constant 0 : index
    %c0_567 = arith.constant 0 : index
    %c0_568 = arith.constant 0 : index
    %656 = vector.load %arg9[%c0_566, %c0_567, %c0_568] : memref<4x16x16xf32, #tpu.memory_space<vmem>>, vector<1x16x14xf32>
    %657 = vector.shape_cast %656 : vector<1x16x14xf32> to vector<16x14xf32>
    %658 = vector.broadcast %653 : f32 to vector<16x14xf32>
    %659 = arith.mulf %658, %655 : vector<16x14xf32>
    %660 = arith.addf %657, %659 : vector<16x14xf32>
    %c0_569 = arith.constant 0 : index
    %c0_570 = arith.constant 0 : index
    %c0_571 = arith.constant 0 : index
    %661 = vector.load %arg9[%c0_569, %c0_570, %c0_571] : memref<4x16x16xf32, #tpu.memory_space<vmem>>, vector<1x16x14xf32>
    %662 = vector.shape_cast %661 : vector<1x16x14xf32> to vector<16x14xf32>
    %663 = vector.shape_cast %660 : vector<16x14xf32> to vector<1x16x14xf32>
    tpu.vector_store %arg9[%c0_569, %c0_570, %c0_571], %663 {strides = array<i32>} : memref<4x16x16xf32, #tpu.memory_space<vmem>>, vector<1x16x14xf32>,
    %c6_i32_572 = arith.constant 6 : i32
    %664 = arith.addi %558, %c6_i32_572 : i32
    %c1_i32_573 = arith.constant 1 : i32
    %665 = arith.addi %664, %c1_i32_573 : i32
    %666 = arith.index_cast %665 : i32 to index
    %667 = memref.load %arg3[%666] : memref<36xi32, #tpu.memory_space<smem>>
    %668 = arith.sitofp %667 : i32 to f32
    %c0_574 = arith.constant 0 : index
    %c0_575 = arith.constant 0 : index
    %c1_576 = arith.constant 1 : index
    %c1_577 = arith.constant 1 : index
    %c4_578 = arith.constant 4 : index
    %669 = vector.load %arg5[%c0_574, %c0_575, %c1_576, %c1_577, %c4_578] : memref<1x4x3x18x18xf32, #tpu.memory_space<vmem>>, vector<1x1x1x16x14xf32>
    %670 = vector.shape_cast %669 : vector<1x1x1x16x14xf32> to vector<16x14xf32>
    %c0_579 = arith.constant 0 : index
    %c0_580 = arith.constant 0 : index
    %c0_581 = arith.constant 0 : index
    %671 = vector.load %arg9[%c0_579, %c0_580, %c0_581] : memref<4x16x16xf32, #tpu.memory_space<vmem>>, vector<1x16x14xf32>
    %672 = vector.shape_cast %671 : vector<1x16x14xf32> to vector<16x14xf32>
    %673 = vector.broadcast %668 : f32 to vector<16x14xf32>
    %674 = arith.mulf %673, %670 : vector<16x14xf32>
    %675 = arith.addf %672, %674 : vector<16x14xf32>
    %c0_582 = arith.constant 0 : index
    %c0_583 = arith.constant 0 : index
    %c0_584 = arith.constant 0 : index
    %676 = vector.load %arg9[%c0_582, %c0_583, %c0_584] : memref<4x16x16xf32, #tpu.memory_space<vmem>>, vector<1x16x14xf32>
    %677 = vector.shape_cast %676 : vector<1x16x14xf32> to vector<16x14xf32>
    %678 = vector.shape_cast %675 : vector<16x14xf32> to vector<1x16x14xf32>
    tpu.vector_store %arg9[%c0_582, %c0_583, %c0_584], %678 {strides = array<i32>} : memref<4x16x16xf32, #tpu.memory_space<vmem>>, vector<1x16x14xf32>,
    %c6_i32_585 = arith.constant 6 : i32
    %679 = arith.addi %558, %c6_i32_585 : i32
    %c2_i32_586 = arith.constant 2 : i32
    %680 = arith.addi %679, %c2_i32_586 : i32
    %681 = arith.index_cast %680 : i32 to index
    %682 = memref.load %arg3[%681] : memref<36xi32, #tpu.memory_space<smem>>
    %683 = arith.sitofp %682 : i32 to f32
    %c0_587 = arith.constant 0 : index
    %c0_588 = arith.constant 0 : index
    %c2_589 = arith.constant 2 : index
    %c1_590 = arith.constant 1 : index
    %c4_591 = arith.constant 4 : index
    %684 = vector.load %arg5[%c0_587, %c0_588, %c2_589, %c1_590, %c4_591] : memref<1x4x3x18x18xf32, #tpu.memory_space<vmem>>, vector<1x1x1x16x14xf32>
    %685 = vector.shape_cast %684 : vector<1x1x1x16x14xf32> to vector<16x14xf32>
    %c0_592 = arith.constant 0 : index
    %c0_593 = arith.constant 0 : index
    %c0_594 = arith.constant 0 : index
    %686 = vector.load %arg9[%c0_592, %c0_593, %c0_594] : memref<4x16x16xf32, #tpu.memory_space<vmem>>, vector<1x16x14xf32>
    %687 = vector.shape_cast %686 : vector<1x16x14xf32> to vector<16x14xf32>
    %688 = vector.broadcast %683 : f32 to vector<16x14xf32>
    %689 = arith.mulf %688, %685 : vector<16x14xf32>
    %690 = arith.addf %687, %689 : vector<16x14xf32>
    %c0_595 = arith.constant 0 : index
    %c0_596 = arith.constant 0 : index
    %c0_597 = arith.constant 0 : index
    %691 = vector.load %arg9[%c0_595, %c0_596, %c0_597] : memref<4x16x16xf32, #tpu.memory_space<vmem>>, vector<1x16x14xf32>
    %692 = vector.shape_cast %691 : vector<1x16x14xf32> to vector<16x14xf32>
    %693 = vector.shape_cast %690 : vector<16x14xf32> to vector<1x16x14xf32>
    tpu.vector_store %arg9[%c0_595, %c0_596, %c0_597], %693 {strides = array<i32>} : memref<4x16x16xf32, #tpu.memory_space<vmem>>, vector<1x16x14xf32>,
    %c1_i32_598 = arith.constant 1 : i32
    %694 = arith.addi %0, %c1_i32_598 : i32
    %c9_i32_599 = arith.constant 9 : i32
    %695 = arith.muli %694, %c9_i32_599 : i32
    %c0_i32_600 = arith.constant 0 : i32
    %696 = arith.addi %695, %c0_i32_600 : i32
    %c0_i32_601 = arith.constant 0 : i32
    %697 = arith.addi %696, %c0_i32_601 : i32
    %698 = arith.index_cast %697 : i32 to index
    %699 = memref.load %arg3[%698] : memref<36xi32, #tpu.memory_space<smem>>
    %700 = arith.sitofp %699 : i32 to f32
    %c0_602 = arith.constant 0 : index
    %c1_603 = arith.constant 1 : index
    %c0_604 = arith.constant 0 : index
    %c1_605 = arith.constant 1 : index
    %c0_606 = arith.constant 0 : index
    %701 = vector.load %arg5[%c0_602, %c1_603, %c0_604, %c1_605, %c0_606] : memref<1x4x3x18x18xf32, #tpu.memory_space<vmem>>, vector<1x1x1x16x14xf32>
    %702 = vector.shape_cast %701 : vector<1x1x1x16x14xf32> to vector<16x14xf32>
    %c1_607 = arith.constant 1 : index
    %c0_608 = arith.constant 0 : index
    %c2_609 = arith.constant 2 : index
    %703 = vector.load %arg9[%c1_607, %c0_608, %c2_609] : memref<4x16x16xf32, #tpu.memory_space<vmem>>, vector<1x16x14xf32>
    %704 = vector.shape_cast %703 : vector<1x16x14xf32> to vector<16x14xf32>
    %705 = vector.broadcast %700 : f32 to vector<16x14xf32>
    %706 = arith.mulf %705, %702 : vector<16x14xf32>
    %707 = arith.addf %704, %706 : vector<16x14xf32>
    %c1_610 = arith.constant 1 : index
    %c0_611 = arith.constant 0 : index
    %c2_612 = arith.constant 2 : index
    %708 = vector.load %arg9[%c1_610, %c0_611, %c2_612] : memref<4x16x16xf32, #tpu.memory_space<vmem>>, vector<1x16x14xf32>
    %709 = vector.shape_cast %708 : vector<1x16x14xf32> to vector<16x14xf32>
    %710 = vector.shape_cast %707 : vector<16x14xf32> to vector<1x16x14xf32>
    tpu.vector_store %arg9[%c1_610, %c0_611, %c2_612], %710 {strides = array<i32>} : memref<4x16x16xf32, #tpu.memory_space<vmem>>, vector<1x16x14xf32>,
    %c0_i32_613 = arith.constant 0 : i32
    %711 = arith.addi %695, %c0_i32_613 : i32
    %c1_i32_614 = arith.constant 1 : i32
    %712 = arith.addi %711, %c1_i32_614 : i32
    %713 = arith.index_cast %712 : i32 to index
    %714 = memref.load %arg3[%713] : memref<36xi32, #tpu.memory_space<smem>>
    %715 = arith.sitofp %714 : i32 to f32
    %c0_615 = arith.constant 0 : index
    %c1_616 = arith.constant 1 : index
    %c1_617 = arith.constant 1 : index
    %c1_618 = arith.constant 1 : index
    %c0_619 = arith.constant 0 : index
    %716 = vector.load %arg5[%c0_615, %c1_616, %c1_617, %c1_618, %c0_619] : memref<1x4x3x18x18xf32, #tpu.memory_space<vmem>>, vector<1x1x1x16x14xf32>
    %717 = vector.shape_cast %716 : vector<1x1x1x16x14xf32> to vector<16x14xf32>
    %c1_620 = arith.constant 1 : index
    %c0_621 = arith.constant 0 : index
    %c2_622 = arith.constant 2 : index
    %718 = vector.load %arg9[%c1_620, %c0_621, %c2_622] : memref<4x16x16xf32, #tpu.memory_space<vmem>>, vector<1x16x14xf32>
    %719 = vector.shape_cast %718 : vector<1x16x14xf32> to vector<16x14xf32>
    %720 = vector.broadcast %715 : f32 to vector<16x14xf32>
    %721 = arith.mulf %720, %717 : vector<16x14xf32>
    %722 = arith.addf %719, %721 : vector<16x14xf32>
    %c1_623 = arith.constant 1 : index
    %c0_624 = arith.constant 0 : index
    %c2_625 = arith.constant 2 : index
    %723 = vector.load %arg9[%c1_623, %c0_624, %c2_625] : memref<4x16x16xf32, #tpu.memory_space<vmem>>, vector<1x16x14xf32>
    %724 = vector.shape_cast %723 : vector<1x16x14xf32> to vector<16x14xf32>
    %725 = vector.shape_cast %722 : vector<16x14xf32> to vector<1x16x14xf32>
    tpu.vector_store %arg9[%c1_623, %c0_624, %c2_625], %725 {strides = array<i32>} : memref<4x16x16xf32, #tpu.memory_space<vmem>>, vector<1x16x14xf32>,
    %c0_i32_626 = arith.constant 0 : i32
    %726 = arith.addi %695, %c0_i32_626 : i32
    %c2_i32_627 = arith.constant 2 : i32
    %727 = arith.addi %726, %c2_i32_627 : i32
    %728 = arith.index_cast %727 : i32 to index
    %729 = memref.load %arg3[%728] : memref<36xi32, #tpu.memory_space<smem>>
    %730 = arith.sitofp %729 : i32 to f32
    %c0_628 = arith.constant 0 : index
    %c1_629 = arith.constant 1 : index
    %c2_630 = arith.constant 2 : index
    %c1_631 = arith.constant 1 : index
    %c0_632 = arith.constant 0 : index
    %731 = vector.load %arg5[%c0_628, %c1_629, %c2_630, %c1_631, %c0_632] : memref<1x4x3x18x18xf32, #tpu.memory_space<vmem>>, vector<1x1x1x16x14xf32>
    %732 = vector.shape_cast %731 : vector<1x1x1x16x14xf32> to vector<16x14xf32>
    %c1_633 = arith.constant 1 : index
    %c0_634 = arith.constant 0 : index
    %c2_635 = arith.constant 2 : index
    %733 = vector.load %arg9[%c1_633, %c0_634, %c2_635] : memref<4x16x16xf32, #tpu.memory_space<vmem>>, vector<1x16x14xf32>
    %734 = vector.shape_cast %733 : vector<1x16x14xf32> to vector<16x14xf32>
    %735 = vector.broadcast %730 : f32 to vector<16x14xf32>
    %736 = arith.mulf %735, %732 : vector<16x14xf32>
    %737 = arith.addf %734, %736 : vector<16x14xf32>
    %c1_636 = arith.constant 1 : index
    %c0_637 = arith.constant 0 : index
    %c2_638 = arith.constant 2 : index
    %738 = vector.load %arg9[%c1_636, %c0_637, %c2_638] : memref<4x16x16xf32, #tpu.memory_space<vmem>>, vector<1x16x14xf32>
    %739 = vector.shape_cast %738 : vector<1x16x14xf32> to vector<16x14xf32>
    %740 = vector.shape_cast %737 : vector<16x14xf32> to vector<1x16x14xf32>
    tpu.vector_store %arg9[%c1_636, %c0_637, %c2_638], %740 {strides = array<i32>} : memref<4x16x16xf32, #tpu.memory_space<vmem>>, vector<1x16x14xf32>,
    %c3_i32_639 = arith.constant 3 : i32
    %741 = arith.addi %695, %c3_i32_639 : i32
    %c0_i32_640 = arith.constant 0 : i32
    %742 = arith.addi %741, %c0_i32_640 : i32
    %743 = arith.index_cast %742 : i32 to index
    %744 = memref.load %arg3[%743] : memref<36xi32, #tpu.memory_space<smem>>
    %745 = arith.sitofp %744 : i32 to f32
    %c0_641 = arith.constant 0 : index
    %c1_642 = arith.constant 1 : index
    %c0_643 = arith.constant 0 : index
    %c1_644 = arith.constant 1 : index
    %c1_645 = arith.constant 1 : index
    %746 = vector.load %arg5[%c0_641, %c1_642, %c0_643, %c1_644, %c1_645] : memref<1x4x3x18x18xf32, #tpu.memory_space<vmem>>, vector<1x1x1x16x16xf32>
    %747 = vector.shape_cast %746 : vector<1x1x1x16x16xf32> to vector<16x16xf32>
    %c1_646 = arith.constant 1 : index
    %c0_647 = arith.constant 0 : index
    %c0_648 = arith.constant 0 : index
    %748 = vector.load %arg9[%c1_646, %c0_647, %c0_648] : memref<4x16x16xf32, #tpu.memory_space<vmem>>, vector<1x16x16xf32>
    %749 = vector.shape_cast %748 : vector<1x16x16xf32> to vector<16x16xf32>
    %750 = vector.broadcast %745 : f32 to vector<16x16xf32>
    %751 = arith.mulf %750, %747 : vector<16x16xf32>
    %752 = arith.addf %749, %751 : vector<16x16xf32>
    %c1_649 = arith.constant 1 : index
    %c0_650 = arith.constant 0 : index
    %c0_651 = arith.constant 0 : index
    %753 = vector.load %arg9[%c1_649, %c0_650, %c0_651] : memref<4x16x16xf32, #tpu.memory_space<vmem>>, vector<1x16x16xf32>
    %754 = vector.shape_cast %753 : vector<1x16x16xf32> to vector<16x16xf32>
    %755 = vector.shape_cast %752 : vector<16x16xf32> to vector<1x16x16xf32>
    tpu.vector_store %arg9[%c1_649, %c0_650, %c0_651], %755 {strides = array<i32>} : memref<4x16x16xf32, #tpu.memory_space<vmem>>, vector<1x16x16xf32>,
    %c3_i32_652 = arith.constant 3 : i32
    %756 = arith.addi %695, %c3_i32_652 : i32
    %c1_i32_653 = arith.constant 1 : i32
    %757 = arith.addi %756, %c1_i32_653 : i32
    %758 = arith.index_cast %757 : i32 to index
    %759 = memref.load %arg3[%758] : memref<36xi32, #tpu.memory_space<smem>>
    %760 = arith.sitofp %759 : i32 to f32
    %c0_654 = arith.constant 0 : index
    %c1_655 = arith.constant 1 : index
    %c1_656 = arith.constant 1 : index
    %c1_657 = arith.constant 1 : index
    %c1_658 = arith.constant 1 : index
    %761 = vector.load %arg5[%c0_654, %c1_655, %c1_656, %c1_657, %c1_658] : memref<1x4x3x18x18xf32, #tpu.memory_space<vmem>>, vector<1x1x1x16x16xf32>
    %762 = vector.shape_cast %761 : vector<1x1x1x16x16xf32> to vector<16x16xf32>
    %c1_659 = arith.constant 1 : index
    %c0_660 = arith.constant 0 : index
    %c0_661 = arith.constant 0 : index
    %763 = vector.load %arg9[%c1_659, %c0_660, %c0_661] : memref<4x16x16xf32, #tpu.memory_space<vmem>>, vector<1x16x16xf32>
    %764 = vector.shape_cast %763 : vector<1x16x16xf32> to vector<16x16xf32>
    %765 = vector.broadcast %760 : f32 to vector<16x16xf32>
    %766 = arith.mulf %765, %762 : vector<16x16xf32>
    %767 = arith.addf %764, %766 : vector<16x16xf32>
    %c1_662 = arith.constant 1 : index
    %c0_663 = arith.constant 0 : index
    %c0_664 = arith.constant 0 : index
    %768 = vector.load %arg9[%c1_662, %c0_663, %c0_664] : memref<4x16x16xf32, #tpu.memory_space<vmem>>, vector<1x16x16xf32>
    %769 = vector.shape_cast %768 : vector<1x16x16xf32> to vector<16x16xf32>
    %770 = vector.shape_cast %767 : vector<16x16xf32> to vector<1x16x16xf32>
    tpu.vector_store %arg9[%c1_662, %c0_663, %c0_664], %770 {strides = array<i32>} : memref<4x16x16xf32, #tpu.memory_space<vmem>>, vector<1x16x16xf32>,
    %c3_i32_665 = arith.constant 3 : i32
    %771 = arith.addi %695, %c3_i32_665 : i32
    %c2_i32_666 = arith.constant 2 : i32
    %772 = arith.addi %771, %c2_i32_666 : i32
    %773 = arith.index_cast %772 : i32 to index
    %774 = memref.load %arg3[%773] : memref<36xi32, #tpu.memory_space<smem>>
    %775 = arith.sitofp %774 : i32 to f32
    %c0_667 = arith.constant 0 : index
    %c1_668 = arith.constant 1 : index
    %c2_669 = arith.constant 2 : index
    %c1_670 = arith.constant 1 : index
    %c1_671 = arith.constant 1 : index
    %776 = vector.load %arg5[%c0_667, %c1_668, %c2_669, %c1_670, %c1_671] : memref<1x4x3x18x18xf32, #tpu.memory_space<vmem>>, vector<1x1x1x16x16xf32>
    %777 = vector.shape_cast %776 : vector<1x1x1x16x16xf32> to vector<16x16xf32>
    %c1_672 = arith.constant 1 : index
    %c0_673 = arith.constant 0 : index
    %c0_674 = arith.constant 0 : index
    %778 = vector.load %arg9[%c1_672, %c0_673, %c0_674] : memref<4x16x16xf32, #tpu.memory_space<vmem>>, vector<1x16x16xf32>
    %779 = vector.shape_cast %778 : vector<1x16x16xf32> to vector<16x16xf32>
    %780 = vector.broadcast %775 : f32 to vector<16x16xf32>
    %781 = arith.mulf %780, %777 : vector<16x16xf32>
    %782 = arith.addf %779, %781 : vector<16x16xf32>
    %c1_675 = arith.constant 1 : index
    %c0_676 = arith.constant 0 : index
    %c0_677 = arith.constant 0 : index
    %783 = vector.load %arg9[%c1_675, %c0_676, %c0_677] : memref<4x16x16xf32, #tpu.memory_space<vmem>>, vector<1x16x16xf32>
    %784 = vector.shape_cast %783 : vector<1x16x16xf32> to vector<16x16xf32>
    %785 = vector.shape_cast %782 : vector<16x16xf32> to vector<1x16x16xf32>
    tpu.vector_store %arg9[%c1_675, %c0_676, %c0_677], %785 {strides = array<i32>} : memref<4x16x16xf32, #tpu.memory_space<vmem>>, vector<1x16x16xf32>,
    %c6_i32_678 = arith.constant 6 : i32
    %786 = arith.addi %695, %c6_i32_678 : i32
    %c0_i32_679 = arith.constant 0 : i32
    %787 = arith.addi %786, %c0_i32_679 : i32
    %788 = arith.index_cast %787 : i32 to index
    %789 = memref.load %arg3[%788] : memref<36xi32, #tpu.memory_space<smem>>
    %790 = arith.sitofp %789 : i32 to f32
    %c0_680 = arith.constant 0 : index
    %c1_681 = arith.constant 1 : index
    %c0_682 = arith.constant 0 : index
    %c1_683 = arith.constant 1 : index
    %c4_684 = arith.constant 4 : index
    %791 = vector.load %arg5[%c0_680, %c1_681, %c0_682, %c1_683, %c4_684] : memref<1x4x3x18x18xf32, #tpu.memory_space<vmem>>, vector<1x1x1x16x14xf32>
    %792 = vector.shape_cast %791 : vector<1x1x1x16x14xf32> to vector<16x14xf32>
    %c1_685 = arith.constant 1 : index
    %c0_686 = arith.constant 0 : index
    %c0_687 = arith.constant 0 : index
    %793 = vector.load %arg9[%c1_685, %c0_686, %c0_687] : memref<4x16x16xf32, #tpu.memory_space<vmem>>, vector<1x16x14xf32>
    %794 = vector.shape_cast %793 : vector<1x16x14xf32> to vector<16x14xf32>
    %795 = vector.broadcast %790 : f32 to vector<16x14xf32>
    %796 = arith.mulf %795, %792 : vector<16x14xf32>
    %797 = arith.addf %794, %796 : vector<16x14xf32>
    %c1_688 = arith.constant 1 : index
    %c0_689 = arith.constant 0 : index
    %c0_690 = arith.constant 0 : index
    %798 = vector.load %arg9[%c1_688, %c0_689, %c0_690] : memref<4x16x16xf32, #tpu.memory_space<vmem>>, vector<1x16x14xf32>
    %799 = vector.shape_cast %798 : vector<1x16x14xf32> to vector<16x14xf32>
    %800 = vector.shape_cast %797 : vector<16x14xf32> to vector<1x16x14xf32>
    tpu.vector_store %arg9[%c1_688, %c0_689, %c0_690], %800 {strides = array<i32>} : memref<4x16x16xf32, #tpu.memory_space<vmem>>, vector<1x16x14xf32>,
    %c6_i32_691 = arith.constant 6 : i32
    %801 = arith.addi %695, %c6_i32_691 : i32
    %c1_i32_692 = arith.constant 1 : i32
    %802 = arith.addi %801, %c1_i32_692 : i32
    %803 = arith.index_cast %802 : i32 to index
    %804 = memref.load %arg3[%803] : memref<36xi32, #tpu.memory_space<smem>>
    %805 = arith.sitofp %804 : i32 to f32
    %c0_693 = arith.constant 0 : index
    %c1_694 = arith.constant 1 : index
    %c1_695 = arith.constant 1 : index
    %c1_696 = arith.constant 1 : index
    %c4_697 = arith.constant 4 : index
    %806 = vector.load %arg5[%c0_693, %c1_694, %c1_695, %c1_696, %c4_697] : memref<1x4x3x18x18xf32, #tpu.memory_space<vmem>>, vector<1x1x1x16x14xf32>
    %807 = vector.shape_cast %806 : vector<1x1x1x16x14xf32> to vector<16x14xf32>
    %c1_698 = arith.constant 1 : index
    %c0_699 = arith.constant 0 : index
    %c0_700 = arith.constant 0 : index
    %808 = vector.load %arg9[%c1_698, %c0_699, %c0_700] : memref<4x16x16xf32, #tpu.memory_space<vmem>>, vector<1x16x14xf32>
    %809 = vector.shape_cast %808 : vector<1x16x14xf32> to vector<16x14xf32>
    %810 = vector.broadcast %805 : f32 to vector<16x14xf32>
    %811 = arith.mulf %810, %807 : vector<16x14xf32>
    %812 = arith.addf %809, %811 : vector<16x14xf32>
    %c1_701 = arith.constant 1 : index
    %c0_702 = arith.constant 0 : index
    %c0_703 = arith.constant 0 : index
    %813 = vector.load %arg9[%c1_701, %c0_702, %c0_703] : memref<4x16x16xf32, #tpu.memory_space<vmem>>, vector<1x16x14xf32>
    %814 = vector.shape_cast %813 : vector<1x16x14xf32> to vector<16x14xf32>
    %815 = vector.shape_cast %812 : vector<16x14xf32> to vector<1x16x14xf32>
    tpu.vector_store %arg9[%c1_701, %c0_702, %c0_703], %815 {strides = array<i32>} : memref<4x16x16xf32, #tpu.memory_space<vmem>>, vector<1x16x14xf32>,
    %c6_i32_704 = arith.constant 6 : i32
    %816 = arith.addi %695, %c6_i32_704 : i32
    %c2_i32_705 = arith.constant 2 : i32
    %817 = arith.addi %816, %c2_i32_705 : i32
    %818 = arith.index_cast %817 : i32 to index
    %819 = memref.load %arg3[%818] : memref<36xi32, #tpu.memory_space<smem>>
    %820 = arith.sitofp %819 : i32 to f32
    %c0_706 = arith.constant 0 : index
    %c1_707 = arith.constant 1 : index
    %c2_708 = arith.constant 2 : index
    %c1_709 = arith.constant 1 : index
    %c4_710 = arith.constant 4 : index
    %821 = vector.load %arg5[%c0_706, %c1_707, %c2_708, %c1_709, %c4_710] : memref<1x4x3x18x18xf32, #tpu.memory_space<vmem>>, vector<1x1x1x16x14xf32>
    %822 = vector.shape_cast %821 : vector<1x1x1x16x14xf32> to vector<16x14xf32>
    %c1_711 = arith.constant 1 : index
    %c0_712 = arith.constant 0 : index
    %c0_713 = arith.constant 0 : index
    %823 = vector.load %arg9[%c1_711, %c0_712, %c0_713] : memref<4x16x16xf32, #tpu.memory_space<vmem>>, vector<1x16x14xf32>
    %824 = vector.shape_cast %823 : vector<1x16x14xf32> to vector<16x14xf32>
    %825 = vector.broadcast %820 : f32 to vector<16x14xf32>
    %826 = arith.mulf %825, %822 : vector<16x14xf32>
    %827 = arith.addf %824, %826 : vector<16x14xf32>
    %c1_714 = arith.constant 1 : index
    %c0_715 = arith.constant 0 : index
    %c0_716 = arith.constant 0 : index
    %828 = vector.load %arg9[%c1_714, %c0_715, %c0_716] : memref<4x16x16xf32, #tpu.memory_space<vmem>>, vector<1x16x14xf32>
    %829 = vector.shape_cast %828 : vector<1x16x14xf32> to vector<16x14xf32>
    %830 = vector.shape_cast %827 : vector<16x14xf32> to vector<1x16x14xf32>
    tpu.vector_store %arg9[%c1_714, %c0_715, %c0_716], %830 {strides = array<i32>} : memref<4x16x16xf32, #tpu.memory_space<vmem>>, vector<1x16x14xf32>,
    %c2_i32_717 = arith.constant 2 : i32
    %831 = arith.addi %0, %c2_i32_717 : i32
    %c9_i32_718 = arith.constant 9 : i32
    %832 = arith.muli %831, %c9_i32_718 : i32
    %c0_i32_719 = arith.constant 0 : i32
    %833 = arith.addi %832, %c0_i32_719 : i32
    %c0_i32_720 = arith.constant 0 : i32
    %834 = arith.addi %833, %c0_i32_720 : i32
    %835 = arith.index_cast %834 : i32 to index
    %836 = memref.load %arg3[%835] : memref<36xi32, #tpu.memory_space<smem>>
    %837 = arith.sitofp %836 : i32 to f32
    %c0_721 = arith.constant 0 : index
    %c2_722 = arith.constant 2 : index
    %c0_723 = arith.constant 0 : index
    %c1_724 = arith.constant 1 : index
    %c0_725 = arith.constant 0 : index
    %838 = vector.load %arg5[%c0_721, %c2_722, %c0_723, %c1_724, %c0_725] : memref<1x4x3x18x18xf32, #tpu.memory_space<vmem>>, vector<1x1x1x16x14xf32>
    %839 = vector.shape_cast %838 : vector<1x1x1x16x14xf32> to vector<16x14xf32>
    %c2_726 = arith.constant 2 : index
    %c0_727 = arith.constant 0 : index
    %c2_728 = arith.constant 2 : index
    %840 = vector.load %arg9[%c2_726, %c0_727, %c2_728] : memref<4x16x16xf32, #tpu.memory_space<vmem>>, vector<1x16x14xf32>
    %841 = vector.shape_cast %840 : vector<1x16x14xf32> to vector<16x14xf32>
    %842 = vector.broadcast %837 : f32 to vector<16x14xf32>
    %843 = arith.mulf %842, %839 : vector<16x14xf32>
    %844 = arith.addf %841, %843 : vector<16x14xf32>
    %c2_729 = arith.constant 2 : index
    %c0_730 = arith.constant 0 : index
    %c2_731 = arith.constant 2 : index
    %845 = vector.load %arg9[%c2_729, %c0_730, %c2_731] : memref<4x16x16xf32, #tpu.memory_space<vmem>>, vector<1x16x14xf32>
    %846 = vector.shape_cast %845 : vector<1x16x14xf32> to vector<16x14xf32>
    %847 = vector.shape_cast %844 : vector<16x14xf32> to vector<1x16x14xf32>
    tpu.vector_store %arg9[%c2_729, %c0_730, %c2_731], %847 {strides = array<i32>} : memref<4x16x16xf32, #tpu.memory_space<vmem>>, vector<1x16x14xf32>,
    %c0_i32_732 = arith.constant 0 : i32
    %848 = arith.addi %832, %c0_i32_732 : i32
    %c1_i32_733 = arith.constant 1 : i32
    %849 = arith.addi %848, %c1_i32_733 : i32
    %850 = arith.index_cast %849 : i32 to index
    %851 = memref.load %arg3[%850] : memref<36xi32, #tpu.memory_space<smem>>
    %852 = arith.sitofp %851 : i32 to f32
    %c0_734 = arith.constant 0 : index
    %c2_735 = arith.constant 2 : index
    %c1_736 = arith.constant 1 : index
    %c1_737 = arith.constant 1 : index
    %c0_738 = arith.constant 0 : index
    %853 = vector.load %arg5[%c0_734, %c2_735, %c1_736, %c1_737, %c0_738] : memref<1x4x3x18x18xf32, #tpu.memory_space<vmem>>, vector<1x1x1x16x14xf32>
    %854 = vector.shape_cast %853 : vector<1x1x1x16x14xf32> to vector<16x14xf32>
    %c2_739 = arith.constant 2 : index
    %c0_740 = arith.constant 0 : index
    %c2_741 = arith.constant 2 : index
    %855 = vector.load %arg9[%c2_739, %c0_740, %c2_741] : memref<4x16x16xf32, #tpu.memory_space<vmem>>, vector<1x16x14xf32>
    %856 = vector.shape_cast %855 : vector<1x16x14xf32> to vector<16x14xf32>
    %857 = vector.broadcast %852 : f32 to vector<16x14xf32>
    %858 = arith.mulf %857, %854 : vector<16x14xf32>
    %859 = arith.addf %856, %858 : vector<16x14xf32>
    %c2_742 = arith.constant 2 : index
    %c0_743 = arith.constant 0 : index
    %c2_744 = arith.constant 2 : index
    %860 = vector.load %arg9[%c2_742, %c0_743, %c2_744] : memref<4x16x16xf32, #tpu.memory_space<vmem>>, vector<1x16x14xf32>
    %861 = vector.shape_cast %860 : vector<1x16x14xf32> to vector<16x14xf32>
    %862 = vector.shape_cast %859 : vector<16x14xf32> to vector<1x16x14xf32>
    tpu.vector_store %arg9[%c2_742, %c0_743, %c2_744], %862 {strides = array<i32>} : memref<4x16x16xf32, #tpu.memory_space<vmem>>, vector<1x16x14xf32>,
    %c0_i32_745 = arith.constant 0 : i32
    %863 = arith.addi %832, %c0_i32_745 : i32
    %c2_i32_746 = arith.constant 2 : i32
    %864 = arith.addi %863, %c2_i32_746 : i32
    %865 = arith.index_cast %864 : i32 to index
    %866 = memref.load %arg3[%865] : memref<36xi32, #tpu.memory_space<smem>>
    %867 = arith.sitofp %866 : i32 to f32
    %c0_747 = arith.constant 0 : index
    %c2_748 = arith.constant 2 : index
    %c2_749 = arith.constant 2 : index
    %c1_750 = arith.constant 1 : index
    %c0_751 = arith.constant 0 : index
    %868 = vector.load %arg5[%c0_747, %c2_748, %c2_749, %c1_750, %c0_751] : memref<1x4x3x18x18xf32, #tpu.memory_space<vmem>>, vector<1x1x1x16x14xf32>
    %869 = vector.shape_cast %868 : vector<1x1x1x16x14xf32> to vector<16x14xf32>
    %c2_752 = arith.constant 2 : index
    %c0_753 = arith.constant 0 : index
    %c2_754 = arith.constant 2 : index
    %870 = vector.load %arg9[%c2_752, %c0_753, %c2_754] : memref<4x16x16xf32, #tpu.memory_space<vmem>>, vector<1x16x14xf32>
    %871 = vector.shape_cast %870 : vector<1x16x14xf32> to vector<16x14xf32>
    %872 = vector.broadcast %867 : f32 to vector<16x14xf32>
    %873 = arith.mulf %872, %869 : vector<16x14xf32>
    %874 = arith.addf %871, %873 : vector<16x14xf32>
    %c2_755 = arith.constant 2 : index
    %c0_756 = arith.constant 0 : index
    %c2_757 = arith.constant 2 : index
    %875 = vector.load %arg9[%c2_755, %c0_756, %c2_757] : memref<4x16x16xf32, #tpu.memory_space<vmem>>, vector<1x16x14xf32>
    %876 = vector.shape_cast %875 : vector<1x16x14xf32> to vector<16x14xf32>
    %877 = vector.shape_cast %874 : vector<16x14xf32> to vector<1x16x14xf32>
    tpu.vector_store %arg9[%c2_755, %c0_756, %c2_757], %877 {strides = array<i32>} : memref<4x16x16xf32, #tpu.memory_space<vmem>>, vector<1x16x14xf32>,
    %c3_i32_758 = arith.constant 3 : i32
    %878 = arith.addi %832, %c3_i32_758 : i32
    %c0_i32_759 = arith.constant 0 : i32
    %879 = arith.addi %878, %c0_i32_759 : i32
    %880 = arith.index_cast %879 : i32 to index
    %881 = memref.load %arg3[%880] : memref<36xi32, #tpu.memory_space<smem>>
    %882 = arith.sitofp %881 : i32 to f32
    %c0_760 = arith.constant 0 : index
    %c2_761 = arith.constant 2 : index
    %c0_762 = arith.constant 0 : index
    %c1_763 = arith.constant 1 : index
    %c1_764 = arith.constant 1 : index
    %883 = vector.load %arg5[%c0_760, %c2_761, %c0_762, %c1_763, %c1_764] : memref<1x4x3x18x18xf32, #tpu.memory_space<vmem>>, vector<1x1x1x16x16xf32>
    %884 = vector.shape_cast %883 : vector<1x1x1x16x16xf32> to vector<16x16xf32>
    %c2_765 = arith.constant 2 : index
    %c0_766 = arith.constant 0 : index
    %c0_767 = arith.constant 0 : index
    %885 = vector.load %arg9[%c2_765, %c0_766, %c0_767] : memref<4x16x16xf32, #tpu.memory_space<vmem>>, vector<1x16x16xf32>
    %886 = vector.shape_cast %885 : vector<1x16x16xf32> to vector<16x16xf32>
    %887 = vector.broadcast %882 : f32 to vector<16x16xf32>
    %888 = arith.mulf %887, %884 : vector<16x16xf32>
    %889 = arith.addf %886, %888 : vector<16x16xf32>
    %c2_768 = arith.constant 2 : index
    %c0_769 = arith.constant 0 : index
    %c0_770 = arith.constant 0 : index
    %890 = vector.load %arg9[%c2_768, %c0_769, %c0_770] : memref<4x16x16xf32, #tpu.memory_space<vmem>>, vector<1x16x16xf32>
    %891 = vector.shape_cast %890 : vector<1x16x16xf32> to vector<16x16xf32>
    %892 = vector.shape_cast %889 : vector<16x16xf32> to vector<1x16x16xf32>
    tpu.vector_store %arg9[%c2_768, %c0_769, %c0_770], %892 {strides = array<i32>} : memref<4x16x16xf32, #tpu.memory_space<vmem>>, vector<1x16x16xf32>,
    %c3_i32_771 = arith.constant 3 : i32
    %893 = arith.addi %832, %c3_i32_771 : i32
    %c1_i32_772 = arith.constant 1 : i32
    %894 = arith.addi %893, %c1_i32_772 : i32
    %895 = arith.index_cast %894 : i32 to index
    %896 = memref.load %arg3[%895] : memref<36xi32, #tpu.memory_space<smem>>
    %897 = arith.sitofp %896 : i32 to f32
    %c0_773 = arith.constant 0 : index
    %c2_774 = arith.constant 2 : index
    %c1_775 = arith.constant 1 : index
    %c1_776 = arith.constant 1 : index
    %c1_777 = arith.constant 1 : index
    %898 = vector.load %arg5[%c0_773, %c2_774, %c1_775, %c1_776, %c1_777] : memref<1x4x3x18x18xf32, #tpu.memory_space<vmem>>, vector<1x1x1x16x16xf32>
    %899 = vector.shape_cast %898 : vector<1x1x1x16x16xf32> to vector<16x16xf32>
    %c2_778 = arith.constant 2 : index
    %c0_779 = arith.constant 0 : index
    %c0_780 = arith.constant 0 : index
    %900 = vector.load %arg9[%c2_778, %c0_779, %c0_780] : memref<4x16x16xf32, #tpu.memory_space<vmem>>, vector<1x16x16xf32>
    %901 = vector.shape_cast %900 : vector<1x16x16xf32> to vector<16x16xf32>
    %902 = vector.broadcast %897 : f32 to vector<16x16xf32>
    %903 = arith.mulf %902, %899 : vector<16x16xf32>
    %904 = arith.addf %901, %903 : vector<16x16xf32>
    %c2_781 = arith.constant 2 : index
    %c0_782 = arith.constant 0 : index
    %c0_783 = arith.constant 0 : index
    %905 = vector.load %arg9[%c2_781, %c0_782, %c0_783] : memref<4x16x16xf32, #tpu.memory_space<vmem>>, vector<1x16x16xf32>
    %906 = vector.shape_cast %905 : vector<1x16x16xf32> to vector<16x16xf32>
    %907 = vector.shape_cast %904 : vector<16x16xf32> to vector<1x16x16xf32>
    tpu.vector_store %arg9[%c2_781, %c0_782, %c0_783], %907 {strides = array<i32>} : memref<4x16x16xf32, #tpu.memory_space<vmem>>, vector<1x16x16xf32>,
    %c3_i32_784 = arith.constant 3 : i32
    %908 = arith.addi %832, %c3_i32_784 : i32
    %c2_i32_785 = arith.constant 2 : i32
    %909 = arith.addi %908, %c2_i32_785 : i32
    %910 = arith.index_cast %909 : i32 to index
    %911 = memref.load %arg3[%910] : memref<36xi32, #tpu.memory_space<smem>>
    %912 = arith.sitofp %911 : i32 to f32
    %c0_786 = arith.constant 0 : index
    %c2_787 = arith.constant 2 : index
    %c2_788 = arith.constant 2 : index
    %c1_789 = arith.constant 1 : index
    %c1_790 = arith.constant 1 : index
    %913 = vector.load %arg5[%c0_786, %c2_787, %c2_788, %c1_789, %c1_790] : memref<1x4x3x18x18xf32, #tpu.memory_space<vmem>>, vector<1x1x1x16x16xf32>
    %914 = vector.shape_cast %913 : vector<1x1x1x16x16xf32> to vector<16x16xf32>
    %c2_791 = arith.constant 2 : index
    %c0_792 = arith.constant 0 : index
    %c0_793 = arith.constant 0 : index
    %915 = vector.load %arg9[%c2_791, %c0_792, %c0_793] : memref<4x16x16xf32, #tpu.memory_space<vmem>>, vector<1x16x16xf32>
    %916 = vector.shape_cast %915 : vector<1x16x16xf32> to vector<16x16xf32>
    %917 = vector.broadcast %912 : f32 to vector<16x16xf32>
    %918 = arith.mulf %917, %914 : vector<16x16xf32>
    %919 = arith.addf %916, %918 : vector<16x16xf32>
    %c2_794 = arith.constant 2 : index
    %c0_795 = arith.constant 0 : index
    %c0_796 = arith.constant 0 : index
    %920 = vector.load %arg9[%c2_794, %c0_795, %c0_796] : memref<4x16x16xf32, #tpu.memory_space<vmem>>, vector<1x16x16xf32>
    %921 = vector.shape_cast %920 : vector<1x16x16xf32> to vector<16x16xf32>
    %922 = vector.shape_cast %919 : vector<16x16xf32> to vector<1x16x16xf32>
    tpu.vector_store %arg9[%c2_794, %c0_795, %c0_796], %922 {strides = array<i32>} : memref<4x16x16xf32, #tpu.memory_space<vmem>>, vector<1x16x16xf32>,
    %c6_i32_797 = arith.constant 6 : i32
    %923 = arith.addi %832, %c6_i32_797 : i32
    %c0_i32_798 = arith.constant 0 : i32
    %924 = arith.addi %923, %c0_i32_798 : i32
    %925 = arith.index_cast %924 : i32 to index
    %926 = memref.load %arg3[%925] : memref<36xi32, #tpu.memory_space<smem>>
    %927 = arith.sitofp %926 : i32 to f32
    %c0_799 = arith.constant 0 : index
    %c2_800 = arith.constant 2 : index
    %c0_801 = arith.constant 0 : index
    %c1_802 = arith.constant 1 : index
    %c4_803 = arith.constant 4 : index
    %928 = vector.load %arg5[%c0_799, %c2_800, %c0_801, %c1_802, %c4_803] : memref<1x4x3x18x18xf32, #tpu.memory_space<vmem>>, vector<1x1x1x16x14xf32>
    %929 = vector.shape_cast %928 : vector<1x1x1x16x14xf32> to vector<16x14xf32>
    %c2_804 = arith.constant 2 : index
    %c0_805 = arith.constant 0 : index
    %c0_806 = arith.constant 0 : index
    %930 = vector.load %arg9[%c2_804, %c0_805, %c0_806] : memref<4x16x16xf32, #tpu.memory_space<vmem>>, vector<1x16x14xf32>
    %931 = vector.shape_cast %930 : vector<1x16x14xf32> to vector<16x14xf32>
    %932 = vector.broadcast %927 : f32 to vector<16x14xf32>
    %933 = arith.mulf %932, %929 : vector<16x14xf32>
    %934 = arith.addf %931, %933 : vector<16x14xf32>
    %c2_807 = arith.constant 2 : index
    %c0_808 = arith.constant 0 : index
    %c0_809 = arith.constant 0 : index
    %935 = vector.load %arg9[%c2_807, %c0_808, %c0_809] : memref<4x16x16xf32, #tpu.memory_space<vmem>>, vector<1x16x14xf32>
    %936 = vector.shape_cast %935 : vector<1x16x14xf32> to vector<16x14xf32>
    %937 = vector.shape_cast %934 : vector<16x14xf32> to vector<1x16x14xf32>
    tpu.vector_store %arg9[%c2_807, %c0_808, %c0_809], %937 {strides = array<i32>} : memref<4x16x16xf32, #tpu.memory_space<vmem>>, vector<1x16x14xf32>,
    %c6_i32_810 = arith.constant 6 : i32
    %938 = arith.addi %832, %c6_i32_810 : i32
    %c1_i32_811 = arith.constant 1 : i32
    %939 = arith.addi %938, %c1_i32_811 : i32
    %940 = arith.index_cast %939 : i32 to index
    %941 = memref.load %arg3[%940] : memref<36xi32, #tpu.memory_space<smem>>
    %942 = arith.sitofp %941 : i32 to f32
    %c0_812 = arith.constant 0 : index
    %c2_813 = arith.constant 2 : index
    %c1_814 = arith.constant 1 : index
    %c1_815 = arith.constant 1 : index
    %c4_816 = arith.constant 4 : index
    %943 = vector.load %arg5[%c0_812, %c2_813, %c1_814, %c1_815, %c4_816] : memref<1x4x3x18x18xf32, #tpu.memory_space<vmem>>, vector<1x1x1x16x14xf32>
    %944 = vector.shape_cast %943 : vector<1x1x1x16x14xf32> to vector<16x14xf32>
    %c2_817 = arith.constant 2 : index
    %c0_818 = arith.constant 0 : index
    %c0_819 = arith.constant 0 : index
    %945 = vector.load %arg9[%c2_817, %c0_818, %c0_819] : memref<4x16x16xf32, #tpu.memory_space<vmem>>, vector<1x16x14xf32>
    %946 = vector.shape_cast %945 : vector<1x16x14xf32> to vector<16x14xf32>
    %947 = vector.broadcast %942 : f32 to vector<16x14xf32>
    %948 = arith.mulf %947, %944 : vector<16x14xf32>
    %949 = arith.addf %946, %948 : vector<16x14xf32>
    %c2_820 = arith.constant 2 : index
    %c0_821 = arith.constant 0 : index
    %c0_822 = arith.constant 0 : index
    %950 = vector.load %arg9[%c2_820, %c0_821, %c0_822] : memref<4x16x16xf32, #tpu.memory_space<vmem>>, vector<1x16x14xf32>
    %951 = vector.shape_cast %950 : vector<1x16x14xf32> to vector<16x14xf32>
    %952 = vector.shape_cast %949 : vector<16x14xf32> to vector<1x16x14xf32>
    tpu.vector_store %arg9[%c2_820, %c0_821, %c0_822], %952 {strides = array<i32>} : memref<4x16x16xf32, #tpu.memory_space<vmem>>, vector<1x16x14xf32>,
    %c6_i32_823 = arith.constant 6 : i32
    %953 = arith.addi %832, %c6_i32_823 : i32
    %c2_i32_824 = arith.constant 2 : i32
    %954 = arith.addi %953, %c2_i32_824 : i32
    %955 = arith.index_cast %954 : i32 to index
    %956 = memref.load %arg3[%955] : memref<36xi32, #tpu.memory_space<smem>>
    %957 = arith.sitofp %956 : i32 to f32
    %c0_825 = arith.constant 0 : index
    %c2_826 = arith.constant 2 : index
    %c2_827 = arith.constant 2 : index
    %c1_828 = arith.constant 1 : index
    %c4_829 = arith.constant 4 : index
    %958 = vector.load %arg5[%c0_825, %c2_826, %c2_827, %c1_828, %c4_829] : memref<1x4x3x18x18xf32, #tpu.memory_space<vmem>>, vector<1x1x1x16x14xf32>
    %959 = vector.shape_cast %958 : vector<1x1x1x16x14xf32> to vector<16x14xf32>
    %c2_830 = arith.constant 2 : index
    %c0_831 = arith.constant 0 : index
    %c0_832 = arith.constant 0 : index
    %960 = vector.load %arg9[%c2_830, %c0_831, %c0_832] : memref<4x16x16xf32, #tpu.memory_space<vmem>>, vector<1x16x14xf32>
    %961 = vector.shape_cast %960 : vector<1x16x14xf32> to vector<16x14xf32>
    %962 = vector.broadcast %957 : f32 to vector<16x14xf32>
    %963 = arith.mulf %962, %959 : vector<16x14xf32>
    %964 = arith.addf %961, %963 : vector<16x14xf32>
    %c2_833 = arith.constant 2 : index
    %c0_834 = arith.constant 0 : index
    %c0_835 = arith.constant 0 : index
    %965 = vector.load %arg9[%c2_833, %c0_834, %c0_835] : memref<4x16x16xf32, #tpu.memory_space<vmem>>, vector<1x16x14xf32>
    %966 = vector.shape_cast %965 : vector<1x16x14xf32> to vector<16x14xf32>
    %967 = vector.shape_cast %964 : vector<16x14xf32> to vector<1x16x14xf32>
    tpu.vector_store %arg9[%c2_833, %c0_834, %c0_835], %967 {strides = array<i32>} : memref<4x16x16xf32, #tpu.memory_space<vmem>>, vector<1x16x14xf32>,
    %c3_i32_836 = arith.constant 3 : i32
    %968 = arith.addi %0, %c3_i32_836 : i32
    %c9_i32_837 = arith.constant 9 : i32
    %969 = arith.muli %968, %c9_i32_837 : i32
    %c0_i32_838 = arith.constant 0 : i32
    %970 = arith.addi %969, %c0_i32_838 : i32
    %c0_i32_839 = arith.constant 0 : i32
    %971 = arith.addi %970, %c0_i32_839 : i32
    %972 = arith.index_cast %971 : i32 to index
    %973 = memref.load %arg3[%972] : memref<36xi32, #tpu.memory_space<smem>>
    %974 = arith.sitofp %973 : i32 to f32
    %c0_840 = arith.constant 0 : index
    %c3_841 = arith.constant 3 : index
    %c0_842 = arith.constant 0 : index
    %c1_843 = arith.constant 1 : index
    %c0_844 = arith.constant 0 : index
    %975 = vector.load %arg5[%c0_840, %c3_841, %c0_842, %c1_843, %c0_844] : memref<1x4x3x18x18xf32, #tpu.memory_space<vmem>>, vector<1x1x1x16x14xf32>
    %976 = vector.shape_cast %975 : vector<1x1x1x16x14xf32> to vector<16x14xf32>
    %c3_845 = arith.constant 3 : index
    %c0_846 = arith.constant 0 : index
    %c2_847 = arith.constant 2 : index
    %977 = vector.load %arg9[%c3_845, %c0_846, %c2_847] : memref<4x16x16xf32, #tpu.memory_space<vmem>>, vector<1x16x14xf32>
    %978 = vector.shape_cast %977 : vector<1x16x14xf32> to vector<16x14xf32>
    %979 = vector.broadcast %974 : f32 to vector<16x14xf32>
    %980 = arith.mulf %979, %976 : vector<16x14xf32>
    %981 = arith.addf %978, %980 : vector<16x14xf32>
    %c3_848 = arith.constant 3 : index
    %c0_849 = arith.constant 0 : index
    %c2_850 = arith.constant 2 : index
    %982 = vector.load %arg9[%c3_848, %c0_849, %c2_850] : memref<4x16x16xf32, #tpu.memory_space<vmem>>, vector<1x16x14xf32>
    %983 = vector.shape_cast %982 : vector<1x16x14xf32> to vector<16x14xf32>
    %984 = vector.shape_cast %981 : vector<16x14xf32> to vector<1x16x14xf32>
    tpu.vector_store %arg9[%c3_848, %c0_849, %c2_850], %984 {strides = array<i32>} : memref<4x16x16xf32, #tpu.memory_space<vmem>>, vector<1x16x14xf32>,
    %c0_i32_851 = arith.constant 0 : i32
    %985 = arith.addi %969, %c0_i32_851 : i32
    %c1_i32_852 = arith.constant 1 : i32
    %986 = arith.addi %985, %c1_i32_852 : i32
    %987 = arith.index_cast %986 : i32 to index
    %988 = memref.load %arg3[%987] : memref<36xi32, #tpu.memory_space<smem>>
    %989 = arith.sitofp %988 : i32 to f32
    %c0_853 = arith.constant 0 : index
    %c3_854 = arith.constant 3 : index
    %c1_855 = arith.constant 1 : index
    %c1_856 = arith.constant 1 : index
    %c0_857 = arith.constant 0 : index
    %990 = vector.load %arg5[%c0_853, %c3_854, %c1_855, %c1_856, %c0_857] : memref<1x4x3x18x18xf32, #tpu.memory_space<vmem>>, vector<1x1x1x16x14xf32>
    %991 = vector.shape_cast %990 : vector<1x1x1x16x14xf32> to vector<16x14xf32>
    %c3_858 = arith.constant 3 : index
    %c0_859 = arith.constant 0 : index
    %c2_860 = arith.constant 2 : index
    %992 = vector.load %arg9[%c3_858, %c0_859, %c2_860] : memref<4x16x16xf32, #tpu.memory_space<vmem>>, vector<1x16x14xf32>
    %993 = vector.shape_cast %992 : vector<1x16x14xf32> to vector<16x14xf32>
    %994 = vector.broadcast %989 : f32 to vector<16x14xf32>
    %995 = arith.mulf %994, %991 : vector<16x14xf32>
    %996 = arith.addf %993, %995 : vector<16x14xf32>
    %c3_861 = arith.constant 3 : index
    %c0_862 = arith.constant 0 : index
    %c2_863 = arith.constant 2 : index
    %997 = vector.load %arg9[%c3_861, %c0_862, %c2_863] : memref<4x16x16xf32, #tpu.memory_space<vmem>>, vector<1x16x14xf32>
    %998 = vector.shape_cast %997 : vector<1x16x14xf32> to vector<16x14xf32>
    %999 = vector.shape_cast %996 : vector<16x14xf32> to vector<1x16x14xf32>
    tpu.vector_store %arg9[%c3_861, %c0_862, %c2_863], %999 {strides = array<i32>} : memref<4x16x16xf32, #tpu.memory_space<vmem>>, vector<1x16x14xf32>,
    %c0_i32_864 = arith.constant 0 : i32
    %1000 = arith.addi %969, %c0_i32_864 : i32
    %c2_i32_865 = arith.constant 2 : i32
    %1001 = arith.addi %1000, %c2_i32_865 : i32
    %1002 = arith.index_cast %1001 : i32 to index
    %1003 = memref.load %arg3[%1002] : memref<36xi32, #tpu.memory_space<smem>>
    %1004 = arith.sitofp %1003 : i32 to f32
    %c0_866 = arith.constant 0 : index
    %c3_867 = arith.constant 3 : index
    %c2_868 = arith.constant 2 : index
    %c1_869 = arith.constant 1 : index
    %c0_870 = arith.constant 0 : index
    %1005 = vector.load %arg5[%c0_866, %c3_867, %c2_868, %c1_869, %c0_870] : memref<1x4x3x18x18xf32, #tpu.memory_space<vmem>>, vector<1x1x1x16x14xf32>
    %1006 = vector.shape_cast %1005 : vector<1x1x1x16x14xf32> to vector<16x14xf32>
    %c3_871 = arith.constant 3 : index
    %c0_872 = arith.constant 0 : index
    %c2_873 = arith.constant 2 : index
    %1007 = vector.load %arg9[%c3_871, %c0_872, %c2_873] : memref<4x16x16xf32, #tpu.memory_space<vmem>>, vector<1x16x14xf32>
    %1008 = vector.shape_cast %1007 : vector<1x16x14xf32> to vector<16x14xf32>
    %1009 = vector.broadcast %1004 : f32 to vector<16x14xf32>
    %1010 = arith.mulf %1009, %1006 : vector<16x14xf32>
    %1011 = arith.addf %1008, %1010 : vector<16x14xf32>
    %c3_874 = arith.constant 3 : index
    %c0_875 = arith.constant 0 : index
    %c2_876 = arith.constant 2 : index
    %1012 = vector.load %arg9[%c3_874, %c0_875, %c2_876] : memref<4x16x16xf32, #tpu.memory_space<vmem>>, vector<1x16x14xf32>
    %1013 = vector.shape_cast %1012 : vector<1x16x14xf32> to vector<16x14xf32>
    %1014 = vector.shape_cast %1011 : vector<16x14xf32> to vector<1x16x14xf32>
    tpu.vector_store %arg9[%c3_874, %c0_875, %c2_876], %1014 {strides = array<i32>} : memref<4x16x16xf32, #tpu.memory_space<vmem>>, vector<1x16x14xf32>,
    %c3_i32_877 = arith.constant 3 : i32
    %1015 = arith.addi %969, %c3_i32_877 : i32
    %c0_i32_878 = arith.constant 0 : i32
    %1016 = arith.addi %1015, %c0_i32_878 : i32
    %1017 = arith.index_cast %1016 : i32 to index
    %1018 = memref.load %arg3[%1017] : memref<36xi32, #tpu.memory_space<smem>>
    %1019 = arith.sitofp %1018 : i32 to f32
    %c0_879 = arith.constant 0 : index
    %c3_880 = arith.constant 3 : index
    %c0_881 = arith.constant 0 : index
    %c1_882 = arith.constant 1 : index
    %c1_883 = arith.constant 1 : index
    %1020 = vector.load %arg5[%c0_879, %c3_880, %c0_881, %c1_882, %c1_883] : memref<1x4x3x18x18xf32, #tpu.memory_space<vmem>>, vector<1x1x1x16x16xf32>
    %1021 = vector.shape_cast %1020 : vector<1x1x1x16x16xf32> to vector<16x16xf32>
    %c3_884 = arith.constant 3 : index
    %c0_885 = arith.constant 0 : index
    %c0_886 = arith.constant 0 : index
    %1022 = vector.load %arg9[%c3_884, %c0_885, %c0_886] : memref<4x16x16xf32, #tpu.memory_space<vmem>>, vector<1x16x16xf32>
    %1023 = vector.shape_cast %1022 : vector<1x16x16xf32> to vector<16x16xf32>
    %1024 = vector.broadcast %1019 : f32 to vector<16x16xf32>
    %1025 = arith.mulf %1024, %1021 : vector<16x16xf32>
    %1026 = arith.addf %1023, %1025 : vector<16x16xf32>
    %c3_887 = arith.constant 3 : index
    %c0_888 = arith.constant 0 : index
    %c0_889 = arith.constant 0 : index
    %1027 = vector.load %arg9[%c3_887, %c0_888, %c0_889] : memref<4x16x16xf32, #tpu.memory_space<vmem>>, vector<1x16x16xf32>
    %1028 = vector.shape_cast %1027 : vector<1x16x16xf32> to vector<16x16xf32>
    %1029 = vector.shape_cast %1026 : vector<16x16xf32> to vector<1x16x16xf32>
    tpu.vector_store %arg9[%c3_887, %c0_888, %c0_889], %1029 {strides = array<i32>} : memref<4x16x16xf32, #tpu.memory_space<vmem>>, vector<1x16x16xf32>,
    %c3_i32_890 = arith.constant 3 : i32
    %1030 = arith.addi %969, %c3_i32_890 : i32
    %c1_i32_891 = arith.constant 1 : i32
    %1031 = arith.addi %1030, %c1_i32_891 : i32
    %1032 = arith.index_cast %1031 : i32 to index
    %1033 = memref.load %arg3[%1032] : memref<36xi32, #tpu.memory_space<smem>>
    %1034 = arith.sitofp %1033 : i32 to f32
    %c0_892 = arith.constant 0 : index
    %c3_893 = arith.constant 3 : index
    %c1_894 = arith.constant 1 : index
    %c1_895 = arith.constant 1 : index
    %c1_896 = arith.constant 1 : index
    %1035 = vector.load %arg5[%c0_892, %c3_893, %c1_894, %c1_895, %c1_896] : memref<1x4x3x18x18xf32, #tpu.memory_space<vmem>>, vector<1x1x1x16x16xf32>
    %1036 = vector.shape_cast %1035 : vector<1x1x1x16x16xf32> to vector<16x16xf32>
    %c3_897 = arith.constant 3 : index
    %c0_898 = arith.constant 0 : index
    %c0_899 = arith.constant 0 : index
    %1037 = vector.load %arg9[%c3_897, %c0_898, %c0_899] : memref<4x16x16xf32, #tpu.memory_space<vmem>>, vector<1x16x16xf32>
    %1038 = vector.shape_cast %1037 : vector<1x16x16xf32> to vector<16x16xf32>
    %1039 = vector.broadcast %1034 : f32 to vector<16x16xf32>
    %1040 = arith.mulf %1039, %1036 : vector<16x16xf32>
    %1041 = arith.addf %1038, %1040 : vector<16x16xf32>
    %c3_900 = arith.constant 3 : index
    %c0_901 = arith.constant 0 : index
    %c0_902 = arith.constant 0 : index
    %1042 = vector.load %arg9[%c3_900, %c0_901, %c0_902] : memref<4x16x16xf32, #tpu.memory_space<vmem>>, vector<1x16x16xf32>
    %1043 = vector.shape_cast %1042 : vector<1x16x16xf32> to vector<16x16xf32>
    %1044 = vector.shape_cast %1041 : vector<16x16xf32> to vector<1x16x16xf32>
    tpu.vector_store %arg9[%c3_900, %c0_901, %c0_902], %1044 {strides = array<i32>} : memref<4x16x16xf32, #tpu.memory_space<vmem>>, vector<1x16x16xf32>,
    %c3_i32_903 = arith.constant 3 : i32
    %1045 = arith.addi %969, %c3_i32_903 : i32
    %c2_i32_904 = arith.constant 2 : i32
    %1046 = arith.addi %1045, %c2_i32_904 : i32
    %1047 = arith.index_cast %1046 : i32 to index
    %1048 = memref.load %arg3[%1047] : memref<36xi32, #tpu.memory_space<smem>>
    %1049 = arith.sitofp %1048 : i32 to f32
    %c0_905 = arith.constant 0 : index
    %c3_906 = arith.constant 3 : index
    %c2_907 = arith.constant 2 : index
    %c1_908 = arith.constant 1 : index
    %c1_909 = arith.constant 1 : index
    %1050 = vector.load %arg5[%c0_905, %c3_906, %c2_907, %c1_908, %c1_909] : memref<1x4x3x18x18xf32, #tpu.memory_space<vmem>>, vector<1x1x1x16x16xf32>
    %1051 = vector.shape_cast %1050 : vector<1x1x1x16x16xf32> to vector<16x16xf32>
    %c3_910 = arith.constant 3 : index
    %c0_911 = arith.constant 0 : index
    %c0_912 = arith.constant 0 : index
    %1052 = vector.load %arg9[%c3_910, %c0_911, %c0_912] : memref<4x16x16xf32, #tpu.memory_space<vmem>>, vector<1x16x16xf32>
    %1053 = vector.shape_cast %1052 : vector<1x16x16xf32> to vector<16x16xf32>
    %1054 = vector.broadcast %1049 : f32 to vector<16x16xf32>
    %1055 = arith.mulf %1054, %1051 : vector<16x16xf32>
    %1056 = arith.addf %1053, %1055 : vector<16x16xf32>
    %c3_913 = arith.constant 3 : index
    %c0_914 = arith.constant 0 : index
    %c0_915 = arith.constant 0 : index
    %1057 = vector.load %arg9[%c3_913, %c0_914, %c0_915] : memref<4x16x16xf32, #tpu.memory_space<vmem>>, vector<1x16x16xf32>
    %1058 = vector.shape_cast %1057 : vector<1x16x16xf32> to vector<16x16xf32>
    %1059 = vector.shape_cast %1056 : vector<16x16xf32> to vector<1x16x16xf32>
    tpu.vector_store %arg9[%c3_913, %c0_914, %c0_915], %1059 {strides = array<i32>} : memref<4x16x16xf32, #tpu.memory_space<vmem>>, vector<1x16x16xf32>,
    %c6_i32_916 = arith.constant 6 : i32
    %1060 = arith.addi %969, %c6_i32_916 : i32
    %c0_i32_917 = arith.constant 0 : i32
    %1061 = arith.addi %1060, %c0_i32_917 : i32
    %1062 = arith.index_cast %1061 : i32 to index
    %1063 = memref.load %arg3[%1062] : memref<36xi32, #tpu.memory_space<smem>>
    %1064 = arith.sitofp %1063 : i32 to f32
    %c0_918 = arith.constant 0 : index
    %c3_919 = arith.constant 3 : index
    %c0_920 = arith.constant 0 : index
    %c1_921 = arith.constant 1 : index
    %c4_922 = arith.constant 4 : index
    %1065 = vector.load %arg5[%c0_918, %c3_919, %c0_920, %c1_921, %c4_922] : memref<1x4x3x18x18xf32, #tpu.memory_space<vmem>>, vector<1x1x1x16x14xf32>
    %1066 = vector.shape_cast %1065 : vector<1x1x1x16x14xf32> to vector<16x14xf32>
    %c3_923 = arith.constant 3 : index
    %c0_924 = arith.constant 0 : index
    %c0_925 = arith.constant 0 : index
    %1067 = vector.load %arg9[%c3_923, %c0_924, %c0_925] : memref<4x16x16xf32, #tpu.memory_space<vmem>>, vector<1x16x14xf32>
    %1068 = vector.shape_cast %1067 : vector<1x16x14xf32> to vector<16x14xf32>
    %1069 = vector.broadcast %1064 : f32 to vector<16x14xf32>
    %1070 = arith.mulf %1069, %1066 : vector<16x14xf32>
    %1071 = arith.addf %1068, %1070 : vector<16x14xf32>
    %c3_926 = arith.constant 3 : index
    %c0_927 = arith.constant 0 : index
    %c0_928 = arith.constant 0 : index
    %1072 = vector.load %arg9[%c3_926, %c0_927, %c0_928] : memref<4x16x16xf32, #tpu.memory_space<vmem>>, vector<1x16x14xf32>
    %1073 = vector.shape_cast %1072 : vector<1x16x14xf32> to vector<16x14xf32>
    %1074 = vector.shape_cast %1071 : vector<16x14xf32> to vector<1x16x14xf32>
    tpu.vector_store %arg9[%c3_926, %c0_927, %c0_928], %1074 {strides = array<i32>} : memref<4x16x16xf32, #tpu.memory_space<vmem>>, vector<1x16x14xf32>,
    %c6_i32_929 = arith.constant 6 : i32
    %1075 = arith.addi %969, %c6_i32_929 : i32
    %c1_i32_930 = arith.constant 1 : i32
    %1076 = arith.addi %1075, %c1_i32_930 : i32
    %1077 = arith.index_cast %1076 : i32 to index
    %1078 = memref.load %arg3[%1077] : memref<36xi32, #tpu.memory_space<smem>>
    %1079 = arith.sitofp %1078 : i32 to f32
    %c0_931 = arith.constant 0 : index
    %c3_932 = arith.constant 3 : index
    %c1_933 = arith.constant 1 : index
    %c1_934 = arith.constant 1 : index
    %c4_935 = arith.constant 4 : index
    %1080 = vector.load %arg5[%c0_931, %c3_932, %c1_933, %c1_934, %c4_935] : memref<1x4x3x18x18xf32, #tpu.memory_space<vmem>>, vector<1x1x1x16x14xf32>
    %1081 = vector.shape_cast %1080 : vector<1x1x1x16x14xf32> to vector<16x14xf32>
    %c3_936 = arith.constant 3 : index
    %c0_937 = arith.constant 0 : index
    %c0_938 = arith.constant 0 : index
    %1082 = vector.load %arg9[%c3_936, %c0_937, %c0_938] : memref<4x16x16xf32, #tpu.memory_space<vmem>>, vector<1x16x14xf32>
    %1083 = vector.shape_cast %1082 : vector<1x16x14xf32> to vector<16x14xf32>
    %1084 = vector.broadcast %1079 : f32 to vector<16x14xf32>
    %1085 = arith.mulf %1084, %1081 : vector<16x14xf32>
    %1086 = arith.addf %1083, %1085 : vector<16x14xf32>
    %c3_939 = arith.constant 3 : index
    %c0_940 = arith.constant 0 : index
    %c0_941 = arith.constant 0 : index
    %1087 = vector.load %arg9[%c3_939, %c0_940, %c0_941] : memref<4x16x16xf32, #tpu.memory_space<vmem>>, vector<1x16x14xf32>
    %1088 = vector.shape_cast %1087 : vector<1x16x14xf32> to vector<16x14xf32>
    %1089 = vector.shape_cast %1086 : vector<16x14xf32> to vector<1x16x14xf32>
    tpu.vector_store %arg9[%c3_939, %c0_940, %c0_941], %1089 {strides = array<i32>} : memref<4x16x16xf32, #tpu.memory_space<vmem>>, vector<1x16x14xf32>,
    %c6_i32_942 = arith.constant 6 : i32
    %1090 = arith.addi %969, %c6_i32_942 : i32
    %c2_i32_943 = arith.constant 2 : i32
    %1091 = arith.addi %1090, %c2_i32_943 : i32
    %1092 = arith.index_cast %1091 : i32 to index
    %1093 = memref.load %arg3[%1092] : memref<36xi32, #tpu.memory_space<smem>>
    %1094 = arith.sitofp %1093 : i32 to f32
    %c0_944 = arith.constant 0 : index
    %c3_945 = arith.constant 3 : index
    %c2_946 = arith.constant 2 : index
    %c1_947 = arith.constant 1 : index
    %c4_948 = arith.constant 4 : index
    %1095 = vector.load %arg5[%c0_944, %c3_945, %c2_946, %c1_947, %c4_948] : memref<1x4x3x18x18xf32, #tpu.memory_space<vmem>>, vector<1x1x1x16x14xf32>
    %1096 = vector.shape_cast %1095 : vector<1x1x1x16x14xf32> to vector<16x14xf32>
    %c3_949 = arith.constant 3 : index
    %c0_950 = arith.constant 0 : index
    %c0_951 = arith.constant 0 : index
    %1097 = vector.load %arg9[%c3_949, %c0_950, %c0_951] : memref<4x16x16xf32, #tpu.memory_space<vmem>>, vector<1x16x14xf32>
    %1098 = vector.shape_cast %1097 : vector<1x16x14xf32> to vector<16x14xf32>
    %1099 = vector.broadcast %1094 : f32 to vector<16x14xf32>
    %1100 = arith.mulf %1099, %1096 : vector<16x14xf32>
    %1101 = arith.addf %1098, %1100 : vector<16x14xf32>
    %c3_952 = arith.constant 3 : index
    %c0_953 = arith.constant 0 : index
    %c0_954 = arith.constant 0 : index
    %1102 = vector.load %arg9[%c3_952, %c0_953, %c0_954] : memref<4x16x16xf32, #tpu.memory_space<vmem>>, vector<1x16x14xf32>
    %1103 = vector.shape_cast %1102 : vector<1x16x14xf32> to vector<16x14xf32>
    %1104 = vector.shape_cast %1101 : vector<16x14xf32> to vector<1x16x14xf32>
    tpu.vector_store %arg9[%c3_952, %c0_953, %c0_954], %1104 {strides = array<i32>} : memref<4x16x16xf32, #tpu.memory_space<vmem>>, vector<1x16x14xf32>,
    %c0_955 = arith.constant 0 : index
    %c0_956 = arith.constant 0 : index
    %c0_957 = arith.constant 0 : index
    %1105 = vector.load %arg9[%c0_955, %c0_956, %c0_957] : memref<4x16x16xf32, #tpu.memory_space<vmem>>, vector<4x16x16xf32>
    %c0_958 = arith.constant 0 : index
    %c0_959 = arith.constant 0 : index
    %c0_960 = arith.constant 0 : index
    %c0_961 = arith.constant 0 : index
    %1106 = vector.load %arg7[%c0_958, %c0_959, %c0_960, %c0_961] : memref<1x4x16x16xf32, #tpu.memory_space<vmem>>, vector<1x4x16x16xf32>
    %1107 = vector.shape_cast %1106 : vector<1x4x16x16xf32> to vector<4x16x16xf32>
    %1108 = vector.shape_cast %1105 : vector<4x16x16xf32> to vector<1x4x16x16xf32>
    tpu.vector_store %arg7[%c0_958, %c0_959, %c0_960, %c0_961], %1108 {strides = array<i32>} : memref<1x4x16x16xf32, #tpu.memory_space<vmem>>, vector<1x4x16x16xf32>,
    %cst_962 = arith.constant 0.000000e+00 : f32
    %1109 = vector.broadcast %cst_962 : f32 to vector<4x16x16xf32>
    %c0_963 = arith.constant 0 : index
    %c0_964 = arith.constant 0 : index
    %c0_965 = arith.constant 0 : index
    %1110 = vector.load %arg9[%c0_963, %c0_964, %c0_965] : memref<4x16x16xf32, #tpu.memory_space<vmem>>, vector<4x16x16xf32>
    tpu.vector_store %arg9[%c0_963, %c0_964, %c0_965], %1109 {strides = array<i32>} : memref<4x16x16xf32, #tpu.memory_space<vmem>>, vector<4x16x16xf32>,
    %c0_i32_966 = arith.constant 0 : i32
    %1111 = arith.addi %0, %c0_i32_966 : i32
    %c3_i32_967 = arith.constant 3 : i32
    %1112 = arith.muli %1111, %c3_i32_967 : i32
    %c0_i32_968 = arith.constant 0 : i32
    %1113 = arith.addi %1112, %c0_i32_968 : i32
    %1114 = arith.index_cast %1113 : i32 to index
    %1115 = memref.load %arg4[%1114] : memref<12xi32, #tpu.memory_space<smem>>
    %1116 = arith.sitofp %1115 : i32 to f32
    %c0_969 = arith.constant 0 : index
    %c0_970 = arith.constant 0 : index
    %c0_971 = arith.constant 0 : index
    %c1_972 = arith.constant 1 : index
    %c1_973 = arith.constant 1 : index
    %1117 = vector.load %arg5[%c0_969, %c0_970, %c0_971, %c1_972, %c1_973] : memref<1x4x3x18x18xf32, #tpu.memory_space<vmem>>, vector<1x1x1x16x16xf32>
    %1118 = vector.shape_cast %1117 : vector<1x1x1x16x16xf32> to vector<16x16xf32>
    %c0_974 = arith.constant 0 : index
    %c0_975 = arith.constant 0 : index
    %c0_976 = arith.constant 0 : index
    %1119 = vector.load %arg9[%c0_974, %c0_975, %c0_976] : memref<4x16x16xf32, #tpu.memory_space<vmem>>, vector<1x16x16xf32>
    %1120 = vector.shape_cast %1119 : vector<1x16x16xf32> to vector<16x16xf32>
    %1121 = vector.broadcast %1116 : f32 to vector<16x16xf32>
    %1122 = arith.mulf %1121, %1118 : vector<16x16xf32>
    %1123 = arith.addf %1120, %1122 : vector<16x16xf32>
    %c0_977 = arith.constant 0 : index
    %c0_978 = arith.constant 0 : index
    %c0_979 = arith.constant 0 : index
    %1124 = vector.load %arg9[%c0_977, %c0_978, %c0_979] : memref<4x16x16xf32, #tpu.memory_space<vmem>>, vector<1x16x16xf32>
    %1125 = vector.shape_cast %1124 : vector<1x16x16xf32> to vector<16x16xf32>
    %1126 = vector.shape_cast %1123 : vector<16x16xf32> to vector<1x16x16xf32>
    tpu.vector_store %arg9[%c0_977, %c0_978, %c0_979], %1126 {strides = array<i32>} : memref<4x16x16xf32, #tpu.memory_space<vmem>>, vector<1x16x16xf32>,
    %c1_i32_980 = arith.constant 1 : i32
    %1127 = arith.addi %1112, %c1_i32_980 : i32
    %1128 = arith.index_cast %1127 : i32 to index
    %1129 = memref.load %arg4[%1128] : memref<12xi32, #tpu.memory_space<smem>>
    %1130 = arith.sitofp %1129 : i32 to f32
    %c0_981 = arith.constant 0 : index
    %c0_982 = arith.constant 0 : index
    %c1_983 = arith.constant 1 : index
    %c1_984 = arith.constant 1 : index
    %c1_985 = arith.constant 1 : index
    %1131 = vector.load %arg5[%c0_981, %c0_982, %c1_983, %c1_984, %c1_985] : memref<1x4x3x18x18xf32, #tpu.memory_space<vmem>>, vector<1x1x1x16x16xf32>
    %1132 = vector.shape_cast %1131 : vector<1x1x1x16x16xf32> to vector<16x16xf32>
    %c0_986 = arith.constant 0 : index
    %c0_987 = arith.constant 0 : index
    %c0_988 = arith.constant 0 : index
    %1133 = vector.load %arg9[%c0_986, %c0_987, %c0_988] : memref<4x16x16xf32, #tpu.memory_space<vmem>>, vector<1x16x16xf32>
    %1134 = vector.shape_cast %1133 : vector<1x16x16xf32> to vector<16x16xf32>
    %1135 = vector.broadcast %1130 : f32 to vector<16x16xf32>
    %1136 = arith.mulf %1135, %1132 : vector<16x16xf32>
    %1137 = arith.addf %1134, %1136 : vector<16x16xf32>
    %c0_989 = arith.constant 0 : index
    %c0_990 = arith.constant 0 : index
    %c0_991 = arith.constant 0 : index
    %1138 = vector.load %arg9[%c0_989, %c0_990, %c0_991] : memref<4x16x16xf32, #tpu.memory_space<vmem>>, vector<1x16x16xf32>
    %1139 = vector.shape_cast %1138 : vector<1x16x16xf32> to vector<16x16xf32>
    %1140 = vector.shape_cast %1137 : vector<16x16xf32> to vector<1x16x16xf32>
    tpu.vector_store %arg9[%c0_989, %c0_990, %c0_991], %1140 {strides = array<i32>} : memref<4x16x16xf32, #tpu.memory_space<vmem>>, vector<1x16x16xf32>,
    %c2_i32_992 = arith.constant 2 : i32
    %1141 = arith.addi %1112, %c2_i32_992 : i32
    %1142 = arith.index_cast %1141 : i32 to index
    %1143 = memref.load %arg4[%1142] : memref<12xi32, #tpu.memory_space<smem>>
    %1144 = arith.sitofp %1143 : i32 to f32
    %c0_993 = arith.constant 0 : index
    %c0_994 = arith.constant 0 : index
    %c2_995 = arith.constant 2 : index
    %c1_996 = arith.constant 1 : index
    %c1_997 = arith.constant 1 : index
    %1145 = vector.load %arg5[%c0_993, %c0_994, %c2_995, %c1_996, %c1_997] : memref<1x4x3x18x18xf32, #tpu.memory_space<vmem>>, vector<1x1x1x16x16xf32>
    %1146 = vector.shape_cast %1145 : vector<1x1x1x16x16xf32> to vector<16x16xf32>
    %c0_998 = arith.constant 0 : index
    %c0_999 = arith.constant 0 : index
    %c0_1000 = arith.constant 0 : index
    %1147 = vector.load %arg9[%c0_998, %c0_999, %c0_1000] : memref<4x16x16xf32, #tpu.memory_space<vmem>>, vector<1x16x16xf32>
    %1148 = vector.shape_cast %1147 : vector<1x16x16xf32> to vector<16x16xf32>
    %1149 = vector.broadcast %1144 : f32 to vector<16x16xf32>
    %1150 = arith.mulf %1149, %1146 : vector<16x16xf32>
    %1151 = arith.addf %1148, %1150 : vector<16x16xf32>
    %c0_1001 = arith.constant 0 : index
    %c0_1002 = arith.constant 0 : index
    %c0_1003 = arith.constant 0 : index
    %1152 = vector.load %arg9[%c0_1001, %c0_1002, %c0_1003] : memref<4x16x16xf32, #tpu.memory_space<vmem>>, vector<1x16x16xf32>
    %1153 = vector.shape_cast %1152 : vector<1x16x16xf32> to vector<16x16xf32>
    %1154 = vector.shape_cast %1151 : vector<16x16xf32> to vector<1x16x16xf32>
    tpu.vector_store %arg9[%c0_1001, %c0_1002, %c0_1003], %1154 {strides = array<i32>} : memref<4x16x16xf32, #tpu.memory_space<vmem>>, vector<1x16x16xf32>,
    %c1_i32_1004 = arith.constant 1 : i32
    %1155 = arith.addi %0, %c1_i32_1004 : i32
    %c3_i32_1005 = arith.constant 3 : i32
    %1156 = arith.muli %1155, %c3_i32_1005 : i32
    %c0_i32_1006 = arith.constant 0 : i32
    %1157 = arith.addi %1156, %c0_i32_1006 : i32
    %1158 = arith.index_cast %1157 : i32 to index
    %1159 = memref.load %arg4[%1158] : memref<12xi32, #tpu.memory_space<smem>>
    %1160 = arith.sitofp %1159 : i32 to f32
    %c0_1007 = arith.constant 0 : index
    %c1_1008 = arith.constant 1 : index
    %c0_1009 = arith.constant 0 : index
    %c1_1010 = arith.constant 1 : index
    %c1_1011 = arith.constant 1 : index
    %1161 = vector.load %arg5[%c0_1007, %c1_1008, %c0_1009, %c1_1010, %c1_1011] : memref<1x4x3x18x18xf32, #tpu.memory_space<vmem>>, vector<1x1x1x16x16xf32>
    %1162 = vector.shape_cast %1161 : vector<1x1x1x16x16xf32> to vector<16x16xf32>
    %c1_1012 = arith.constant 1 : index
    %c0_1013 = arith.constant 0 : index
    %c0_1014 = arith.constant 0 : index
    %1163 = vector.load %arg9[%c1_1012, %c0_1013, %c0_1014] : memref<4x16x16xf32, #tpu.memory_space<vmem>>, vector<1x16x16xf32>
    %1164 = vector.shape_cast %1163 : vector<1x16x16xf32> to vector<16x16xf32>
    %1165 = vector.broadcast %1160 : f32 to vector<16x16xf32>
    %1166 = arith.mulf %1165, %1162 : vector<16x16xf32>
    %1167 = arith.addf %1164, %1166 : vector<16x16xf32>
    %c1_1015 = arith.constant 1 : index
    %c0_1016 = arith.constant 0 : index
    %c0_1017 = arith.constant 0 : index
    %1168 = vector.load %arg9[%c1_1015, %c0_1016, %c0_1017] : memref<4x16x16xf32, #tpu.memory_space<vmem>>, vector<1x16x16xf32>
    %1169 = vector.shape_cast %1168 : vector<1x16x16xf32> to vector<16x16xf32>
    %1170 = vector.shape_cast %1167 : vector<16x16xf32> to vector<1x16x16xf32>
    tpu.vector_store %arg9[%c1_1015, %c0_1016, %c0_1017], %1170 {strides = array<i32>} : memref<4x16x16xf32, #tpu.memory_space<vmem>>, vector<1x16x16xf32>,
    %c1_i32_1018 = arith.constant 1 : i32
    %1171 = arith.addi %1156, %c1_i32_1018 : i32
    %1172 = arith.index_cast %1171 : i32 to index
    %1173 = memref.load %arg4[%1172] : memref<12xi32, #tpu.memory_space<smem>>
    %1174 = arith.sitofp %1173 : i32 to f32
    %c0_1019 = arith.constant 0 : index
    %c1_1020 = arith.constant 1 : index
    %c1_1021 = arith.constant 1 : index
    %c1_1022 = arith.constant 1 : index
    %c1_1023 = arith.constant 1 : index
    %1175 = vector.load %arg5[%c0_1019, %c1_1020, %c1_1021, %c1_1022, %c1_1023] : memref<1x4x3x18x18xf32, #tpu.memory_space<vmem>>, vector<1x1x1x16x16xf32>
    %1176 = vector.shape_cast %1175 : vector<1x1x1x16x16xf32> to vector<16x16xf32>
    %c1_1024 = arith.constant 1 : index
    %c0_1025 = arith.constant 0 : index
    %c0_1026 = arith.constant 0 : index
    %1177 = vector.load %arg9[%c1_1024, %c0_1025, %c0_1026] : memref<4x16x16xf32, #tpu.memory_space<vmem>>, vector<1x16x16xf32>
    %1178 = vector.shape_cast %1177 : vector<1x16x16xf32> to vector<16x16xf32>
    %1179 = vector.broadcast %1174 : f32 to vector<16x16xf32>
    %1180 = arith.mulf %1179, %1176 : vector<16x16xf32>
    %1181 = arith.addf %1178, %1180 : vector<16x16xf32>
    %c1_1027 = arith.constant 1 : index
    %c0_1028 = arith.constant 0 : index
    %c0_1029 = arith.constant 0 : index
    %1182 = vector.load %arg9[%c1_1027, %c0_1028, %c0_1029] : memref<4x16x16xf32, #tpu.memory_space<vmem>>, vector<1x16x16xf32>
    %1183 = vector.shape_cast %1182 : vector<1x16x16xf32> to vector<16x16xf32>
    %1184 = vector.shape_cast %1181 : vector<16x16xf32> to vector<1x16x16xf32>
    tpu.vector_store %arg9[%c1_1027, %c0_1028, %c0_1029], %1184 {strides = array<i32>} : memref<4x16x16xf32, #tpu.memory_space<vmem>>, vector<1x16x16xf32>,
    %c2_i32_1030 = arith.constant 2 : i32
    %1185 = arith.addi %1156, %c2_i32_1030 : i32
    %1186 = arith.index_cast %1185 : i32 to index
    %1187 = memref.load %arg4[%1186] : memref<12xi32, #tpu.memory_space<smem>>
    %1188 = arith.sitofp %1187 : i32 to f32
    %c0_1031 = arith.constant 0 : index
    %c1_1032 = arith.constant 1 : index
    %c2_1033 = arith.constant 2 : index
    %c1_1034 = arith.constant 1 : index
    %c1_1035 = arith.constant 1 : index
    %1189 = vector.load %arg5[%c0_1031, %c1_1032, %c2_1033, %c1_1034, %c1_1035] : memref<1x4x3x18x18xf32, #tpu.memory_space<vmem>>, vector<1x1x1x16x16xf32>
    %1190 = vector.shape_cast %1189 : vector<1x1x1x16x16xf32> to vector<16x16xf32>
    %c1_1036 = arith.constant 1 : index
    %c0_1037 = arith.constant 0 : index
    %c0_1038 = arith.constant 0 : index
    %1191 = vector.load %arg9[%c1_1036, %c0_1037, %c0_1038] : memref<4x16x16xf32, #tpu.memory_space<vmem>>, vector<1x16x16xf32>
    %1192 = vector.shape_cast %1191 : vector<1x16x16xf32> to vector<16x16xf32>
    %1193 = vector.broadcast %1188 : f32 to vector<16x16xf32>
    %1194 = arith.mulf %1193, %1190 : vector<16x16xf32>
    %1195 = arith.addf %1192, %1194 : vector<16x16xf32>
    %c1_1039 = arith.constant 1 : index
    %c0_1040 = arith.constant 0 : index
    %c0_1041 = arith.constant 0 : index
    %1196 = vector.load %arg9[%c1_1039, %c0_1040, %c0_1041] : memref<4x16x16xf32, #tpu.memory_space<vmem>>, vector<1x16x16xf32>
    %1197 = vector.shape_cast %1196 : vector<1x16x16xf32> to vector<16x16xf32>
    %1198 = vector.shape_cast %1195 : vector<16x16xf32> to vector<1x16x16xf32>
    tpu.vector_store %arg9[%c1_1039, %c0_1040, %c0_1041], %1198 {strides = array<i32>} : memref<4x16x16xf32, #tpu.memory_space<vmem>>, vector<1x16x16xf32>,
    %c2_i32_1042 = arith.constant 2 : i32
    %1199 = arith.addi %0, %c2_i32_1042 : i32
    %c3_i32_1043 = arith.constant 3 : i32
    %1200 = arith.muli %1199, %c3_i32_1043 : i32
    %c0_i32_1044 = arith.constant 0 : i32
    %1201 = arith.addi %1200, %c0_i32_1044 : i32
    %1202 = arith.index_cast %1201 : i32 to index
    %1203 = memref.load %arg4[%1202] : memref<12xi32, #tpu.memory_space<smem>>
    %1204 = arith.sitofp %1203 : i32 to f32
    %c0_1045 = arith.constant 0 : index
    %c2_1046 = arith.constant 2 : index
    %c0_1047 = arith.constant 0 : index
    %c1_1048 = arith.constant 1 : index
    %c1_1049 = arith.constant 1 : index
    %1205 = vector.load %arg5[%c0_1045, %c2_1046, %c0_1047, %c1_1048, %c1_1049] : memref<1x4x3x18x18xf32, #tpu.memory_space<vmem>>, vector<1x1x1x16x16xf32>
    %1206 = vector.shape_cast %1205 : vector<1x1x1x16x16xf32> to vector<16x16xf32>
    %c2_1050 = arith.constant 2 : index
    %c0_1051 = arith.constant 0 : index
    %c0_1052 = arith.constant 0 : index
    %1207 = vector.load %arg9[%c2_1050, %c0_1051, %c0_1052] : memref<4x16x16xf32, #tpu.memory_space<vmem>>, vector<1x16x16xf32>
    %1208 = vector.shape_cast %1207 : vector<1x16x16xf32> to vector<16x16xf32>
    %1209 = vector.broadcast %1204 : f32 to vector<16x16xf32>
    %1210 = arith.mulf %1209, %1206 : vector<16x16xf32>
    %1211 = arith.addf %1208, %1210 : vector<16x16xf32>
    %c2_1053 = arith.constant 2 : index
    %c0_1054 = arith.constant 0 : index
    %c0_1055 = arith.constant 0 : index
    %1212 = vector.load %arg9[%c2_1053, %c0_1054, %c0_1055] : memref<4x16x16xf32, #tpu.memory_space<vmem>>, vector<1x16x16xf32>
    %1213 = vector.shape_cast %1212 : vector<1x16x16xf32> to vector<16x16xf32>
    %1214 = vector.shape_cast %1211 : vector<16x16xf32> to vector<1x16x16xf32>
    tpu.vector_store %arg9[%c2_1053, %c0_1054, %c0_1055], %1214 {strides = array<i32>} : memref<4x16x16xf32, #tpu.memory_space<vmem>>, vector<1x16x16xf32>,
    %c1_i32_1056 = arith.constant 1 : i32
    %1215 = arith.addi %1200, %c1_i32_1056 : i32
    %1216 = arith.index_cast %1215 : i32 to index
    %1217 = memref.load %arg4[%1216] : memref<12xi32, #tpu.memory_space<smem>>
    %1218 = arith.sitofp %1217 : i32 to f32
    %c0_1057 = arith.constant 0 : index
    %c2_1058 = arith.constant 2 : index
    %c1_1059 = arith.constant 1 : index
    %c1_1060 = arith.constant 1 : index
    %c1_1061 = arith.constant 1 : index
    %1219 = vector.load %arg5[%c0_1057, %c2_1058, %c1_1059, %c1_1060, %c1_1061] : memref<1x4x3x18x18xf32, #tpu.memory_space<vmem>>, vector<1x1x1x16x16xf32>
    %1220 = vector.shape_cast %1219 : vector<1x1x1x16x16xf32> to vector<16x16xf32>
    %c2_1062 = arith.constant 2 : index
    %c0_1063 = arith.constant 0 : index
    %c0_1064 = arith.constant 0 : index
    %1221 = vector.load %arg9[%c2_1062, %c0_1063, %c0_1064] : memref<4x16x16xf32, #tpu.memory_space<vmem>>, vector<1x16x16xf32>
    %1222 = vector.shape_cast %1221 : vector<1x16x16xf32> to vector<16x16xf32>
    %1223 = vector.broadcast %1218 : f32 to vector<16x16xf32>
    %1224 = arith.mulf %1223, %1220 : vector<16x16xf32>
    %1225 = arith.addf %1222, %1224 : vector<16x16xf32>
    %c2_1065 = arith.constant 2 : index
    %c0_1066 = arith.constant 0 : index
    %c0_1067 = arith.constant 0 : index
    %1226 = vector.load %arg9[%c2_1065, %c0_1066, %c0_1067] : memref<4x16x16xf32, #tpu.memory_space<vmem>>, vector<1x16x16xf32>
    %1227 = vector.shape_cast %1226 : vector<1x16x16xf32> to vector<16x16xf32>
    %1228 = vector.shape_cast %1225 : vector<16x16xf32> to vector<1x16x16xf32>
    tpu.vector_store %arg9[%c2_1065, %c0_1066, %c0_1067], %1228 {strides = array<i32>} : memref<4x16x16xf32, #tpu.memory_space<vmem>>, vector<1x16x16xf32>,
    %c2_i32_1068 = arith.constant 2 : i32
    %1229 = arith.addi %1200, %c2_i32_1068 : i32
    %1230 = arith.index_cast %1229 : i32 to index
    %1231 = memref.load %arg4[%1230] : memref<12xi32, #tpu.memory_space<smem>>
    %1232 = arith.sitofp %1231 : i32 to f32
    %c0_1069 = arith.constant 0 : index
    %c2_1070 = arith.constant 2 : index
    %c2_1071 = arith.constant 2 : index
    %c1_1072 = arith.constant 1 : index
    %c1_1073 = arith.constant 1 : index
    %1233 = vector.load %arg5[%c0_1069, %c2_1070, %c2_1071, %c1_1072, %c1_1073] : memref<1x4x3x18x18xf32, #tpu.memory_space<vmem>>, vector<1x1x1x16x16xf32>
    %1234 = vector.shape_cast %1233 : vector<1x1x1x16x16xf32> to vector<16x16xf32>
    %c2_1074 = arith.constant 2 : index
    %c0_1075 = arith.constant 0 : index
    %c0_1076 = arith.constant 0 : index
    %1235 = vector.load %arg9[%c2_1074, %c0_1075, %c0_1076] : memref<4x16x16xf32, #tpu.memory_space<vmem>>, vector<1x16x16xf32>
    %1236 = vector.shape_cast %1235 : vector<1x16x16xf32> to vector<16x16xf32>
    %1237 = vector.broadcast %1232 : f32 to vector<16x16xf32>
    %1238 = arith.mulf %1237, %1234 : vector<16x16xf32>
    %1239 = arith.addf %1236, %1238 : vector<16x16xf32>
    %c2_1077 = arith.constant 2 : index
    %c0_1078 = arith.constant 0 : index
    %c0_1079 = arith.constant 0 : index
    %1240 = vector.load %arg9[%c2_1077, %c0_1078, %c0_1079] : memref<4x16x16xf32, #tpu.memory_space<vmem>>, vector<1x16x16xf32>
    %1241 = vector.shape_cast %1240 : vector<1x16x16xf32> to vector<16x16xf32>
    %1242 = vector.shape_cast %1239 : vector<16x16xf32> to vector<1x16x16xf32>
    tpu.vector_store %arg9[%c2_1077, %c0_1078, %c0_1079], %1242 {strides = array<i32>} : memref<4x16x16xf32, #tpu.memory_space<vmem>>, vector<1x16x16xf32>,
    %c3_i32_1080 = arith.constant 3 : i32
    %1243 = arith.addi %0, %c3_i32_1080 : i32
    %c3_i32_1081 = arith.constant 3 : i32
    %1244 = arith.muli %1243, %c3_i32_1081 : i32
    %c0_i32_1082 = arith.constant 0 : i32
    %1245 = arith.addi %1244, %c0_i32_1082 : i32
    %1246 = arith.index_cast %1245 : i32 to index
    %1247 = memref.load %arg4[%1246] : memref<12xi32, #tpu.memory_space<smem>>
    %1248 = arith.sitofp %1247 : i32 to f32
    %c0_1083 = arith.constant 0 : index
    %c3_1084 = arith.constant 3 : index
    %c0_1085 = arith.constant 0 : index
    %c1_1086 = arith.constant 1 : index
    %c1_1087 = arith.constant 1 : index
    %1249 = vector.load %arg5[%c0_1083, %c3_1084, %c0_1085, %c1_1086, %c1_1087] : memref<1x4x3x18x18xf32, #tpu.memory_space<vmem>>, vector<1x1x1x16x16xf32>
    %1250 = vector.shape_cast %1249 : vector<1x1x1x16x16xf32> to vector<16x16xf32>
    %c3_1088 = arith.constant 3 : index
    %c0_1089 = arith.constant 0 : index
    %c0_1090 = arith.constant 0 : index
    %1251 = vector.load %arg9[%c3_1088, %c0_1089, %c0_1090] : memref<4x16x16xf32, #tpu.memory_space<vmem>>, vector<1x16x16xf32>
    %1252 = vector.shape_cast %1251 : vector<1x16x16xf32> to vector<16x16xf32>
    %1253 = vector.broadcast %1248 : f32 to vector<16x16xf32>
    %1254 = arith.mulf %1253, %1250 : vector<16x16xf32>
    %1255 = arith.addf %1252, %1254 : vector<16x16xf32>
    %c3_1091 = arith.constant 3 : index
    %c0_1092 = arith.constant 0 : index
    %c0_1093 = arith.constant 0 : index
    %1256 = vector.load %arg9[%c3_1091, %c0_1092, %c0_1093] : memref<4x16x16xf32, #tpu.memory_space<vmem>>, vector<1x16x16xf32>
    %1257 = vector.shape_cast %1256 : vector<1x16x16xf32> to vector<16x16xf32>
    %1258 = vector.shape_cast %1255 : vector<16x16xf32> to vector<1x16x16xf32>
    tpu.vector_store %arg9[%c3_1091, %c0_1092, %c0_1093], %1258 {strides = array<i32>} : memref<4x16x16xf32, #tpu.memory_space<vmem>>, vector<1x16x16xf32>,
    %c1_i32_1094 = arith.constant 1 : i32
    %1259 = arith.addi %1244, %c1_i32_1094 : i32
    %1260 = arith.index_cast %1259 : i32 to index
    %1261 = memref.load %arg4[%1260] : memref<12xi32, #tpu.memory_space<smem>>
    %1262 = arith.sitofp %1261 : i32 to f32
    %c0_1095 = arith.constant 0 : index
    %c3_1096 = arith.constant 3 : index
    %c1_1097 = arith.constant 1 : index
    %c1_1098 = arith.constant 1 : index
    %c1_1099 = arith.constant 1 : index
    %1263 = vector.load %arg5[%c0_1095, %c3_1096, %c1_1097, %c1_1098, %c1_1099] : memref<1x4x3x18x18xf32, #tpu.memory_space<vmem>>, vector<1x1x1x16x16xf32>
    %1264 = vector.shape_cast %1263 : vector<1x1x1x16x16xf32> to vector<16x16xf32>
    %c3_1100 = arith.constant 3 : index
    %c0_1101 = arith.constant 0 : index
    %c0_1102 = arith.constant 0 : index
    %1265 = vector.load %arg9[%c3_1100, %c0_1101, %c0_1102] : memref<4x16x16xf32, #tpu.memory_space<vmem>>, vector<1x16x16xf32>
    %1266 = vector.shape_cast %1265 : vector<1x16x16xf32> to vector<16x16xf32>
    %1267 = vector.broadcast %1262 : f32 to vector<16x16xf32>
    %1268 = arith.mulf %1267, %1264 : vector<16x16xf32>
    %1269 = arith.addf %1266, %1268 : vector<16x16xf32>
    %c3_1103 = arith.constant 3 : index
    %c0_1104 = arith.constant 0 : index
    %c0_1105 = arith.constant 0 : index
    %1270 = vector.load %arg9[%c3_1103, %c0_1104, %c0_1105] : memref<4x16x16xf32, #tpu.memory_space<vmem>>, vector<1x16x16xf32>
    %1271 = vector.shape_cast %1270 : vector<1x16x16xf32> to vector<16x16xf32>
    %1272 = vector.shape_cast %1269 : vector<16x16xf32> to vector<1x16x16xf32>
    tpu.vector_store %arg9[%c3_1103, %c0_1104, %c0_1105], %1272 {strides = array<i32>} : memref<4x16x16xf32, #tpu.memory_space<vmem>>, vector<1x16x16xf32>,
    %c2_i32_1106 = arith.constant 2 : i32
    %1273 = arith.addi %1244, %c2_i32_1106 : i32
    %1274 = arith.index_cast %1273 : i32 to index
    %1275 = memref.load %arg4[%1274] : memref<12xi32, #tpu.memory_space<smem>>
    %1276 = arith.sitofp %1275 : i32 to f32
    %c0_1107 = arith.constant 0 : index
    %c3_1108 = arith.constant 3 : index
    %c2_1109 = arith.constant 2 : index
    %c1_1110 = arith.constant 1 : index
    %c1_1111 = arith.constant 1 : index
    %1277 = vector.load %arg5[%c0_1107, %c3_1108, %c2_1109, %c1_1110, %c1_1111] : memref<1x4x3x18x18xf32, #tpu.memory_space<vmem>>, vector<1x1x1x16x16xf32>
    %1278 = vector.shape_cast %1277 : vector<1x1x1x16x16xf32> to vector<16x16xf32>
    %c3_1112 = arith.constant 3 : index
    %c0_1113 = arith.constant 0 : index
    %c0_1114 = arith.constant 0 : index
    %1279 = vector.load %arg9[%c3_1112, %c0_1113, %c0_1114] : memref<4x16x16xf32, #tpu.memory_space<vmem>>, vector<1x16x16xf32>
    %1280 = vector.shape_cast %1279 : vector<1x16x16xf32> to vector<16x16xf32>
    %1281 = vector.broadcast %1276 : f32 to vector<16x16xf32>
    %1282 = arith.mulf %1281, %1278 : vector<16x16xf32>
    %1283 = arith.addf %1280, %1282 : vector<16x16xf32>
    %c3_1115 = arith.constant 3 : index
    %c0_1116 = arith.constant 0 : index
    %c0_1117 = arith.constant 0 : index
    %1284 = vector.load %arg9[%c3_1115, %c0_1116, %c0_1117] : memref<4x16x16xf32, #tpu.memory_space<vmem>>, vector<1x16x16xf32>
    %1285 = vector.shape_cast %1284 : vector<1x16x16xf32> to vector<16x16xf32>
    %1286 = vector.shape_cast %1283 : vector<16x16xf32> to vector<1x16x16xf32>
    tpu.vector_store %arg9[%c3_1115, %c0_1116, %c0_1117], %1286 {strides = array<i32>} : memref<4x16x16xf32, #tpu.memory_space<vmem>>, vector<1x16x16xf32>,
    %c0_1118 = arith.constant 0 : index
    %c0_1119 = arith.constant 0 : index
    %c0_1120 = arith.constant 0 : index
    %1287 = vector.load %arg9[%c0_1118, %c0_1119, %c0_1120] : memref<4x16x16xf32, #tpu.memory_space<vmem>>, vector<4x16x16xf32>
    %c0_1121 = arith.constant 0 : index
    %c0_1122 = arith.constant 0 : index
    %c0_1123 = arith.constant 0 : index
    %c0_1124 = arith.constant 0 : index
    %1288 = vector.load %arg8[%c0_1121, %c0_1122, %c0_1123, %c0_1124] : memref<1x4x16x16xf32, #tpu.memory_space<vmem>>, vector<1x4x16x16xf32>
    %1289 = vector.shape_cast %1288 : vector<1x4x16x16xf32> to vector<4x16x16xf32>
    %1290 = vector.shape_cast %1287 : vector<4x16x16xf32> to vector<1x4x16x16xf32>
    tpu.vector_store %arg8[%c0_1121, %c0_1122, %c0_1123, %c0_1124], %1290 {strides = array<i32>} : memref<1x4x16x16xf32, #tpu.memory_space<vmem>>, vector<1x4x16x16xf32>,
    return
  }
  func.func @transform_0(%arg0: i32, %arg1: i32, %arg2: memref<36xi32, #tpu.memory_space<smem>>, %arg3: memref<36xi32, #tpu.memory_space<smem>>, %arg4: memref<12xi32, #tpu.memory_space<smem>>) -> (i32, i32, i32, i32, i32) {
    %c0_i32 = arith.constant 0 : i32
    %c0_i32_0 = arith.constant 0 : i32
    %c0_i32_1 = arith.constant 0 : i32
    %c0_i32_2 = arith.constant 0 : i32
    return %arg0, %arg1, %c0_i32, %c0_i32_0, %c0_i32_1 : i32, i32, i32, i32, i32
  }
  func.func @transform_1(%arg0: i32, %arg1: i32, %arg2: memref<36xi32, #tpu.memory_space<smem>>, %arg3: memref<36xi32, #tpu.memory_space<smem>>, %arg4: memref<12xi32, #tpu.memory_space<smem>>) -> (i32, i32, i32, i32) {
    %c0_i32 = arith.constant 0 : i32
    %c0_i32_0 = arith.constant 0 : i32
    %c0_i32_1 = arith.constant 0 : i32
    return %arg0, %arg1, %c0_i32, %c0_i32_0 : i32, i32, i32, i32
  }
  func.func @transform_2(%arg0: i32, %arg1: i32, %arg2: memref<36xi32, #tpu.memory_space<smem>>, %arg3: memref<36xi32, #tpu.memory_space<smem>>, %arg4: memref<12xi32, #tpu.memory_space<smem>>) -> (i32, i32, i32, i32) {
    %c0_i32 = arith.constant 0 : i32
    %c0_i32_0 = arith.constant 0 : i32
    %c0_i32_1 = arith.constant 0 : i32
    return %arg0, %arg1, %c0_i32, %c0_i32_0 : i32, i32, i32, i32
  }
  func.func @transform_3(%arg0: i32, %arg1: i32, %arg2: memref<36xi32, #tpu.memory_space<smem>>, %arg3: memref<36xi32, #tpu.memory_space<smem>>, %arg4: memref<12xi32, #tpu.memory_space<smem>>) -> (i32, i32, i32, i32) {
    %c0_i32 = arith.constant 0 : i32
    %c0_i32_0 = arith.constant 0 : i32
    %c0_i32_1 = arith.constant 0 : i32
    return %arg0, %arg1, %c0_i32, %c0_i32_0 : i32, i32, i32, i32
  }
}

</mosaic_0001>

<bundles_post_ra>
// kernel: tpu_custom_call.1
= control target key start
LH: loop header
LB: loop body
LE: loop exit
PB: predicated region body
PF: predicated region fallthrough
CT: control target
= control target key end

     0   :  { %s4091_s0 = inlined_call_operand.vmem [shape: s32[36], index: 0, kind: input, shape index: {}]   ;;  %s4092_s3 = inlined_call_operand.vmem [shape: f32[2,4,3,18,18], index: 3, kind: input, shape index: {}]   ;;  %s4093_s4 = inlined_call_operand.hbm [shape: f32[2,4,16,16], index: 4, kind: output, shape index: {0}]   ;;  %s4094_s5 = inlined_call_operand.hbm [shape: f32[2,4,16,16], index: 5, kind: output, shape index: {1}]   ;;  %s4095_s6 = inlined_call_operand.hbm [shape: f32[2,4,16,16], index: 6, kind: output, shape index: {2}]   ;;  %s4096_s1 = inlined_call_operand.vmem [shape: s32[36], index: 1, kind: input, shape index: {}]   ;;  %s4097_s2 = inlined_call_operand.vmem [shape: s32[12], index: 2, kind: input, shape index: {}]  }
   0x1   :  { %s12_s23 = sshll.u32 %s4091_s0, 4  ;;  %s16_s26 = sshll.u32 %s4096_s1, 4  ;;  %s13_s23 = int_to_ptr.vmem [resolvable:$true] %s12_s23  ;;  %s17_s26 = int_to_ptr.vmem [resolvable:$true] %s16_s26 }
   0x2   :  { %s2697_s27 = scalar_lea.vmem %s13_s23, 16  ;;  %p2702_p1 = scmp.lt.s32.totalorder %s13_s23, %s13_s23 }
   0x3   :  { %p2698_p0 = scmp.ne.s32.totalorder %s13_s23, %s2697_s27  ;;  %p2703_p2 = scmp.lt.s32.totalorder %s2697_s27, %s2697_s27 }
   0x5   :  { %p2704_p3 = por %p2703_p2, %p2702_p1 }
   0x7   :  { %p2705_p4 = pnand %p2704_p3, %p2698_p0 }
   0x9   :  { %2708 = shalt.err (!%p2705_p4)  }
   0xa   :  { %s2875_s28 = smov [#allocation4]   ;;  %s2709_s29 = scalar_lea.vmem %s17_s26, 16 }
   0xb   :  { %15 = dma.vmem_to_smem %s13_s23, 16, %s2875_s28, [#allocation3] }
   0xc   :  { %p2710_p5 = scmp.ne.s32.totalorder %s17_s26, %s2709_s29  ;;  %p2714_p6 = scmp.lt.s32.totalorder %s17_s26, %s17_s26 }
   0xd   :  { %p2715_p7 = scmp.lt.s32.totalorder %s2709_s29, %s2709_s29 }
   0xf   :  { %p2716_p8 = por %p2715_p7, %p2714_p6 }
  0x11   :  { %p2717_p9 = pnand %p2716_p8, %p2710_p5 }
  0x13   :  { %2720 = shalt.err (!%p2717_p9)  }
  0x14   :  { %s2876_s0 = smov [#allocation5]   ;;  %s20_s7 = sshll.u32 %s4097_s2, 4  ;;  %s21_s7 = int_to_ptr.vmem [resolvable:$true] %s20_s7 }
  0x15   :  { %19 = dma.vmem_to_smem %s17_s26, 16, %s2876_s0, [#allocation3] }
  0x16   :  { %s2721_s8 = scalar_lea.vmem %s21_s7, 16  ;;  %p2726_p11 = scmp.lt.s32.totalorder %s21_s7, %s21_s7 }
  0x17   :  { %p2722_p10 = scmp.ne.s32.totalorder %s21_s7, %s2721_s8  ;;  %p2727_p12 = scmp.lt.s32.totalorder %s2721_s8, %s2721_s8 }
  0x19   :  { %p2728_p13 = por %p2727_p12, %p2726_p11 }
  0x1b   :  { %p2729_p0 = pnand %p2728_p13, %p2722_p10 }
  0x1d   :  { %2732 = shalt.err (!%p2729_p0)  }
  0x1e   :  { %s2877_s9 = smov [#allocation6]  }
  0x1f   :  { %23 = dma.vmem_to_smem %s21_s7, 16, %s2877_s9, [#allocation3] }
  0x20   :  { %2841 = dma.done.wait [#allocation3], 48 }
  0x21   :  { %2842 = vsyncadd [#allocation3], 4294967248 }
  0x22   :  { %25 = sfence }
  0x23   :  { %26 = vsyncpa [#allocation8], 0 }
  0x24   :  { %28 = vsyncpa [#allocation8 + $0x1], 0 }
  0x25   :  { %29 = vsyncpa [#allocation10], 0 }
  0x26   :  { %31 = vsyncpa [#allocation10 + $0x1], 0  ;;  %s2931_s10 = smov 0   ;;  %s2933_s2 = smov 0  }
  0x27   :  { %s2935_s11 = smov 0   ;;  %s2937_s12 = smov 0  }
  0x28   :  { %s2939_s13 = smov 0   ;;  %s2941_s14 = smov 0  }
  0x29 LB: > { %s2364_s15 = sadd.s32 4294967295, %s2873_s14   ;;  %s2365_s16 = sadd.s32 4294967294, %s2873_s14   ;;  %s2873_s14 = sphi %s2941_s14, %s37_s14   ;;  %s2869_s13 = sphi %s2939_s13, %s4104_s13   ;;  %s2865_s12 = sphi %s2937_s12, %s4103_s12   ;;  %s2861_s11 = sphi %s2935_s11, %s4102_s11   ;;  %s2857_s2 = sphi %s2933_s2, %s4101_s2   ;;  %s2853_s10 = sphi %s2931_s10, %s4100_s10  }
  0x2a   : > { %s49_s17 = sadd.s32 1, %s2869_s13  ;;  %s86_s18 = sadd.s32 1, %s2861_s11 }
  0x2b   : > { %p51_p1 = scmp.ge.s32.totalorder %s49_s17, 2  ;;  %p96_p2 = scmp.ne.s32.totalorder %s2861_s11, %s2857_s2 }
  0x2c   : > { %p97_p3 = scmp.eq.s32.totalorder %s2364_s15, 1  ;;  %p102_p4 = scmp.ne.s32.totalorder %s2857_s2, %s2853_s10 }
  0x2d   : > { %s4106_s17 = smov (%p51_p1, %s49_s17), 0  ;;  %p103_p6 = scmp.eq.s32.totalorder %s2365_s16, 1 }
  0x2e   : > { %p2973_p5 = por %p97_p3, %p96_p2  ;;  %s81_s20 = ssub.s32 %s2869_s13, %s4106_s17 }
  0x2f   : > { %p2368_p7 = scmp.ge.s32.totalorder %s2873_s14, 1  ;;  %p84_p8 = scmp.eq.s32.totalorder %s81_s20, 0 }
  0x30   : > { %p2982_p9 = por %p103_p6, %p102_p4  ;;  %p191_p10 = scmp.lt.s32.totalorder %s2873_s14, 3 }
  0x31   : > { %s2988_s22 = scalar_select %p84_p8, %s2861_s11, %s86_s18  }
  0x32   : > { %p192_p11 = pnand %p2368_p7, %p191_p10 }
  0x33   : > { %p231_p12 = scmp.lt.s32.totalorder (!%p192_p11), %s2865_s12, 1  ;;  %vm245_vm0 = vcmask (!%p192_p11), 130048   ;;  %s2373_s23 = sld [smem:[#allocation4 + $0x1]] (!%p192_p11)  ;;  %v2878_v0 = vmov (!%p192_p11), 0.0   ;;  %vm275_vm1 = vcmask (!%p192_p11), 128000   ;;  %vm1107_vm2 = vcmask (!%p192_p11), 130064  }
  0x34   : > { %195 = sbr.rel (%p192_p11) target bundleno = 561 (0x231), region = 24  ;;  %s255_s24 = sld [smem:[#allocation4]] (!%p192_p11)  ;;  %246 = vst.msk [vmem:[#allocation2] sm:$0xff] (!%p192_p11), %vm245_vm0, %v2878_v0  ;;  %247 = vst.msk [vmem:[#allocation2 + $0x8] sm:$0xff] (!%p192_p11), %vm245_vm0, %v2878_v0 }
  0x35   : > { %248 = vst.msk [vmem:[#allocation2 + $0x10] sm:$0xff] (!%p192_p11), %vm245_vm0, %v2878_v0  ;;  %249 = vst.msk [vmem:[#allocation2 + $0x18] sm:$0xff] (!%p192_p11), %vm245_vm0, %v2878_v0  ;;  %s2376_s26 = sld [smem:[#allocation4 + $0x2]] (!%p192_p11)  ;;  %s3008_s28 = sld [smem:[#allocation4 + $0x3]] (!%p192_p11) }
  0x36   : > { %250 = vst.msk [vmem:[#allocation2 + $0x20] sm:$0xff] (!%p192_p11), %vm245_vm0, %v2878_v0  ;;  %251 = vst.msk [vmem:[#allocation2 + $0x28] sm:$0xff] (!%p192_p11), %vm245_vm0, %v2878_v0  ;;  %s2380_s9 = sld [smem:[#allocation4 + $0x4]] (!%p192_p11)  ;;  %s2879_s18 = smov (!%p192_p11), 127  }
  0x37   : > { %252 = vst.msk [vmem:[#allocation2 + $0x30] sm:$0xff] (!%p192_p11), %vm245_vm0, %v2878_v0  ;;  %253 = vst.msk [vmem:[#allocation2 + $0x38] sm:$0xff] (!%p192_p11), %vm245_vm0, %v2878_v0  ;;  %s2390_s29 = sld [smem:[#allocation4 + $0x8]] (!%p192_p11) }
  0x39   : > { %s279_s30 = scvt.s32.f32 (!%p192_p11), %s2373_s23  ;;  %s2383_s23 = sld [smem:[#allocation4 + $0x5]] (!%p192_p11) }
  0x3a   : > { %s256_s7 = scvt.s32.f32 (!%p192_p11), %s255_s24 }
  0x3b   : > { %s232_s25 = scalar_select %p231_p12, %s2865_s12, 1  ;;  %v285_v4 = vstv %s279_s30 }
  0x3c   : > { %v261_v6 = vstv %s256_s7  ;;  %s302_s8 = scvt.s32.f32 %s2376_s26  ;;  %s325_s20 = scvt.s32.f32 %s3008_s28 }
  0x3d   : > { %s2622_s27 = smul.u32 288, %s232_s25  ;;  %s347_s24 = scvt.s32.f32 %s2380_s9 }
  0x3e   : > { %v308_v12 = vstv %s302_s8  ;;  %v330_v17 = vstv %s325_s20  ;;  %s2386_s25 = sld [smem:[#allocation4 + $0x6]]  ;;  %s2393_s30 = sld [smem:[#allocation4 + $0x9]] }
  0x3f   : > { %s3013_s1 = scalar_lea.vmem %s4092_s3, %s2622_s27  ;;  %v352_v22 = vstv %s347_s24  ;;  %s369_s26 = scvt.s32.f32 %s2383_s23 }
  0x40   : > { %v2374_v1 = vld [vmem:[%s3013_s1 + $0x18] sm:$0xff]  ;;  %v257_v2 = vld [vmem:[%s3013_s1] sm:$0xff]  ;;  %v258_v5 = vld [vmem:[%s3013_s1 + $0x8] sm:$0x3f]  ;;  %s2387_s27 = sld [smem:[#allocation4 + $0x7]]  ;;  %s435_s7 = scvt.s32.f32 %s2390_s29 }
  0x41   : > { %v2375_v3 = vld [vmem:[%s3013_s1 + $0x20] sm:$0x3f]  ;;  %v286_v7 = vmul.f32 %v2374_v1, %v285_v4  ;;  %v262_v8 = vmul.f32 %v261_v6, %v257_v2  ;;  %v263_v10 = vmul.f32 %v261_v6, %v258_v5  ;;  %v2378_v11 = vld [vmem:[%s3013_s1 + $0x38] sm:$0x3f]  ;;  %v2377_v13 = vld [vmem:[%s3013_s1 + $0x30] sm:$0xff]  ;;  %v374_v27 = vstv %s369_s26  ;;  %s2396_s8 = sld [smem:[#allocation4 + $0xa]] }
  0x42   : > { %v287_v9 = vmul.f32 %v2375_v3, %v285_v4  ;;  %v310_v14 = vmul.f32 %v2378_v11, %v308_v12  ;;  %v309_v15 = vmul.f32 %v2377_v13, %v308_v12  ;;  %v3027_v16 = vld [vmem:[%s3013_s1 + $0x9] sm:$0xff]  ;;  %v3030_v18 = vld [vmem:[%s3013_s1 + $0x1] sm:$0xff]  ;;  %v3040_v23 = vld [vmem:[%s3013_s1 + $0x19] sm:$0xff]  ;;  %v440_v42 = vstv %s435_s7  ;;  %s2399_s20 = sld [smem:[#allocation4 + $0xb]]  ;;  %s2402_s24 = sld [smem:[#allocation4 + $0xc]] }
  0x43   : > { %290 = vrot.lane.b32.xlu1 %v286_v7, %s2879_s18  ;;  %266 = vrot.lane.b32.xlu0 %v262_v8, %s2879_s18  ;;  %v332_v19 = vmul.f32 %v330_v17, %v3027_v16  ;;  %v331_v20 = vmul.f32 %v330_v17, %v3030_v18  ;;  %v3037_v21 = vld [vmem:[%s3013_s1 + $0x21] sm:$0xff]  ;;  %v353_v25 = vmul.f32 %v3040_v23, %v352_v22  ;;  %v3047_v26 = vld [vmem:[%s3013_s1 + $0x39] sm:$0xff]  ;;  %s2420_s26 = sld [smem:[#allocation4 + $0x12]]  ;;  %s3080_s29 = sld [smem:[#allocation4 + $0x13]] }
  0x44   : > { %v354_v24 = vmul.f32 %v3037_v21, %v352_v22  ;;  %v3050_v28 = vld [vmem:[%s3013_s1 + $0x31] sm:$0xff]  ;;  %s391_s28 = scvt.s32.f32 %s2386_s25  ;;  %v376_v29 = vmul.f32 %v3047_v26, %v374_v27  ;;  %v392_v33 = vld [vmem:[%s3013_s1 + $0x4] sm:$0xff]  ;;  %v2388_v38 = vld [vmem:[%s3013_s1 + $0x1c] sm:$0xff]  ;;  %s458_s9 = scvt.s32.f32 %s2393_s30 }
  0x45   : > { %v375_v30 = vmul.f32 %v3050_v28, %v374_v27  ;;  %v393_v31 = vld [vmem:[%s3013_s1 + $0xc] sm:$0x3f]  ;;  %v2389_v36 = vld [vmem:[%s3013_s1 + $0x24] sm:$0x3f]  ;;  %v2392_v41 = vld [vmem:[%s3013_s1 + $0x3c] sm:$0x3f] }
  0x46   : > { %v396_v32 = vstv %s391_s28  ;;  %s413_s0 = scvt.s32.f32 %s2387_s27  ;;  %v2391_v43 = vld [vmem:[%s3013_s1 + $0x34] sm:$0xff]  ;;  %v442_v44 = vmul.f32 %v2392_v41, %v440_v42  ;;  %v465_v47 = vstv %s458_s9  ;;  %v2394_v48 = vld [vmem:[%s3013_s1 + $0x48] sm:$0xff]  ;;  %s2447_s28 = sld [smem:[#allocation4 + $0x1b]] }
  0x47   : > { %292 = vrot.lane.b32.xlu1 %v287_v9, %s2879_s18  ;;  %268 = vrot.lane.b32.xlu0 %v263_v10, %s2879_s18  ;;  %v398_v34 = vmul.f32 %v396_v32, %v393_v31  ;;  %v397_v35 = vmul.f32 %v396_v32, %v392_v33  ;;  %v441_v45 = vmul.f32 %v2391_v43, %v440_v42  ;;  %v2395_v46 = vld [vmem:[%s3013_s1 + $0x50] sm:$0x3f]  ;;  %s482_s23 = scvt.s32.f32 %s2396_s8  ;;  %v2398_v51 = vld [vmem:[%s3013_s1 + $0x68] sm:$0x3f]  ;;  %s2405_s30 = sld [smem:[#allocation4 + $0xd]] }
  0x48   : > { %v418_v37 = vstv %s413_s0  ;;  %v467_v49 = vmul.f32 %v2395_v46, %v465_v47  ;;  %v466_v50 = vmul.f32 %v2394_v48, %v465_v47  ;;  %v2397_v53 = vld [vmem:[%s3013_s1 + $0x60] sm:$0xff]  ;;  %s505_s25 = scvt.s32.f32 %s2399_s20  ;;  %v2400_v58 = vld [vmem:[%s3013_s1 + $0x78] sm:$0xff]  ;;  %s528_s27 = scvt.s32.f32 %s2402_s24  ;;  %v3086_v63 = vld [vmem:[%s3013_s1 + $0x49] sm:$0xff] }
  0x49   : > { %v420_v39 = vmul.f32 %v2389_v36, %v418_v37  ;;  %v419_v40 = vmul.f32 %v2388_v38, %v418_v37  ;;  %v488_v52 = vstv %s482_s23  ;;  %v2401_v56 = vld [vmem:[%s3013_s1 + $0x80] sm:$0x3f]  ;;  %v3083_v61 = vld [vmem:[%s3013_s1 + $0x51] sm:$0xff]  ;;  %s661_s0 = scvt.s32.f32 %s2420_s26  ;;  %s2450_s8 = sld [smem:[#allocation4 + $0x1c]]  ;;  %v2424_v13 = vld [vmem:[%s3013_s1 + $0xa8] sm:$0xff] }
  0x4a   : > { %v490_v54 = vmul.f32 %v2398_v51, %v488_v52  ;;  %v489_v55 = vmul.f32 %v2397_v53, %v488_v52  ;;  %v511_v57 = vstv %s505_s25  ;;  %v533_v62 = vstv %s528_s27  ;;  %v2422_v3 = vld [vmem:[%s3013_s1 + $0x98] sm:$0x3f]  ;;  %v2421_v5 = vld [vmem:[%s3013_s1 + $0x90] sm:$0xff]  ;;  %s685_s9 = scvt.s32.f32 %s3080_s29  ;;  %s2426_s24 = sld [smem:[#allocation4 + $0x14]] }
  0x4b   : > { %315 = vrot.lane.b32.xlu1 %v310_v14, %s2879_s18  ;;  %313 = vrot.lane.b32.xlu0 %v309_v15, %s2879_s18  ;;  %v513_v59 = vmul.f32 %v2401_v56, %v511_v57  ;;  %v512_v60 = vmul.f32 %v2400_v58, %v511_v57  ;;  %v535_v1 = vmul.f32 %v3083_v61, %v533_v62  ;;  %v668_v4 = vstv %s661_s0  ;;  %v2449_v8 = vld [vmem:[%s3013_s1 + $0xe0] sm:$0x3f]  ;;  %s2453_s25 = sld [smem:[#allocation4 + $0x1d]]  ;;  %s2456_s0 = sld [smem:[#allocation4 + $0x1e]] }
  0x4c   : > { %v534_v2 = vmul.f32 %v3086_v63, %v533_v62  ;;  %s864_s7 = scvt.s32.f32 %s2447_s28  ;;  %v670_v6 = vmul.f32 %v2422_v3, %v668_v4  ;;  %v669_v7 = vmul.f32 %v2421_v5, %v668_v4  ;;  %v2448_v10 = vld [vmem:[%s3013_s1 + $0xd8] sm:$0xff]  ;;  %v691_v14 = vstv %s685_s9  ;;  %v3103_v15 = vld [vmem:[%s3013_s1 + $0x61] sm:$0xff]  ;;  %v2451_v22 = vld [vmem:[%s3013_s1 + $0xf0] sm:$0xff]  ;;  %s2429_s26 = sld [smem:[#allocation4 + $0x15]] }
  0x4d   : > { %s550_s20 = scvt.s32.f32 %s2405_s30  ;;  %v2452_v31 = vld [vmem:[%s3013_s1 + $0xf8] sm:$0x3f]  ;;  %s2408_s28 = sld [smem:[#allocation4 + $0xe]]  ;;  %v2427_v36 = vld [vmem:[%s3013_s1 + $0xc0] sm:$0xff]  ;;  %v2454_v41 = vld [vmem:[%s3013_s1 + $0x108] sm:$0xff] }
  0x4e   : > { %v871_v9 = vstv %s864_s7  ;;  %v3131_v46 = vld [vmem:[%s3013_s1 + $0x79] sm:$0xff]  ;;  %s2432_s9 = sld [smem:[#allocation4 + $0x16]]  ;;  %v3151_v56 = vld [vmem:[%s3013_s1 + $0xe1] sm:$0xff]  ;;  %v3161_v62 = vld [vmem:[%s3013_s1 + $0xa9] sm:$0xff] }
  0x4f   : > { %337 = vrot.lane.b32.xlu1 %v332_v19, %s2879_s18  ;;  %335 = vrot.lane.b32.xlu0 %v331_v20, %s2879_s18  ;;  %v873_v11 = vmul.f32 %v2449_v8, %v871_v9  ;;  %v872_v12 = vmul.f32 %v2448_v10, %v871_v9  ;;  %v555_v17 = vstv %s550_s20  ;;  %s888_s23 = scvt.s32.f32 %s2450_s8  ;;  %v692_v19 = vmul.f32 %v2424_v13, %v691_v14  ;;  %v3141_v52 = vld [vmem:[%s3013_s1 + $0x99] sm:$0xff]  ;;  %s2459_s20 = sld [smem:[#allocation4 + $0x1f]] }
  0x50   : > { %v556_v20 = vmul.f32 %v3103_v15, %v555_v17  ;;  %s708_s27 = scvt.s32.f32 %s2426_s24  ;;  %v3168_v3 = vld [vmem:[%s3013_s1 + $0xf9] sm:$0xff]  ;;  %v3171_v5 = vld [vmem:[%s3013_s1 + $0xf1] sm:$0xff]  ;;  %v3178_v8 = vld [vmem:[%s3013_s1 + $0xc1] sm:$0xff] }
  0x51   : > { %s911_s29 = scvt.s32.f32 %s2453_s25  ;;  %s934_s8 = scvt.s32.f32 %s2456_s0  ;;  %v2412_v10 = vld [vmem:[%s3013_s1 + $0x4c] sm:$0xff] }
  0x52   : > { %s731_s30 = scvt.s32.f32 %s2429_s26  ;;  %s2411_s25 = sld [smem:[#allocation4 + $0xf]] }
  0x53   : > { %359 = vrot.lane.b32.xlu1 %v354_v24, %s2879_s18  ;;  %357 = vrot.lane.b32.xlu0 %v353_v25, %s2879_s18  ;;  %v894_v24 = vstv %s888_s23  ;;  %v2425_v25 = vld [vmem:[%s3013_s1 + $0xb0] sm:$0x3f]  ;;  %s572_s7 = scvt.s32.f32 %s2408_s28  ;;  %s2435_s23 = sld [smem:[#allocation4 + $0x17]] }
  0x54   : > { %v895_v27 = vmul.f32 %v2451_v22, %v894_v24  ;;  %v896_v33 = vmul.f32 %v2452_v31, %v894_v24  ;;  %v939_v51 = vstv %s934_s8  ;;  %s753_s24 = scvt.s32.f32 %s2432_s9  ;;  %v2413_v24 = vld [vmem:[%s3013_s1 + $0x54] sm:$0x3f]  ;;  %s2414_s9 = sld [smem:[#allocation4 + $0x10]]  ;;  %v2440_v31 = vld [vmem:[%s3013_s1 + $0x9c] sm:$0x3f] }
  0x55   : > { %v577_v47 = vstv %s572_s7  ;;  %v941_v58 = vmul.f32 %v3151_v56, %v939_v51  ;;  %s956_s26 = scvt.s32.f32 %s2459_s20  ;;  %s2465_s7 = sld [smem:[#allocation4 + $0x21]] }
  0x57   : > { %381 = vrot.lane.b32.xlu1 %v376_v29, %s2879_s18  ;;  %379 = vrot.lane.b32.xlu0 %v375_v30, %s2879_s18  ;;  %v693_v29 = vmul.f32 %v2425_v25, %v691_v14  ;;  %v3113_v30 = vld [vmem:[%s3013_s1 + $0x69] sm:$0xff]  ;;  %v961_v4 = vstv %s956_s26 }
  0x58   : > { %v557_v32 = vmul.f32 %v3113_v30, %v555_v17  ;;  %v3185_v14 = vld [vmem:[%s3013_s1 + $0x109] sm:$0xff]  ;;  %v3196_v25 = vld [vmem:[%s3013_s1 + $0x111] sm:$0xff] }
  0x59   : > { %s775_s28 = scvt.s32.f32 %s2435_s23  ;;  %s3203_s23 = sld [smem:[#allocation4 + $0x19]] }
  0x5b   : > { %403 = vrot.lane.b32.xlu1 %v398_v34, %s2879_s18  ;;  %401 = vrot.lane.b32.xlu0 %v397_v35, %s2879_s18  ;;  %v2428_v34 = vld [vmem:[%s3013_s1 + $0xc8] sm:$0x3f]  ;;  %v714_v35 = vstv %s708_s27  ;;  %s2462_s27 = sld [smem:[#allocation4 + $0x20]]  ;;  %s1000_s20 = scvt.s32.f32 %s2465_s7 }
  0x5c   : > { %v716_v37 = vmul.f32 %v2428_v34, %v714_v35  ;;  %v715_v38 = vmul.f32 %v2427_v36, %v714_v35  ;;  %v780_v9 = vstv %s775_s28  ;;  %v2467_v36 = vld [vmem:[%s3013_s1 + $0xe4] sm:$0x3f] }
  0x5f   : > { %425 = vrot.lane.b32.xlu1 %v420_v39, %s2879_s18  ;;  %423 = vrot.lane.b32.xlu0 %v419_v40, %s2879_s18  ;;  %v2455_v39 = vld [vmem:[%s3013_s1 + $0x110] sm:$0x3f]  ;;  %v917_v40 = vstv %s911_s29  ;;  %s594_s29 = scvt.s32.f32 %s2411_s25  ;;  %s3209_s25 = sld [smem:[#allocation4 + $0x22]] }
  0x60   : > { %v919_v42 = vmul.f32 %v2455_v39, %v917_v40  ;;  %v918_v43 = vmul.f32 %v2454_v41, %v917_v40  ;;  %v259_v39 = vld [vmem:[#allocation2 + $0x2] sm:$0xff]  ;;  %s819_s26 = scvt.s32.f32 %s3203_s23  ;;  %s3251_s23 = sld [smem:[#allocation5 + $0x1]] }
  0x61   : > { %s978_s0 = scvt.s32.f32 %s2462_s27  ;;  %s3216_s27 = sld [smem:[#allocation4 + $0x11]] }
  0x63   : > { %447 = vrot.lane.b32.xlu1 %v442_v44, %s2879_s18  ;;  %445 = vrot.lane.b32.xlu0 %v441_v45, %s2879_s18  ;;  %v3128_v44 = vld [vmem:[%s3013_s1 + $0x91] sm:$0xff]  ;;  %v736_v45 = vstv %s731_s30  ;;  %s2438_s30 = sld [smem:[#allocation4 + $0x18]] }
  0x64   : > { %v737_v48 = vmul.f32 %v3128_v44, %v736_v45  ;;  %v983_v17 = vstv %s978_s0 }
  0x65   : > { %s1022_s28 = scvt.s32.f32 %s3209_s25  ;;  %s3263_s25 = sld [smem:[#allocation5 + $0x12]] }
  0x67   : > { %472 = vrot.lane.b32.xlu1 %v467_v49, %s2879_s18  ;;  %470 = vrot.lane.b32.xlu0 %v466_v50, %s2879_s18  ;;  %v578_v49 = vmul.f32 %v3131_v46, %v577_v47  ;;  %v3138_v50 = vld [vmem:[%s3013_s1 + $0xd9] sm:$0xff]  ;;  %s638_s0 = scvt.s32.f32 %s3216_s27 }
  0x68   : > { %v940_v53 = vmul.f32 %v3138_v50, %v939_v51  ;;  %v260_v51 = vld [vmem:[#allocation2 + $0xa] sm:$0x3f] }
  0x69   : > { %s797_s8 = scvt.s32.f32 %s2438_s30  ;;  %s3232_s30 = sld [smem:[#allocation4 + $0x23]] }
  0x6b   : > { %495 = vrot.lane.b32.xlu1 %v490_v54, %s2879_s18  ;;  %493 = vrot.lane.b32.xlu0 %v489_v55, %s2879_s18  ;;  %v738_v54 = vmul.f32 %v3141_v52, %v736_v45  ;;  %v3148_v55 = vld [vmem:[%s3013_s1 + $0x81] sm:$0xff] }
  0x6c   : > { %v579_v57 = vmul.f32 %v3148_v55, %v577_v47  ;;  %v2415_v45 = vld [vmem:[%s3013_s1 + $0x64] sm:$0xff] }
  0x6f   : > { %518 = vrot.lane.b32.xlu1 %v513_v59, %s2879_s18  ;;  %516 = vrot.lane.b32.xlu0 %v512_v60, %s2879_s18  ;;  %v3158_v59 = vld [vmem:[%s3013_s1 + $0xb1] sm:$0xff]  ;;  %v758_v60 = vstv %s753_s24  ;;  %s616_s24 = scvt.s32.f32 %s2414_s9  ;;  %s3246_s9 = sld [smem:[#allocation5 + $0x9]] }
  0x73   : > { %540 = vrot.lane.b32.xlu1 %v535_v1, %s2879_s18  ;;  %538 = vrot.lane.b32.xlu0 %v534_v2, %s2879_s18  ;;  %v760_v1 = vmul.f32 %v3158_v59, %v758_v60  ;;  %v759_v2 = vmul.f32 %v3161_v62, %v758_v60  ;;  %v2442_v60 = vld [vmem:[%s3013_s1 + $0xac] sm:$0xff] }
  0x75   : > { %s1280_s27 = scvt.s32.f32 %s3246_s9 }
  0x77   : > { %675 = vrot.lane.b32.xlu1 %v670_v6, %s2879_s18  ;;  %673 = vrot.lane.b32.xlu0 %v669_v7, %s2879_s18  ;;  %v963_v6 = vmul.f32 %v3168_v3, %v961_v4  ;;  %v962_v7 = vmul.f32 %v3171_v5, %v961_v4 }
  0x7b   : > { %878 = vrot.lane.b32.xlu1 %v873_v11, %s2879_s18  ;;  %876 = vrot.lane.b32.xlu0 %v872_v12, %s2879_s18  ;;  %v599_v11 = vstv %s594_s29  ;;  %v781_v12 = vmul.f32 %v3178_v8, %v780_v9  ;;  %s3224_s29 = sld [smem:[#allocation4 + $0x1a]] }
  0x7c   : > { %v600_v13 = vmul.f32 %v2412_v10, %v599_v11  ;;  %v1027_v10 = vstv %s1022_s28  ;;  %s1111_s28 = scvt.s32.f32 %s3251_s23 }
  0x7f   : > { %696 = vrot.lane.b32.xlu1 %v692_v19, %s2879_s18  ;;  %560 = vrot.lane.b32.xlu0 %v556_v20, %s2879_s18  ;;  %v3188_v19 = vld [vmem:[%s3013_s1 + $0xc9] sm:$0xff]  ;;  %v984_v20 = vmul.f32 %v3185_v14, %v983_v17 }
  0x80   : > { %v782_v22 = vmul.f32 %v3188_v19, %v780_v9  ;;  %v2470_v9 = vld [vmem:[%s3013_s1 + $0xfc] sm:$0x3f] }
  0x81   : > { %s841_s7 = scvt.s32.f32 %s3224_s29  ;;  %s1469_s29 = scvt.s32.f32 %s3263_s25 }
  0x83   : > { %899 = vrot.lane.b32.xlu1 %v895_v27, %s2879_s18  ;;  %698 = vrot.lane.b32.xlu0 %v693_v29, %s2879_s18  ;;  %v601_v27 = vmul.f32 %v2413_v24, %v599_v11  ;;  %v985_v29 = vmul.f32 %v3196_v25, %v983_v17  ;;  %v2469_v11 = vld [vmem:[%s3013_s1 + $0xf4] sm:$0xff] }
  0x87   : > { %562 = vrot.lane.b32.xlu1 %v557_v32, %s2879_s18  ;;  %901 = vrot.lane.b32.xlu0 %v896_v33, %s2879_s18  ;;  %v802_v32 = vstv %s797_s8  ;;  %v2439_v33 = vld [vmem:[%s3013_s1 + $0x94] sm:$0xff]  ;;  %s3239_s8 = sld [smem:[#allocation5]] }
  0x88   : > { %v804_v34 = vmul.f32 %v2440_v31, %v802_v32  ;;  %v803_v35 = vmul.f32 %v2439_v33, %v802_v32  ;;  %v2418_v31 = vld [vmem:[%s3013_s1 + $0x7c] sm:$0xff] }
  0x8b   : > { %721 = vrot.lane.b32.xlu1 %v716_v37, %s2879_s18  ;;  %719 = vrot.lane.b32.xlu0 %v715_v38, %s2879_s18  ;;  %v1005_v37 = vstv %s1000_s20  ;;  %v2466_v38 = vld [vmem:[%s3013_s1 + $0xdc] sm:$0xff]  ;;  %s1044_s20 = scvt.s32.f32 %s3232_s30 }
  0x8c   : > { %v1007_v40 = vmul.f32 %v2467_v36, %v1005_v37  ;;  %v1006_v41 = vmul.f32 %v2466_v38, %v1005_v37  ;;  %v2446_v38 = vld [vmem:[%s3013_s1 + $0xcc] sm:$0x3f] }
  0x8f   : > { %924 = vrot.lane.b32.xlu1 %v919_v42, %s2879_s18  ;;  %922 = vrot.lane.b32.xlu0 %v918_v43, %s2879_s18  ;;  %v2416_v42 = vld [vmem:[%s3013_s1 + $0x6c] sm:$0x3f]  ;;  %v621_v43 = vstv %s616_s24  ;;  %s1089_s24 = scvt.s32.f32 %s3239_s8  ;;  %s3307_s8 = sld [smem:[#allocation5 + $0x13]] }
  0x93   : > { %741 = vrot.lane.b32.xlu1 %v737_v48, %s2879_s18  ;;  %582 = vrot.lane.b32.xlu0 %v578_v49, %s2879_s18 }
  0x95   : > { %s1490_s23 = scvt.s32.f32 %s3307_s8  ;;  %s3372_s8 = sld [smem:[#allocation5 + $0x3]] }
  0x97   : > { %944 = vrot.lane.b32.xlu1 %v940_v53, %s2879_s18  ;;  %743 = vrot.lane.b32.xlu0 %v738_v54, %s2879_s18  ;;  %v623_v53 = vmul.f32 %v2416_v42, %v621_v43  ;;  %v622_v54 = vmul.f32 %v2415_v45, %v621_v43 }
  0x9b   : > { %584 = vrot.lane.b32.xlu1 %v579_v57, %s2879_s18  ;;  %946 = vrot.lane.b32.xlu0 %v941_v58, %s2879_s18  ;;  %v2443_v57 = vld [vmem:[%s3013_s1 + $0xb4] sm:$0x3f]  ;;  %v824_v58 = vstv %s819_s26  ;;  %s3271_s26 = sld [smem:[#allocation5 + $0x1b]] }
  0x9f   : > { %765 = vrot.lane.b32.xlu1 %v760_v1, %s2879_s18  ;;  %763 = vrot.lane.b32.xlu0 %v759_v2, %s2879_s18 }
  0xa1   : > { %s1658_s30 = scvt.s32.f32 %s3271_s26  ;;  %s3335_s26 = sld [smem:[#allocation5 + $0xb]] }
  0xa3   : > { %968 = vrot.lane.b32.xlu1 %v963_v6, %s2879_s18  ;;  %966 = vrot.lane.b32.xlu0 %v962_v7, %s2879_s18  ;;  %v826_v6 = vmul.f32 %v2443_v57, %v824_v58  ;;  %v825_v7 = vmul.f32 %v2442_v60, %v824_v58 }
  0xa7   : > { %785 = vrot.lane.b32.xlu1 %v781_v12, %s2879_s18  ;;  %604 = vrot.lane.b32.xlu0 %v600_v13, %s2879_s18 }
  0xab   : > { %988 = vrot.lane.b32.xlu1 %v984_v20, %s2879_s18  ;;  %787 = vrot.lane.b32.xlu0 %v782_v22, %s2879_s18  ;;  %v1029_v20 = vmul.f32 %v2470_v9, %v1027_v10  ;;  %v1028_v22 = vmul.f32 %v2469_v11, %v1027_v10  ;;  %v1285_v11 = vstv %s1280_s27 }
  0xaf   : > { %606 = vrot.lane.b32.xlu1 %v601_v27, %s2879_s18  ;;  %990 = vrot.lane.b32.xlu0 %v985_v29, %s2879_s18  ;;  %v2419_v27 = vld [vmem:[%s3013_s1 + $0x84] sm:$0x3f]  ;;  %v643_v29 = vstv %s638_s0  ;;  %s2880_s0 = smov 2  }
  0xb0   : > { %v644_v36 = vmul.f32 %v2418_v31, %v643_v29 }
  0xb3   : > { %809 = vrot.lane.b32.xlu1 %v804_v34, %s2879_s18  ;;  %807 = vrot.lane.b32.xlu0 %v803_v35, %s2879_s18  ;;  %v645_v35 = vmul.f32 %v2419_v27, %v643_v29 }
  0xb5   : > { %v291_v47 = vpop.permute.xlu1 %290  ;;  %v267_v48 = vpop.permute.xlu0 %266 }
  0xb6   : > { %v272_v49 = vadd.f32 %v267_v48, %v259_v39  ;;  %v846_v39 = vstv %s841_s7  ;;  %v1049_v48 = vstv %s1044_s20  ;;  %s3295_s7 = sld [smem:[#allocation5 + $0xa]]  ;;  %s3317_s20 = sld [smem:[#allocation5 + $0x1c]] }
  0xb7   : > { %1012 = vrot.lane.b32.xlu1 %v1007_v40, %s2879_s18  ;;  %1010 = vrot.lane.b32.xlu0 %v1006_v41, %s2879_s18  ;;  %v2445_v40 = vld [vmem:[%s3013_s1 + $0xc4] sm:$0xff]  ;;  %v848_v43 = vmul.f32 %v2446_v38, %v846_v39 }
  0xb8   : > { %274 = vst.msk [vmem:[#allocation2 + $0x2] sm:$0xff] %vm245_vm0, %v272_v49  ;;  %v847_v45 = vmul.f32 %v2445_v40, %v846_v39  ;;  %v2472_v49 = vld [vmem:[%s3013_s1 + $0x10c] sm:$0xff] }
  0xb9   : > { %v293_v1 = vpop.permute.xlu1 %292  ;;  %v269_v2 = vpop.permute.xlu0 %268  ;;  %v1050_v60 = vmul.f32 %v2472_v49, %v1049_v48 }
  0xba   : > { %v273_v4 = vadd.f32 %v269_v2, %v260_v51 }
  0xbb   : > { %628 = vrot.lane.b32.xlu1 %v623_v53, %s2879_s18  ;;  %626 = vrot.lane.b32.xlu0 %v622_v54, %s2879_s18 }
  0xbc   : > { %276 = vst.msk [vmem:[#allocation2 + $0xa] sm:$0x3f] %vm275_vm1, %v273_v4  ;;  %s1301_s9 = scvt.s32.f32 %s3295_s7  ;;  %s1679_s25 = scvt.s32.f32 %s3317_s20 }
  0xbd   : > { %v316_v12 = vpop.permute.xlu1 %315  ;;  %v314_v13 = vpop.permute.xlu0 %313  ;;  %s3383_s20 = sld [smem:[#allocation5 + $0xc]] }
  0xbf   : > { %v283_v17 = vld [vmem:[#allocation2 + $0x2] sm:$0xff]  ;;  %831 = vrot.lane.b32.xlu1 %v826_v6, %s2879_s18  ;;  %829 = vrot.lane.b32.xlu0 %v825_v7, %s2879_s18 }
  0xc0   : > { %v296_v24 = vadd.f32 %v291_v47, %v283_v17  ;;  %v2473_v47 = vld [vmem:[%s3013_s1 + $0x114] sm:$0x3f] }
  0xc1   : > { %v3241_v32 = vpop.permute.xlu1 %337  ;;  %v336_v33 = vpop.permute.xlu0 %335  ;;  %v1051_v58 = vmul.f32 %v2473_v47, %v1049_v48 }
  0xc2   : > { %298 = vst.msk [vmem:[#allocation2 + $0x2] sm:$0xff] %vm245_vm0, %v296_v24  ;;  %v1474_v24 = vstv %s1469_s29  ;;  %s1322_s29 = scvt.s32.f32 %s3335_s26  ;;  %s3414_s26 = sld [smem:[#allocation5 + $0x1e]] }
  0xc3   : > { %v284_v34 = vld [vmem:[#allocation2 + $0xa] sm:$0x3f]  ;;  %1034 = vrot.lane.b32.xlu1 %v1029_v20, %s2879_s18  ;;  %1032 = vrot.lane.b32.xlu0 %v1028_v22, %s2879_s18 }
  0xc4   : > { %v297_v37 = vadd.f32 %v293_v1, %v284_v34  ;;  %v1094_v1 = vstv %s1089_s24  ;;  %v464_v34 = vld [vmem:[#allocation2 + $0x1a] sm:$0x3f]  ;;  %s3326_s24 = sld [smem:[#allocation5 + $0x2]] }
  0xc5   : > { %v3253_v41 = vpop.permute.xlu1 %359  ;;  %v3255_v42 = vpop.permute.xlu0 %357  ;;  %v1096_v9 = vmul.f32 %v1094_v1, %v3027_v16  ;;  %v1095_v10 = vmul.f32 %v1094_v1, %v3030_v18  ;;  %v1286_v16 = vmul.f32 %v3086_v63, %v1285_v11  ;;  %v463_v63 = vld [vmem:[#allocation2 + $0x12] sm:$0xff] }
  0xc6   : > { %299 = vst.msk [vmem:[#allocation2 + $0xa] sm:$0x3f] %vm275_vm1, %v297_v37 }
  0xc7   : > { %650 = vrot.lane.b32.xlu1 %v645_v35, %s2879_s18  ;;  %648 = vrot.lane.b32.xlu0 %v644_v36, %s2879_s18  ;;  %v1663_v36 = vstv %s1658_s30  ;;  %s3360_s30 = sld [smem:[#allocation5 + $0x1d]] }
  0xc9   : > { %v306_v51 = vld [vmem:[#allocation2 + $0x2] sm:$0xff]  ;;  %v3265_v53 = vpop.permute.xlu1 %381  ;;  %v3267_v54 = vpop.permute.xlu0 %379 }
  0xca   : > { %v319_v57 = vadd.f32 %v314_v13, %v306_v51  ;;  %v1116_v13 = vstv %s1111_s28  ;;  %v1665_v51 = vmul.f32 %v3151_v56, %v1663_v36  ;;  %s1132_s27 = scvt.s32.f32 %s3326_s24  ;;  %s3349_s28 = sld [smem:[#allocation5 + $0x14]] }
  0xcb   : > { %853 = vrot.lane.b32.xlu1 %v848_v43, %s2879_s18  ;;  %851 = vrot.lane.b32.xlu0 %v847_v45, %s2879_s18  ;;  %v1664_v43 = vmul.f32 %v3138_v50, %v1663_v36  ;;  %v1118_v49 = vmul.f32 %v3037_v21, %v1116_v13  ;;  %v870_v36 = vld [vmem:[#allocation2 + $0x3a] sm:$0x3f]  ;;  %s3396_s24 = sld [smem:[#allocation5 + $0x15]] }
  0xcc   : > { %321 = vst.msk [vmem:[#allocation2 + $0x2] sm:$0xff] %vm245_vm0, %v319_v57  ;;  %v1306_v57 = vstv %s1301_s9 }
  0xcd   : > { %v307_v2 = vld [vmem:[#allocation2 + $0xa] sm:$0x3f]  ;;  %v3276_v4 = vpop.permute.xlu1 %403  ;;  %v3278_v6 = vpop.permute.xlu0 %401  ;;  %v1308_v21 = vmul.f32 %v3113_v30, %v1306_v57  ;;  %s1700_s9 = scvt.s32.f32 %s3360_s30  ;;  %s213_s30 = sand.u32 1, %s2857_s2  }
  0xce   : > { %v320_v7 = vadd.f32 %v316_v12, %v307_v2  ;;  %v1117_v12 = vmul.f32 %v3040_v23, %v1116_v13  ;;  %v1475_v23 = vmul.f32 %v3128_v44, %v1474_v24  ;;  %v1495_v13 = vstv %s1490_s23  ;;  %s1153_s23 = scvt.s32.f32 %s3372_s8  ;;  %s3454_s8 = sld [smem:[#allocation5 + $0x16]] }
  0xcf   : > { %1056 = vrot.lane.b32.xlu1 %v1051_v58, %s2879_s18  ;;  %1054 = vrot.lane.b32.xlu0 %v1050_v60, %s2879_s18 }
  0xd0   : > { %322 = vst.msk [vmem:[#allocation2 + $0xa] sm:$0x3f] %vm275_vm1, %v320_v7  ;;  %s1511_s7 = scvt.s32.f32 %s3349_s28  ;;  %s3430_s28 = sld [smem:[#allocation5 + $0x4]] }
  0xd1   : > { %v3286_v17 = vpop.permute.xlu1 %425  ;;  %v3288_v20 = vpop.permute.xlu0 %423 }
  0xd3   : > { %v328_v22 = vld [vmem:[#allocation2] sm:$0xff]  ;;  %1101 = vrot.lane.b32.xlu1 %v1096_v9, %s2880_s0  ;;  %1099 = vrot.lane.b32.xlu0 %v1095_v10, %s2880_s0  ;;  %v1307_v9 = vmul.f32 %v3103_v15, %v1306_v57  ;;  %v667_v15 = vld [vmem:[#allocation2 + $0x2a] sm:$0x3f] }
  0xd4   : > { %v341_v18 = vadd.f32 %v336_v33, %v328_v22  ;;  %v1287_v33 = vmul.f32 %v3083_v61, %v1285_v11  ;;  %v1476_v61 = vmul.f32 %v3141_v52, %v1474_v24 }
  0xd5   : > { %v3297_v27 = vpop.permute.xlu1 %447  ;;  %v3299_v29 = vpop.permute.xlu0 %445 }
  0xd6   : > { %343 = vst.msk [vmem:[#allocation2] sm:$0xff] %vm245_vm0, %v341_v18  ;;  %v1496_v18 = vmul.f32 %v3161_v62, %v1495_v13 }
  0xd7   : > { %v329_v31 = vld [vmem:[#allocation2 + $0x8] sm:$0xff]  ;;  %1290 = vrot.lane.b32.xlu1 %v1286_v16, %s2880_s0  ;;  %1121 = vrot.lane.b32.xlu0 %v1117_v12, %s2880_s0  ;;  %v1497_v12 = vmul.f32 %v3158_v59, %v1495_v13 }
  0xd8   : > { %v342_v35 = vadd.f32 %v3241_v32, %v329_v31  ;;  %v666_v16 = vld [vmem:[#allocation2 + $0x22] sm:$0xff]  ;;  %v1684_v31 = vstv %s1679_s25  ;;  %s1343_s25 = scvt.s32.f32 %s3383_s20 }
  0xd9   : > { %v473_v37 = vpop.permute.xlu1 %472  ;;  %v471_v38 = vpop.permute.xlu0 %470 }
  0xda   : > { %344 = vst.msk [vmem:[#allocation2 + $0x8] sm:$0xff] %vm245_vm0, %v342_v35  ;;  %v477_v39 = vadd.f32 %v473_v37, %v464_v34  ;;  %v476_v40 = vadd.f32 %v471_v38, %v463_v63  ;;  %v869_v37 = vld [vmem:[#allocation2 + $0x32] sm:$0xff]  ;;  %v1685_v38 = vmul.f32 %v3171_v5, %v1684_v31 }
  0xdb   : > { %1479 = vrot.lane.b32.xlu1 %v1475_v23, %s2880_s0  ;;  %1292 = vrot.lane.b32.xlu0 %v1287_v33, %s2880_s0 }
  0xdc   : > { %479 = vst.msk [vmem:[#allocation2 + $0x1a] sm:$0x3f] %vm275_vm1, %v477_v39 }
  0xdd   : > { %478 = vst.msk [vmem:[#allocation2 + $0x12] sm:$0xff] %vm245_vm0, %v476_v40  ;;  %v350_v32 = vld [vmem:[#allocation2] sm:$0xff]  ;;  %v496_v45 = vpop.permute.xlu1 %495  ;;  %v494_v47 = vpop.permute.xlu0 %493  ;;  %v1137_v40 = vstv %s1132_s27  ;;  %s1532_s27 = scvt.s32.f32 %s3396_s24  ;;  %s1553_s24 = scvt.s32.f32 %s3454_s8 }
  0xde   : > { %v363_v48 = vadd.f32 %v3255_v42, %v350_v32  ;;  %v1138_v57 = vmul.f32 %v3050_v28, %v1137_v40  ;;  %s3535_s8 = sld [smem:[#allocation5 + $0x20]] }
  0xdf   : > { %1668 = vrot.lane.b32.xlu1 %v1664_v43, %s2880_s0  ;;  %1481 = vrot.lane.b32.xlu0 %v1476_v61, %s2880_s0 }
  0xe0   : > { %365 = vst.msk [vmem:[#allocation2] sm:$0xff] %vm245_vm0, %v363_v48 }
  0xe1   : > { %v351_v58 = vld [vmem:[#allocation2 + $0x8] sm:$0xff]  ;;  %v519_v60 = vpop.permute.xlu1 %518  ;;  %v517_v1 = vpop.permute.xlu0 %516 }
  0xe2   : > { %v364_v42 = vadd.f32 %v3253_v41, %v351_v58  ;;  %v1327_v58 = vstv %s1322_s29  ;;  %s3442_s29 = sld [smem:[#allocation5 + $0xd]] }
  0xe3   : > { %v487_v2 = vld [vmem:[#allocation2 + $0x1a] sm:$0x3f]  ;;  %1123 = vrot.lane.b32.xlu1 %v1118_v49, %s2880_s0  ;;  %1670 = vrot.lane.b32.xlu0 %v1665_v51, %s2880_s0 }
  0xe4   : > { %v486_v7 = vld [vmem:[#allocation2 + $0x12] sm:$0xff]  ;;  %366 = vst.msk [vmem:[#allocation2 + $0x8] sm:$0xff] %vm245_vm0, %v364_v42  ;;  %v500_v10 = vadd.f32 %v496_v45, %v487_v2  ;;  %v1329_v2 = vmul.f32 %v3148_v55, %v1327_v58 }
  0xe5   : > { %v499_v11 = vadd.f32 %v494_v47, %v486_v7  ;;  %v3337_v41 = vpop.permute.xlu1 %540  ;;  %v3339_v22 = vpop.permute.xlu0 %538  ;;  %v1328_v7 = vmul.f32 %v3131_v46, %v1327_v58 }
  0xe6   : > { %502 = vst.msk [vmem:[#allocation2 + $0x1a] sm:$0x3f] %vm275_vm1, %v500_v10 }
  0xe7   : > { %501 = vst.msk [vmem:[#allocation2 + $0x12] sm:$0xff] %vm245_vm0, %v499_v11  ;;  %v372_v30 = vld [vmem:[#allocation2] sm:$0xff]  ;;  %1313 = vrot.lane.b32.xlu1 %v1308_v21, %s2880_s0  ;;  %1311 = vrot.lane.b32.xlu0 %v1307_v9, %s2880_s0  ;;  %v1516_v9 = vstv %s1511_s7  ;;  %s1174_s7 = scvt.s32.f32 %s3430_s28  ;;  %s3509_s28 = sld [smem:[#allocation5 + $0xe]] }
  0xe8   : > { %v385_v24 = vadd.f32 %v3267_v54, %v372_v30  ;;  %v1686_v54 = vmul.f32 %v3168_v3, %v1684_v31  ;;  %v1518_v46 = vmul.f32 %v3188_v19, %v1516_v9  ;;  %v1705_v31 = vstv %s1700_s9  ;;  %s3460_s9 = sshll.u32 %s213_s30, 6  ;;  %s1364_s20 = scvt.s32.f32 %s3442_s29 }
  0xe9   : > { %v676_v34 = vpop.permute.xlu1 %675  ;;  %v674_v63 = vpop.permute.xlu0 %673  ;;  %s3519_s29 = sld [smem:[#allocation5 + $0x17]] }
  0xea   : > { %387 = vst.msk [vmem:[#allocation2] sm:$0xff] %vm245_vm0, %v385_v24  ;;  %v680_v23 = vadd.f32 %v676_v34, %v667_v15  ;;  %v679_v33 = vadd.f32 %v674_v63, %v666_v16 }
  0xeb   : > { %v373_v35 = vld [vmem:[#allocation2 + $0x8] sm:$0xff]  ;;  %1502 = vrot.lane.b32.xlu1 %v1497_v12, %s2880_s0  ;;  %1500 = vrot.lane.b32.xlu0 %v1496_v18, %s2880_s0  ;;  %v1517_v12 = vmul.f32 %v3178_v8, %v1516_v9 }
  0xec   : > { %v386_v39 = vadd.f32 %v3265_v53, %v373_v35  ;;  %682 = vst.msk [vmem:[#allocation2 + $0x2a] sm:$0x3f] %vm275_vm1, %v680_v23  ;;  %v1139_v53 = vmul.f32 %v3047_v26, %v1137_v40  ;;  %v1707_v23 = vmul.f32 %v3196_v25, %v1705_v31 }
  0xed   : > { %681 = vst.msk [vmem:[#allocation2 + $0x22] sm:$0xff] %vm245_vm0, %v679_v33  ;;  %v510_v43 = vld [vmem:[#allocation2 + $0x1a] sm:$0x3f]  ;;  %v879_v32 = vpop.permute.xlu1 %878  ;;  %v877_v45 = vpop.permute.xlu0 %876  ;;  %v1706_v33 = vmul.f32 %v3185_v14, %v1705_v31 }
  0xee   : > { %v509_v61 = vld [vmem:[#allocation2 + $0x12] sm:$0xff]  ;;  %388 = vst.msk [vmem:[#allocation2 + $0x8] sm:$0xff] %vm245_vm0, %v386_v39  ;;  %v523_v47 = vadd.f32 %v519_v60, %v510_v43  ;;  %v883_v49 = vadd.f32 %v879_v32, %v870_v36  ;;  %v882_v51 = vadd.f32 %v877_v45, %v869_v37  ;;  %v3408_v36 = vld [vmem:[%s3013_s1 + $0x9] sm:$0xff]  ;;  %v1158_v37 = vstv %s1153_s23  ;;  %s3475_s23 = sld [smem:[#allocation5 + $0x1f]] }
  0xef   : > { %v522_v48 = vadd.f32 %v517_v1, %v509_v61  ;;  %1691 = vrot.lane.b32.xlu1 %v1686_v54, %s2880_s0  ;;  %1689 = vrot.lane.b32.xlu0 %v1685_v38, %s2880_s0  ;;  %v3411_v54 = vld [vmem:[%s3013_s1 + $0x1] sm:$0xff]  ;;  %v1160_v43 = vmul.f32 %v1158_v37, %v3408_v36 }
  0xf0   : > { %525 = vst.msk [vmem:[#allocation2 + $0x1a] sm:$0x3f] %vm275_vm1, %v523_v47  ;;  %885 = vst.msk [vmem:[#allocation2 + $0x3a] sm:$0x3f] %vm275_vm1, %v883_v49  ;;  %v1159_v61 = vmul.f32 %v1158_v37, %v3411_v54  ;;  %v3424_v47 = vld [vmem:[%s3013_s1 + $0x51] sm:$0xff]  ;;  %v3427_v49 = vld [vmem:[%s3013_s1 + $0x49] sm:$0xff] }
  0xf1   : > { %524 = vst.msk [vmem:[#allocation2 + $0x12] sm:$0xff] %vm245_vm0, %v522_v48  ;;  %884 = vst.msk [vmem:[#allocation2 + $0x32] sm:$0xff] %vm245_vm0, %v882_v51  ;;  %v394_v60 = vld [vmem:[#allocation2] sm:$0xff]  ;;  %v697_v1 = vpop.permute.xlu1 %696  ;;  %v3374_v42 = vpop.permute.xlu0 %560  ;;  %v1348_v48 = vstv %s1343_s25  ;;  %s3492_s25 = sld [smem:[#allocation5 + $0x5]] }
  0xf2   : > { %v407_v26 = vadd.f32 %v3278_v6, %v394_v60 }
  0xf3   : > { %1144 = vrot.lane.b32.xlu1 %v1139_v53, %s2880_s0  ;;  %1142 = vrot.lane.b32.xlu0 %v1138_v57, %s2880_s0  ;;  %v690_v11 = vld [vmem:[#allocation2 + $0x2a] sm:$0x3f] }
  0xf4   : > { %v689_v28 = vld [vmem:[#allocation2 + $0x22] sm:$0xff]  ;;  %409 = vst.msk [vmem:[#allocation2] sm:$0xff] %vm245_vm0, %v407_v26 }
  0xf5   : > { %v702_v21 = vadd.f32 %v697_v1, %v689_v28  ;;  %v395_v10 = vld [vmem:[#allocation2 + $0x8] sm:$0x3f]  ;;  %v900_v13 = vpop.permute.xlu1 %899  ;;  %v699_v6 = vpop.permute.xlu0 %698 }
  0xf6   : > { %v408_v30 = vadd.f32 %v3276_v4, %v395_v10  ;;  %v703_v15 = vadd.f32 %v699_v6, %v690_v11 }
  0xf7   : > { %704 = vst.msk [vmem:[#allocation2 + $0x22] sm:$0xff] %vm245_vm0, %v702_v21  ;;  %1334 = vrot.lane.b32.xlu1 %v1329_v2, %s2880_s0  ;;  %1332 = vrot.lane.b32.xlu0 %v1328_v7, %s2880_s0  ;;  %v893_v34 = vld [vmem:[#allocation2 + $0x3a] sm:$0x3f]  ;;  %v1350_v2 = vmul.f32 %v3424_v47, %v1348_v48  ;;  %v1349_v7 = vmul.f32 %v3427_v49, %v1348_v48  ;;  %v1537_v21 = vstv %s1532_s27  ;;  %s1742_s27 = scvt.s32.f32 %s3475_s23  ;;  %s3550_s23 = sld [smem:[#allocation5 + $0x6]] }
  0xf8   : > { %v532_v55 = vld [vmem:[#allocation2 + $0x18] sm:$0xff]  ;;  %v531_v16 = vld [vmem:[#allocation2 + $0x10] sm:$0xff]  ;;  %410 = vst.msk [vmem:[#allocation2 + $0x8] sm:$0x3f] %vm275_vm1, %v408_v30  ;;  %705 = vst.msk [vmem:[#allocation2 + $0x2a] sm:$0x3f] %vm275_vm1, %v703_v15  ;;  %v1539_v30 = vmul.f32 %v3141_v52, %v1537_v21  ;;  %v1538_v15 = vmul.f32 %v3128_v44, %v1537_v21 }
  0xf9   : > { %v545_v18 = vadd.f32 %v3337_v41, %v532_v55  ;;  %v544_v24 = vadd.f32 %v3339_v22, %v531_v16  ;;  %v892_v4 = vld [vmem:[#allocation2 + $0x32] sm:$0xff]  ;;  %v563_v19 = vpop.permute.xlu1 %562  ;;  %v902_v8 = vpop.permute.xlu0 %901  ;;  %v1747_v21 = vstv %s1742_s27 }
  0xfa   : > { %v905_v63 = vadd.f32 %v900_v13, %v892_v4  ;;  %v906_v41 = vadd.f32 %v902_v8, %v893_v34  ;;  %v3472_v8 = vld [vmem:[%s3013_s1 + $0x19] sm:$0xff] }
  0xfb   : > { %547 = vst.msk [vmem:[#allocation2 + $0x18] sm:$0xff] %vm245_vm0, %v545_v18  ;;  %546 = vst.msk [vmem:[#allocation2 + $0x10] sm:$0xff] %vm245_vm0, %v544_v24  ;;  %v416_v22 = vld [vmem:[#allocation2] sm:$0xff]  ;;  %1523 = vrot.lane.b32.xlu1 %v1518_v46, %s2880_s0  ;;  %1521 = vrot.lane.b32.xlu0 %v1517_v12, %s2880_s0 }
  0xfc   : > { %907 = vst.msk [vmem:[#allocation2 + $0x32] sm:$0xff] %vm245_vm0, %v905_v63  ;;  %v429_v35 = vadd.f32 %v3288_v20, %v416_v22  ;;  %v3469_v63 = vld [vmem:[%s3013_s1 + $0x21] sm:$0xff] }
  0xfd   : > { %908 = vst.msk [vmem:[#allocation2 + $0x3a] sm:$0x3f] %vm275_vm1, %v906_v41  ;;  %v722_v38 = vpop.permute.xlu1 %721  ;;  %v720_v25 = vpop.permute.xlu0 %719  ;;  %s1216_s27 = scvt.s32.f32 %s3550_s23 }
  0xfe   : > { %v712_v39 = vld [vmem:[#allocation2 + $0x22] sm:$0xff]  ;;  %431 = vst.msk [vmem:[#allocation2] sm:$0xff] %vm245_vm0, %v429_v35 }
  0xff   : > { %v725_v14 = vadd.f32 %v720_v25, %v712_v39  ;;  %v417_v20 = vld [vmem:[#allocation2 + $0x8] sm:$0x3f]  ;;  %1712 = vrot.lane.b32.xlu1 %v1707_v23, %s2880_s0  ;;  %1710 = vrot.lane.b32.xlu0 %v1706_v33, %s2880_s0  ;;  %s1721_s0 = scvt.s32.f32 %s3414_s26  ;;  %s3497_s26 = scalar_lea.vmem [#allocation7], %s3460_s9 }
 0x100   : > { %v713_v40 = vld [vmem:[#allocation2 + $0x2a] sm:$0x3f]  ;;  %v430_v32 = vadd.f32 %v3286_v17, %v417_v20  ;;  %v3489_v20 = vld [vmem:[%s3013_s1 + $0x61] sm:$0xff] }
 0x101   : > { %v726_v45 = vadd.f32 %v722_v38, %v713_v40  ;;  %727 = vst.msk [vmem:[#allocation2 + $0x22] sm:$0xff] %vm245_vm0, %v725_v14  ;;  %v925_v57 = vpop.permute.xlu1 %924  ;;  %v923_v58 = vpop.permute.xlu0 %922  ;;  %v1726_v16 = vstv %s1721_s0  ;;  %v3486_v25 = vld [vmem:[%s3013_s1 + $0x69] sm:$0xff]  ;;  %v1369_v14 = vstv %s1364_s20  ;;  %s1195_s0 = scvt.s32.f32 %s3492_s25  ;;  %s1574_s20 = scvt.s32.f32 %s3519_s29 }
 0x102   : > { %v553_v51 = vld [vmem:[#allocation2 + $0x10] sm:$0xff]  ;;  %v554_v53 = vld [vmem:[#allocation2 + $0x18] sm:$0xff]  ;;  %432 = vst.msk [vmem:[#allocation2 + $0x8] sm:$0x3f] %vm275_vm1, %v430_v32  ;;  %v1728_v4 = vmul.f32 %v3151_v56, %v1726_v16  ;;  %v1727_v31 = vmul.f32 %v3138_v50, %v1726_v16  ;;  %s3566_s25 = sld [smem:[#allocation5 + $0xf]]  ;;  %s3588_s29 = sld [smem:[#allocation5 + $0x21]] }
 0x103   : > { %v566_v17 = vadd.f32 %v3374_v42, %v553_v51  ;;  %v567_v60 = vadd.f32 %v563_v19, %v554_v53  ;;  %728 = vst.msk [vmem:[#allocation2 + $0x2a] sm:$0x3f] %vm275_vm1, %v726_v45  ;;  %v915_v1 = vld [vmem:[#allocation2 + $0x32] sm:$0xff]  ;;  %1165 = vrot.lane.b32.xlu1 %v1160_v43, %s2879_s18  ;;  %1163 = vrot.lane.b32.xlu0 %v1159_v61, %s2879_s18  ;;  %v1179_v19 = vstv %s1174_s7  ;;  %s1385_s7 = scvt.s32.f32 %s3509_s28  ;;  %s3580_s28 = sld [smem:[#allocation5 + $0x18]] }
 0x104   : > { %v916_v26 = vld [vmem:[#allocation2 + $0x3a] sm:$0x3f]  ;;  %v928_v28 = vadd.f32 %v923_v58, %v915_v1  ;;  %v1181_v37 = vmul.f32 %v3469_v63, %v1179_v19  ;;  %v1180_v38 = vmul.f32 %v3472_v8, %v1179_v19  ;;  %v1371_v51 = vmul.f32 %v3486_v25, %v1369_v14  ;;  %v3532_v16 = vld [vmem:[%s3013_s1 + $0x31] sm:$0xff] }
 0x105   : > { %568 = vst.msk [vmem:[#allocation2 + $0x10] sm:$0xff] %vm245_vm0, %v566_v17  ;;  %569 = vst.msk [vmem:[#allocation2 + $0x18] sm:$0xff] %vm245_vm0, %v567_v60  ;;  %v929_v42 = vadd.f32 %v925_v57, %v916_v26  ;;  %v438_v9 = vld [vmem:[#allocation2] sm:$0xff]  ;;  %v742_v10 = vpop.permute.xlu1 %741  ;;  %v583_v11 = vpop.permute.xlu0 %582  ;;  %v1370_v53 = vmul.f32 %v3489_v20, %v1369_v14  ;;  %v1558_v58 = vstv %s1553_s24  ;;  %s1763_s24 = scvt.s32.f32 %s3535_s8  ;;  %s3599_s8 = sld [smem:[#allocation5 + $0x7]] }
 0x106   : > { %930 = vst.msk [vmem:[#allocation2 + $0x32] sm:$0xff] %vm245_vm0, %v928_v28  ;;  %v451_v13 = vadd.f32 %v3299_v29, %v438_v9 }
 0x107   : > { %931 = vst.msk [vmem:[#allocation2 + $0x3a] sm:$0x3f] %vm275_vm1, %v929_v42  ;;  %1355 = vrot.lane.b32.xlu1 %v1350_v2, %s2879_s18  ;;  %1353 = vrot.lane.b32.xlu0 %v1349_v7, %s2879_s18  ;;  %v1560_v2 = vmul.f32 %v3158_v59, %v1558_v58  ;;  %v1559_v7 = vmul.f32 %v3161_v62, %v1558_v58 }
 0x108   : > { %v734_v6 = vld [vmem:[#allocation2 + $0x20] sm:$0xff]  ;;  %453 = vst.msk [vmem:[#allocation2] sm:$0xff] %vm245_vm0, %v451_v13  ;;  %v1749_v59 = vmul.f32 %v3168_v3, %v1747_v21  ;;  %v1748_v62 = vmul.f32 %v3171_v5, %v1747_v21  ;;  %s1784_s23 = scvt.s32.f32 %s3588_s29 }
 0x109   : > { %v747_v55 = vadd.f32 %v742_v10, %v734_v6  ;;  %v439_v29 = vld [vmem:[#allocation2 + $0x8] sm:$0x3f]  ;;  %v945_v46 = vpop.permute.xlu1 %944  ;;  %v744_v18 = vpop.permute.xlu0 %743 }
 0x10a   : > { %v735_v12 = vld [vmem:[#allocation2 + $0x28] sm:$0xff]  ;;  %v452_v24 = vadd.f32 %v3297_v27, %v439_v29 }
 0x10b   : > { %749 = vst.msk [vmem:[#allocation2 + $0x20] sm:$0xff] %vm245_vm0, %v747_v55  ;;  %v748_v44 = vadd.f32 %v744_v18, %v735_v12  ;;  %1544 = vrot.lane.b32.xlu1 %v1539_v30, %s2879_s18  ;;  %1542 = vrot.lane.b32.xlu0 %v1538_v15, %s2879_s18  ;;  %v3529_v15 = vld [vmem:[%s3013_s1 + $0x39] sm:$0xff]  ;;  %v1200_v55 = vstv %s1195_s0  ;;  %s1406_s0 = scvt.s32.f32 %s3566_s25  ;;  %s1238_s25 = scvt.s32.f32 %s3599_s8 }
 0x10c   : > { %v575_v52 = vld [vmem:[#allocation2 + $0x10] sm:$0xff]  ;;  %454 = vst.msk [vmem:[#allocation2 + $0x8] sm:$0x3f] %vm275_vm1, %v452_v24  ;;  %v576_v56 = vld [vmem:[#allocation2 + $0x18] sm:$0xff]  ;;  %v1202_v5 = vmul.f32 %v3529_v15, %v1200_v55  ;;  %v1201_v18 = vmul.f32 %v3532_v16, %v1200_v55 }
 0x10d   : > { %v588_v34 = vadd.f32 %v583_v11, %v575_v52  ;;  %v937_v27 = vld [vmem:[#allocation2 + $0x30] sm:$0xff]  ;;  %750 = vst.msk [vmem:[#allocation2 + $0x28] sm:$0xff] %vm245_vm0, %v748_v44  ;;  %v585_v22 = vpop.permute.xlu1 %584  ;;  %v947_v23 = vpop.permute.xlu0 %946  ;;  %v3544_v44 = vld [vmem:[%s3013_s1 + $0x81] sm:$0xff]  ;;  %v1390_v52 = vstv %s1385_s7  ;;  %s1595_s7 = scvt.s32.f32 %s3580_s28 }
 0x10e   : > { %v950_v41 = vadd.f32 %v945_v46, %v937_v27  ;;  %v938_v50 = vld [vmem:[#allocation2 + $0x38] sm:$0xff]  ;;  %v589_v33 = vadd.f32 %v585_v22, %v576_v56 }
 0x10f   : > { %590 = vst.msk [vmem:[#allocation2 + $0x10] sm:$0xff] %vm245_vm0, %v588_v34  ;;  %v951_v35 = vadd.f32 %v947_v23, %v938_v50  ;;  %1733 = vrot.lane.b32.xlu1 %v1728_v4, %s2879_s18  ;;  %1731 = vrot.lane.b32.xlu0 %v1727_v31, %s2879_s18  ;;  %v1064_v39 = vld [vmem:[#allocation2] sm:$0xff]  ;;  %v1392_v50 = vmul.f32 %v3544_v44, %v1390_v52 }
 0x110   : > { %952 = vst.msk [vmem:[#allocation2 + $0x30] sm:$0xff] %vm245_vm0, %v950_v41  ;;  %591 = vst.msk [vmem:[#allocation2 + $0x18] sm:$0xff] %vm245_vm0, %v589_v33  ;;  %v3547_v4 = vld [vmem:[%s3013_s1 + $0x79] sm:$0xff]  ;;  %v3560_v33 = vld [vmem:[%s3013_s1 + $0xc9] sm:$0xff] }
 0x111   : > { %953 = vst.msk [vmem:[#allocation2 + $0x38] sm:$0xff] %vm245_vm0, %v951_v35  ;;  %1080 = vst.msk [vmem:[#allocation2] sm:$0xff] %vm245_vm0, %v2878_v0  ;;  %v766_v40 = vpop.permute.xlu1 %765  ;;  %v764_v61 = vpop.permute.xlu0 %763  ;;  %v1391_v23 = vmul.f32 %v3547_v4, %v1390_v52  ;;  %v1579_v35 = vstv %s1574_s20  ;;  %s2881_s20 = smov 124   ;;  %v1600_v52 = vstv %s1595_s7  ;;  %s3647_s7 = sld [smem:[#allocation5 + $0x8]] }
 0x112   : > { %1072 = vst.msk [vmem:[%s3497_s26] sm:$0xff] %vm245_vm0, %v1064_v39  ;;  %v756_v43 = vld [vmem:[#allocation2 + $0x20] sm:$0xff] }
 0x113   : > { %v769_v32 = vadd.f32 %v764_v61, %v756_v43  ;;  %v1065_v45 = vld [vmem:[#allocation2 + $0x8] sm:$0xff]  ;;  %1186 = vrot.lane.b32.xlu1 %v1181_v37, %s2879_s18  ;;  %1184 = vrot.lane.b32.xlu0 %v1180_v38, %s2879_s18  ;;  %v1581_v61 = vmul.f32 %v3560_v33, %v1579_v35 }
 0x114   : > { %v757_v48 = vld [vmem:[#allocation2 + $0x28] sm:$0xff]  ;;  %1081 = vst.msk [vmem:[#allocation2 + $0x8] sm:$0xff] %vm245_vm0, %v2878_v0  ;;  %1073 = vst.msk [vmem:[%s3497_s26 + $0x8] sm:$0xff] %vm245_vm0, %v1065_v45 }
 0x115   : > { %v770_v57 = vadd.f32 %v766_v40, %v757_v48  ;;  %771 = vst.msk [vmem:[#allocation2 + $0x20] sm:$0xff] %vm245_vm0, %v769_v32  ;;  %v969_v17 = vpop.permute.xlu1 %968  ;;  %v967_v60 = vpop.permute.xlu0 %966  ;;  %v3563_v37 = vld [vmem:[%s3013_s1 + $0xc1] sm:$0xff]  ;;  %v3574_v48 = vld [vmem:[%s3013_s1 + $0x111] sm:$0xff] }
 0x116   : > { %v597_v10 = vld [vmem:[#allocation2 + $0x10] sm:$0xff]  ;;  %v1580_v32 = vmul.f32 %v3563_v37, %v1579_v35  ;;  %v3623_v35 = vld [vmem:[%s3013_s1 + $0xe1] sm:$0xff] }
 0x117   : > { %772 = vst.msk [vmem:[#allocation2 + $0x28] sm:$0xff] %vm245_vm0, %v770_v57  ;;  %v959_v1 = vld [vmem:[#allocation2 + $0x30] sm:$0xff]  ;;  %1376 = vrot.lane.b32.xlu1 %v1371_v51, %s2879_s18  ;;  %1374 = vrot.lane.b32.xlu0 %v1370_v53, %s2879_s18  ;;  %v598_v27 = vld [vmem:[#allocation2 + $0x18] sm:$0x3f]  ;;  %v1768_v51 = vstv %s1763_s24  ;;  %s3614_s24 = sld [smem:[#allocation5 + $0x10]] }
 0x118   : > { %v960_v26 = vld [vmem:[#allocation2 + $0x38] sm:$0xff]  ;;  %v972_v28 = vadd.f32 %v967_v60, %v959_v1  ;;  %v3577_v53 = vld [vmem:[%s3013_s1 + $0x109] sm:$0xff] }
 0x119   : > { %v973_v42 = vadd.f32 %v969_v17, %v960_v26  ;;  %v786_v9 = vpop.permute.xlu1 %785  ;;  %v605_v11 = vpop.permute.xlu0 %604  ;;  %v1770_v26 = vmul.f32 %v3574_v48, %v1768_v51 }
 0x11a   : > { %974 = vst.msk [vmem:[#allocation2 + $0x30] sm:$0xff] %vm245_vm0, %v972_v28  ;;  %v610_v13 = vadd.f32 %v605_v11, %v597_v10  ;;  %v1769_v28 = vmul.f32 %v3577_v53, %v1768_v51 }
 0x11b   : > { %975 = vst.msk [vmem:[#allocation2 + $0x38] sm:$0xff] %vm245_vm0, %v973_v42  ;;  %1565 = vrot.lane.b32.xlu1 %v1560_v2, %s2879_s18  ;;  %1563 = vrot.lane.b32.xlu0 %v1559_v7, %s2879_s18  ;;  %v1221_v7 = vstv %s1216_s27  ;;  %s3629_s27 = sld [smem:[#allocation5 + $0x19]] }
 0x11c   : > { %v778_v6 = vld [vmem:[#allocation2 + $0x20] sm:$0xff]  ;;  %612 = vst.msk [vmem:[#allocation2 + $0x10] sm:$0xff] %vm245_vm0, %v610_v13 }
 0x11d   : > { %v791_v30 = vadd.f32 %v786_v9, %v778_v6  ;;  %v989_v29 = vpop.permute.xlu1 %988  ;;  %v788_v12 = vpop.permute.xlu0 %787  ;;  %v1223_v6 = vmul.f32 %v1221_v7, %v3408_v36  ;;  %s1427_s28 = scvt.s32.f32 %s3614_s24  ;;  %s1259_s24 = scvt.s32.f32 %s3647_s7 }
 0x11e   : > { %v779_v46 = vld [vmem:[#allocation2 + $0x28] sm:$0xff]  ;;  %s3727_s7 = sld [smem:[#allocation6 + $0x3]] }
 0x11f   : > { %793 = vst.msk [vmem:[#allocation2 + $0x20] sm:$0xff] %vm245_vm0, %v791_v30  ;;  %v792_v3 = vadd.f32 %v788_v12, %v779_v46  ;;  %1754 = vrot.lane.b32.xlu1 %v1749_v59, %s2879_s18  ;;  %1752 = vrot.lane.b32.xlu0 %v1748_v62, %s2879_s18  ;;  %v1222_v59 = vmul.f32 %v1221_v7, %v3411_v54  ;;  %v1411_v62 = vstv %s1406_s0  ;;  %s3638_s0 = sld [smem:[#allocation5 + $0x22]] }
 0x121   : > { %v981_v24 = vld [vmem:[#allocation2 + $0x30] sm:$0xff]  ;;  %794 = vst.msk [vmem:[#allocation2 + $0x28] sm:$0xff] %vm245_vm0, %v792_v3  ;;  %v607_v34 = vpop.permute.xlu1 %606  ;;  %v991_v41 = vpop.permute.xlu0 %990  ;;  %s1616_s29 = scvt.s32.f32 %s3629_s27  ;;  %s3704_s27 = sld [smem:[#allocation5 + $0x23]] }
 0x122   : > { %v994_v31 = vadd.f32 %v989_v29, %v981_v24  ;;  %v982_v19 = vld [vmem:[#allocation2 + $0x38] sm:$0xff]  ;;  %v611_v22 = vadd.f32 %v607_v34, %v598_v27 }
 0x123   : > { %v995_v56 = vadd.f32 %v991_v41, %v982_v19  ;;  %1207 = vrot.lane.b32.xlu1 %v1202_v5, %s2879_s18  ;;  %1205 = vrot.lane.b32.xlu0 %v1201_v18, %s2879_s18  ;;  %v619_v9 = vld [vmem:[#allocation2 + $0x10] sm:$0xff]  ;;  %v1413_v5 = vmul.f32 %v3424_v47, %v1411_v62  ;;  %v1412_v18 = vmul.f32 %v3427_v49, %v1411_v62  ;;  %v3608_v24 = vld [vmem:[%s3013_s1 + $0x99] sm:$0xff] }
 0x124   : > { %996 = vst.msk [vmem:[#allocation2 + $0x30] sm:$0xff] %vm245_vm0, %v994_v31  ;;  %v3611_v31 = vld [vmem:[%s3013_s1 + $0x91] sm:$0xff]  ;;  %v1092_v62 = vld [vmem:[#allocation2] sm:$0xff] }
 0x125   : > { %613 = vst.msk [vmem:[#allocation2 + $0x18] sm:$0x3f] %vm275_vm1, %v611_v22  ;;  %v810_v38 = vpop.permute.xlu1 %809  ;;  %v808_v14 = vpop.permute.xlu0 %807  ;;  %s1805_s8 = scvt.s32.f32 %s3638_s0  ;;  %s3717_s0 = sld [smem:[#allocation6]] }
 0x126   : > { %997 = vst.msk [vmem:[#allocation2 + $0x38] sm:$0xff] %vm245_vm0, %v995_v56  ;;  %v800_v39 = vld [vmem:[#allocation2 + $0x20] sm:$0xff] }
 0x127   : > { %v813_v40 = vadd.f32 %v808_v14, %v800_v39  ;;  %1397 = vrot.lane.b32.xlu1 %v1392_v50, %s2879_s18  ;;  %1395 = vrot.lane.b32.xlu0 %v1391_v23, %s2879_s18  ;;  %v1602_v50 = vmul.f32 %v3608_v24, %v1600_v52  ;;  %v1601_v23 = vmul.f32 %v3611_v31, %v1600_v52  ;;  %v3626_v39 = vld [vmem:[%s3013_s1 + $0xd9] sm:$0xff] }
 0x128   : > { %v801_v43 = vld [vmem:[#allocation2 + $0x28] sm:$0x3f] }
 0x129   : > { %v814_v45 = vadd.f32 %v810_v38, %v801_v43  ;;  %815 = vst.msk [vmem:[#allocation2 + $0x20] sm:$0xff] %vm245_vm0, %v813_v40  ;;  %v1013_v57 = vpop.permute.xlu1 %1012  ;;  %v1011_v58 = vpop.permute.xlu0 %1010  ;;  %v1789_v38 = vstv %s1784_s23  ;;  %s3670_s23 = sld [smem:[#allocation5 + $0x11]] }
 0x12a   : > { %v1791_v51 = vmul.f32 %v3623_v35, %v1789_v38 }
 0x12b   : > { %816 = vst.msk [vmem:[#allocation2 + $0x28] sm:$0x3f] %vm275_vm1, %v814_v45  ;;  %v1003_v17 = vld [vmem:[#allocation2 + $0x30] sm:$0xff]  ;;  %1586 = vrot.lane.b32.xlu1 %v1581_v61, %s2879_s18  ;;  %1584 = vrot.lane.b32.xlu0 %v1580_v32, %s2879_s18 }
 0x12c   : > { %v1016_v1 = vadd.f32 %v1011_v58, %v1003_v17  ;;  %v620_v21 = vld [vmem:[#allocation2 + $0x18] sm:$0x3f]  ;;  %v1243_v58 = vstv %s1238_s25  ;;  %s3693_s25 = sld [smem:[#allocation5 + $0x1a]] }
 0x12d   : > { %v1004_v60 = vld [vmem:[#allocation2 + $0x38] sm:$0x3f]  ;;  %v629_v42 = vpop.permute.xlu1 %628  ;;  %v627_v10 = vpop.permute.xlu0 %626  ;;  %v1245_v7 = vmul.f32 %v3469_v63, %v1243_v58 }
 0x12e   : > { %v1017_v2 = vadd.f32 %v1013_v57, %v1004_v60  ;;  %1018 = vst.msk [vmem:[#allocation2 + $0x30] sm:$0xff] %vm245_vm0, %v1016_v1  ;;  %v633_v11 = vadd.f32 %v629_v42, %v620_v21  ;;  %v632_v13 = vadd.f32 %v627_v10, %v619_v9  ;;  %v1790_v57 = vmul.f32 %v3626_v39, %v1789_v38 }
 0x12f   : > { %1775 = vrot.lane.b32.xlu1 %v1770_v26, %s2879_s18  ;;  %1773 = vrot.lane.b32.xlu0 %v1769_v28, %s2879_s18  ;;  %v1244_v42 = vmul.f32 %v3472_v8, %v1243_v58  ;;  %v1432_v21 = vstv %s1427_s28  ;;  %v1810_v38 = vstv %s1805_s8  ;;  %s1872_s8 = scvt.s32.f32 %s3717_s0 }
 0x130   : > { %1019 = vst.msk [vmem:[#allocation2 + $0x38] sm:$0x3f] %vm275_vm1, %v1017_v2  ;;  %635 = vst.msk [vmem:[#allocation2 + $0x18] sm:$0x3f] %vm275_vm1, %v633_v11  ;;  %v822_v29 = vld [vmem:[#allocation2 + $0x20] sm:$0xff] }
 0x131   : > { %634 = vst.msk [vmem:[#allocation2 + $0x10] sm:$0xff] %vm245_vm0, %v632_v13  ;;  %v832_v30 = vpop.permute.xlu1 %831  ;;  %v830_v46 = vpop.permute.xlu0 %829 }
 0x132   : > { %v823_v55 = vld [vmem:[#allocation2 + $0x28] sm:$0x3f]  ;;  %v835_v3 = vadd.f32 %v830_v46, %v822_v29  ;;  %v1434_v29 = vmul.f32 %v3486_v25, %v1432_v21  ;;  %v1433_v46 = vmul.f32 %v3489_v20, %v1432_v21  ;;  %s1637_s28 = scvt.s32.f32 %s3693_s25  ;;  %s3746_s25 = sld [smem:[#allocation6 + $0x9]] }
 0x133   : > { %v836_v12 = vadd.f32 %v832_v30, %v823_v55  ;;  %1228 = vrot.lane.b32.xlu1 %v1223_v6, %s2881_s20  ;;  %1226 = vrot.lane.b32.xlu0 %v1222_v59, %s2881_s20  ;;  %v1093_v55 = vld [vmem:[#allocation2 + $0x8] sm:$0xff] }
 0x134   : > { %837 = vst.msk [vmem:[#allocation2 + $0x20] sm:$0xff] %vm245_vm0, %v835_v3  ;;  %v3664_v3 = vld [vmem:[%s3013_s1 + $0xb1] sm:$0xff] }
 0x135   : > { %838 = vst.msk [vmem:[#allocation2 + $0x28] sm:$0x3f] %vm275_vm1, %v836_v12  ;;  %v1035_v34 = vpop.permute.xlu1 %1034  ;;  %v1025_v19 = vld [vmem:[#allocation2 + $0x30] sm:$0xff]  ;;  %v1033_v41 = vpop.permute.xlu0 %1032 }
 0x136   : > { %v1038_v56 = vadd.f32 %v1033_v41, %v1025_v19 }
 0x137   : > { %v1026_v27 = vld [vmem:[#allocation2 + $0x38] sm:$0x3f]  ;;  %1418 = vrot.lane.b32.xlu1 %v1413_v5, %s2881_s20  ;;  %1416 = vrot.lane.b32.xlu0 %v1412_v18, %s2881_s20  ;;  %v1621_v5 = vstv %s1616_s29  ;;  %v3667_v18 = vld [vmem:[%s3013_s1 + $0xa9] sm:$0xff]  ;;  %s1826_s29 = scvt.s32.f32 %s3704_s27  ;;  %s3755_s27 = sld [smem:[#allocation6 + $0x1]] }
 0x138   : > { %v1039_v22 = vadd.f32 %v1035_v34, %v1026_v27  ;;  %1040 = vst.msk [vmem:[#allocation2 + $0x30] sm:$0xff] %vm245_vm0, %v1038_v56  ;;  %v642_v40 = vld [vmem:[#allocation2 + $0x18] sm:$0x3f]  ;;  %v641_v43 = vld [vmem:[#allocation2 + $0x10] sm:$0xff]  ;;  %v1622_v56 = vmul.f32 %v3667_v18, %v1621_v5 }
 0x139   : > { %v651_v14 = vpop.permute.xlu1 %650  ;;  %v649_v61 = vpop.permute.xlu0 %648 }
 0x13a   : > { %1041 = vst.msk [vmem:[#allocation2 + $0x38] sm:$0x3f] %vm275_vm1, %v1039_v22  ;;  %v655_v32 = vadd.f32 %v651_v14, %v642_v40  ;;  %v654_v45 = vadd.f32 %v649_v61, %v641_v43  ;;  %v1623_v22 = vmul.f32 %v3664_v3, %v1621_v5  ;;  %v3690_v14 = vld [vmem:[%s3013_s1 + $0xf1] sm:$0xff] }
 0x13b   : > { %1607 = vrot.lane.b32.xlu1 %v1602_v50, %s2881_s20  ;;  %1605 = vrot.lane.b32.xlu0 %v1601_v23, %s2881_s20  ;;  %v844_v1 = vld [vmem:[#allocation2 + $0x20] sm:$0xff] }
 0x13c   : > { %657 = vst.msk [vmem:[#allocation2 + $0x18] sm:$0x3f] %vm275_vm1, %v655_v32  ;;  %v845_v60 = vld [vmem:[#allocation2 + $0x28] sm:$0x3f]  ;;  %v3687_v23 = vld [vmem:[%s3013_s1 + $0xf9] sm:$0xff]  ;;  %s1448_s1 = scvt.s32.f32 %s3670_s23  ;;  %s3737_s23 = sld [smem:[#allocation6 + $0x6]] }
 0x13d   : > { %656 = vst.msk [vmem:[#allocation2 + $0x10] sm:$0xff] %vm245_vm0, %v654_v45  ;;  %v854_v17 = vpop.permute.xlu1 %853  ;;  %v852_v26 = vpop.permute.xlu0 %851  ;;  %s1894_s0 = scvt.s32.f32 %s3755_s27 }
 0x13e   : > { %v858_v28 = vadd.f32 %v854_v17, %v845_v60  ;;  %v857_v2 = vadd.f32 %v852_v26, %v844_v1  ;;  %v1264_v60 = vstv %s1259_s24  ;;  %s1938_s24 = scvt.s32.f32 %s3727_s7 }
 0x13f   : > { %1796 = vrot.lane.b32.xlu1 %v1791_v51, %s2881_s20  ;;  %1794 = vrot.lane.b32.xlu0 %v1790_v57, %s2881_s20  ;;  %v1047_v11 = vld [vmem:[#allocation2 + $0x30] sm:$0xff]  ;;  %v1812_v51 = vmul.f32 %v3687_v23, %v1810_v38  ;;  %v1811_v57 = vmul.f32 %v3690_v14, %v1810_v38  ;;  %v1266_v21 = vmul.f32 %v3529_v15, %v1264_v60 }
 0x140   : > { %860 = vst.msk [vmem:[#allocation2 + $0x28] sm:$0x3f] %vm275_vm1, %v858_v28 }
 0x141   : > { %859 = vst.msk [vmem:[#allocation2 + $0x20] sm:$0xff] %vm245_vm0, %v857_v2  ;;  %v1057_v9 = vpop.permute.xlu1 %1056  ;;  %v1048_v10 = vld [vmem:[#allocation2 + $0x38] sm:$0x3f]  ;;  %v1055_v13 = vpop.permute.xlu0 %1054 }
 0x142   : > { %v1061_v6 = vadd.f32 %v1057_v9, %v1048_v10  ;;  %v1060_v59 = vadd.f32 %v1055_v13, %v1047_v11  ;;  %v1265_v9 = vmul.f32 %v3532_v16, %v1264_v60  ;;  %v1453_v13 = vstv %s1448_s1  ;;  %s2004_s1 = scvt.s32.f32 %s3737_s23 }
 0x143   : > { %v1067_v30 = vld [vmem:[#allocation2 + $0x18] sm:$0xff]  ;;  %1250 = vrot.lane.b32.xlu1 %v1245_v7, %s2881_s20  ;;  %1248 = vrot.lane.b32.xlu0 %v1244_v42, %s2881_s20 }
 0x144   : > { %v1066_v12 = vld [vmem:[#allocation2 + $0x10] sm:$0xff]  ;;  %1083 = vst.msk [vmem:[#allocation2 + $0x18] sm:$0xff] %vm245_vm0, %v2878_v0  ;;  %1062 = vst.msk [vmem:[#allocation2 + $0x30] sm:$0xff] %vm245_vm0, %v1060_v59 }
 0x145   : > { %1063 = vst.msk [vmem:[#allocation2 + $0x38] sm:$0x3f] %vm275_vm1, %v1061_v6  ;;  %v1102_v52 = vpop.permute.xlu1 %1101  ;;  %v1100_v34 = vpop.permute.xlu0 %1099 }
 0x146   : > { %1075 = vst.msk [vmem:[%s3497_s26 + $0x18] sm:$0xff] %vm245_vm0, %v1067_v30  ;;  %1074 = vst.msk [vmem:[%s3497_s26 + $0x10] sm:$0xff] %vm245_vm0, %v1066_v12  ;;  %v1106_v27 = vadd.f32 %v1102_v52, %v1093_v55  ;;  %v1105_v19 = vadd.f32 %v1100_v34, %v1092_v62  ;;  %v1455_v55 = vmul.f32 %v3544_v44, %v1453_v13  ;;  %v1642_v12 = vstv %s1637_s28  ;;  %s3764_s28 = sld [smem:[#allocation6 + $0x4]] }
 0x147   : > { %1082 = vst.msk [vmem:[#allocation2 + $0x10] sm:$0xff] %vm245_vm0, %v2878_v0  ;;  %v1069_v41 = vld [vmem:[#allocation2 + $0x28] sm:$0xff]  ;;  %1439 = vrot.lane.b32.xlu1 %v1434_v29, %s2881_s20  ;;  %1437 = vrot.lane.b32.xlu0 %v1433_v46, %s2881_s20  ;;  %v1454_v29 = vmul.f32 %v3547_v4, %v1453_v13 }
 0x148   : > { %v1068_v50 = vld [vmem:[#allocation2 + $0x20] sm:$0xff]  ;;  %1085 = vst.msk [vmem:[#allocation2 + $0x28] sm:$0xff] %vm245_vm0, %v2878_v0  ;;  %1077 = vst.msk [vmem:[%s3497_s26 + $0x28] sm:$0xff] %vm245_vm0, %v1069_v41 }
 0x149   : > { %1109 = vst.msk [vmem:[#allocation2 + $0x8] sm:$0xff] %vm1107_vm2, %v1106_v27  ;;  %1108 = vst.msk [vmem:[#allocation2] sm:$0xff] %vm1107_vm2, %v1105_v19  ;;  %v1291_v40 = vpop.permute.xlu1 %1290  ;;  %v1122_v43 = vpop.permute.xlu0 %1121 }
 0x14a   : > { %1076 = vst.msk [vmem:[%s3497_s26 + $0x20] sm:$0xff] %vm245_vm0, %v1068_v50  ;;  %1084 = vst.msk [vmem:[#allocation2 + $0x20] sm:$0xff] %vm245_vm0, %v2878_v0  ;;  %v1831_v50 = vstv %s1826_s29  ;;  %s3773_s29 = sld [smem:[#allocation6 + $0x7]] }
 0x14b   : > { %1628 = vrot.lane.b32.xlu1 %v1623_v22, %s2881_s20  ;;  %1626 = vrot.lane.b32.xlu0 %v1622_v56, %s2881_s20  ;;  %v1284_v45 = vld [vmem:[#allocation2 + $0x18] sm:$0xff]  ;;  %v1070_v17 = vld [vmem:[#allocation2 + $0x30] sm:$0xff]  ;;  %v1644_v22 = vmul.f32 %v3560_v33, %v1642_v12  ;;  %v1643_v56 = vmul.f32 %v3563_v37, %v1642_v12 }
 0x14c   : > { %v1071_v61 = vld [vmem:[#allocation2 + $0x38] sm:$0xff]  ;;  %1078 = vst.msk [vmem:[%s3497_s26 + $0x30] sm:$0xff] %vm245_vm0, %v1070_v17  ;;  %1086 = vst.msk [vmem:[#allocation2 + $0x30] sm:$0xff] %vm245_vm0, %v2878_v0  ;;  %s1960_s7 = scvt.s32.f32 %s3764_s28 }
 0x14d   : > { %1087 = vst.msk [vmem:[#allocation2 + $0x38] sm:$0xff] %vm245_vm0, %v2878_v0  ;;  %1079 = vst.msk [vmem:[%s3497_s26 + $0x38] sm:$0xff] %vm245_vm0, %v1071_v61  ;;  %v1480_v1 = vpop.permute.xlu1 %1479  ;;  %v1293_v26 = vpop.permute.xlu0 %1292 }
 0x14e   : > { %v1283_v32 = vld [vmem:[#allocation2 + $0x10] sm:$0xff]  ;;  %v1297_v28 = vadd.f32 %v1293_v26, %v1284_v45 }
 0x14f   : > { %v1296_v58 = vadd.f32 %v1291_v40, %v1283_v32  ;;  %1817 = vrot.lane.b32.xlu1 %v1812_v51, %s2881_s20  ;;  %1815 = vrot.lane.b32.xlu0 %v1811_v57, %s2881_s20  ;;  %v1473_v42 = vld [vmem:[#allocation2 + $0x28] sm:$0xff]  ;;  %v1833_v51 = vmul.f32 %v3574_v48, %v1831_v50  ;;  %v1832_v57 = vmul.f32 %v3577_v53, %v1831_v50  ;;  %v1899_v50 = vstv %s1894_s0  ;;  %s3818_s0 = sld [smem:[#allocation6 + $0xb]] }
 0x150   : > { %v1114_v2 = vld [vmem:[#allocation2] sm:$0xff]  ;;  %1299 = vst.msk [vmem:[#allocation2 + $0x18] sm:$0xff] %vm1107_vm2, %v1297_v28  ;;  %v1115_v34 = vld [vmem:[#allocation2 + $0x8] sm:$0xff]  ;;  %s2026_s23 = scvt.s32.f32 %s3773_s29 }
 0x151   : > { %1298 = vst.msk [vmem:[#allocation2 + $0x10] sm:$0xff] %vm1107_vm2, %v1296_v58  ;;  %v1472_v7 = vld [vmem:[#allocation2 + $0x20] sm:$0xff]  ;;  %v1127_v10 = vadd.f32 %v1122_v43, %v1114_v2  ;;  %v1669_v6 = vpop.permute.xlu1 %1668  ;;  %v1482_v59 = vpop.permute.xlu0 %1481  ;;  %v1877_v58 = vstv %s1872_s8  ;;  %s3782_s8 = sld [smem:[#allocation6 + $0xa]] }
 0x152   : > { %v1485_v11 = vadd.f32 %v1480_v1, %v1472_v7  ;;  %v1486_v62 = vadd.f32 %v1482_v59, %v1473_v42  ;;  %v1879_v7 = vmul.f32 %v1877_v58, %v3408_v36  ;;  %v1878_v42 = vmul.f32 %v1877_v58, %v3411_v54 }
 0x153   : > { %1129 = vst.msk [vmem:[#allocation2] sm:$0xff] %vm1107_vm2, %v1127_v10  ;;  %1271 = vrot.lane.b32.xlu1 %v1266_v21, %s2881_s20  ;;  %1269 = vrot.lane.b32.xlu0 %v1265_v9, %s2881_s20  ;;  %v1661_v46 = vld [vmem:[#allocation2 + $0x30] sm:$0xff]  ;;  %v1943_v21 = vstv %s1938_s24  ;;  %s3791_s24 = sld [smem:[#allocation6 + $0x2]] }
 0x154   : > { %1487 = vst.msk [vmem:[#allocation2 + $0x20] sm:$0xff] %vm1107_vm2, %v1485_v11  ;;  %v1662_v30 = vld [vmem:[#allocation2 + $0x38] sm:$0xff]  ;;  %1488 = vst.msk [vmem:[#allocation2 + $0x28] sm:$0xff] %vm1107_vm2, %v1486_v62  ;;  %v1674_v5 = vadd.f32 %v1669_v6, %v1661_v46  ;;  %v1945_v36 = vmul.f32 %v3424_v47, %v1943_v21  ;;  %v1944_v54 = vmul.f32 %v3427_v49, %v1943_v21  ;;  %v2009_v62 = vstv %s2004_s1  ;;  %s3800_s1 = sld [smem:[#allocation6 + $0x5]] }
 0x155   : > { %v1124_v52 = vpop.permute.xlu1 %1123  ;;  %v1671_v27 = vpop.permute.xlu0 %1670  ;;  %v2011_v47 = vmul.f32 %v3608_v24, %v2009_v62  ;;  %v2010_v49 = vmul.f32 %v3611_v31, %v2009_v62 }
 0x156   : > { %v1128_v19 = vadd.f32 %v1124_v52, %v1115_v34  ;;  %v1675_v41 = vadd.f32 %v1671_v27, %v1662_v30  ;;  %1676 = vst.msk [vmem:[#allocation2 + $0x30] sm:$0xff] %vm1107_vm2, %v1674_v5 }
 0x157   : > { %1460 = vrot.lane.b32.xlu1 %v1455_v55, %s2881_s20  ;;  %1458 = vrot.lane.b32.xlu0 %v1454_v29, %s2881_s20  ;;  %v1305_v40 = vld [vmem:[#allocation2 + $0x18] sm:$0xff] }
 0x158   : > { %1130 = vst.msk [vmem:[#allocation2 + $0x8] sm:$0xff] %vm1107_vm2, %v1128_v19  ;;  %1677 = vst.msk [vmem:[#allocation2 + $0x38] sm:$0xff] %vm1107_vm2, %v1675_v41  ;;  %v1304_v43 = vld [vmem:[#allocation2 + $0x10] sm:$0xff] }
 0x159   : > { %v1314_v38 = vpop.permute.xlu1 %1313  ;;  %v1312_v61 = vpop.permute.xlu0 %1311  ;;  %s1916_s27 = scvt.s32.f32 %s3791_s24 }
 0x15a   : > { %v1318_v32 = vadd.f32 %v1314_v38, %v1305_v40  ;;  %v1317_v45 = vadd.f32 %v1312_v61, %v1304_v43  ;;  %v1135_v29 = vld [vmem:[#allocation2] sm:$0xff]  ;;  %s1982_s28 = scvt.s32.f32 %s3800_s1 }
 0x15b   : > { %1649 = vrot.lane.b32.xlu1 %v1644_v22, %s2881_s20  ;;  %1647 = vrot.lane.b32.xlu0 %v1643_v56, %s2881_s20  ;;  %v1494_v60 = vld [vmem:[#allocation2 + $0x28] sm:$0xff]  ;;  %v1493_v1 = vld [vmem:[#allocation2 + $0x20] sm:$0xff] }
 0x15c   : > { %1320 = vst.msk [vmem:[#allocation2 + $0x18] sm:$0xff] %vm1107_vm2, %v1318_v32  ;;  %1319 = vst.msk [vmem:[#allocation2 + $0x10] sm:$0xff] %vm1107_vm2, %v1317_v45 }
 0x15d   : > { %v1503_v17 = vpop.permute.xlu1 %1502  ;;  %v1501_v26 = vpop.permute.xlu0 %1500  ;;  %v1682_v11 = vld [vmem:[#allocation2 + $0x30] sm:$0xff] }
 0x15e   : > { %v1507_v28 = vadd.f32 %v1503_v17, %v1494_v60  ;;  %v1506_v2 = vadd.f32 %v1501_v26, %v1493_v1 }
 0x15f   : > { %1838 = vrot.lane.b32.xlu1 %v1833_v51, %s2881_s20  ;;  %1836 = vrot.lane.b32.xlu0 %v1832_v57, %s2881_s20  ;;  %v1683_v10 = vld [vmem:[#allocation2 + $0x38] sm:$0xff]  ;;  %s2070_s20 = scvt.s32.f32 %s3746_s25  ;;  %v1136_v55 = vld [vmem:[#allocation2 + $0x8] sm:$0xff]  ;;  %v1965_v51 = vstv %s1960_s7  ;;  %s2092_s25 = scvt.s32.f32 %s3782_s8 }
 0x160   : > { %1509 = vst.msk [vmem:[#allocation2 + $0x28] sm:$0xff] %vm1107_vm2, %v1507_v28  ;;  %1508 = vst.msk [vmem:[#allocation2 + $0x20] sm:$0xff] %vm1107_vm2, %v1506_v2  ;;  %v2031_v28 = vstv %s2026_s23  ;;  %s2114_s7 = scvt.s32.f32 %s3818_s0  ;;  %s3847_s8 = sshll.u32 %s2865_s12, 10 }
 0x161   : > { %v1692_v9 = vpop.permute.xlu1 %1691  ;;  %v1690_v13 = vpop.permute.xlu0 %1689  ;;  %v2075_v52 = vstv %s2070_s20  ;;  %s3809_s20 = sld [smem:[#allocation6 + $0x8]]  ;;  %s2177_s12 = sshll.u32 %s3497_s26, 4  ;;  %s3860_s12 = int_to_ptr.vmem [resolvable:$true] %s2177_s12 }
 0x162   : > { %v1696_v6 = vadd.f32 %v1692_v9, %v1683_v10  ;;  %v1695_v59 = vadd.f32 %v1690_v13, %v1682_v11  ;;  %v2077_v24 = vmul.f32 %v3623_v35, %v2075_v52  ;;  %v2076_v31 = vmul.f32 %v3626_v39, %v2075_v52  ;;  %s2733_s1 = scalar_lea.vmem %s3860_s12, 1024  ;;  %s2882_s26 = smov [#allocation7]  }
 0x163   : > { %1884 = vrot.lane.b32.xlu1 %v1879_v7, %s2879_s18  ;;  %1882 = vrot.lane.b32.xlu0 %v1878_v42, %s2879_s18  ;;  %v1326_v27 = vld [vmem:[#allocation2 + $0x18] sm:$0xff]  ;;  %v1325_v19 = vld [vmem:[#allocation2 + $0x10] sm:$0xff]  ;;  %v1901_v35 = vmul.f32 %v3469_v63, %v1899_v50  ;;  %v1900_v39 = vmul.f32 %v3472_v8, %v1899_v50  ;;  %v1967_v63 = vmul.f32 %v3486_v25, %v1965_v51  ;;  %v2097_v11 = vstv %s2092_s25  ;;  %s3855_s25 = scalar_lea.hbm %s4093_s4, %s3847_s8  ;;  %p2734_p13 = scmp.ne.s32.totalorder %s3860_s12, %s2733_s1 }
 0x164   : > { %1698 = vst.msk [vmem:[#allocation2 + $0x38] sm:$0xff] %vm1107_vm2, %v1696_v6  ;;  %1697 = vst.msk [vmem:[#allocation2 + $0x30] sm:$0xff] %vm1107_vm2, %v1695_v59  ;;  %v1966_v8 = vmul.f32 %v3489_v20, %v1965_v51  ;;  %v2033_v25 = vmul.f32 %v3664_v3, %v2031_v28  ;;  %v2032_v20 = vmul.f32 %v3667_v18, %v2031_v28 }
 0x165   : > { %v1145_v30 = vpop.permute.xlu1 %1144  ;;  %v1143_v46 = vpop.permute.xlu0 %1142  ;;  %v2099_v3 = vmul.f32 %v3687_v23, %v2097_v11  ;;  %v2098_v18 = vmul.f32 %v3690_v14, %v2097_v11  ;;  %p2735_p0 = pnand %p2734_p13, %p2973_p5 }
 0x166   : > { %v1149_v12 = vadd.f32 %v1145_v30, %v1136_v55  ;;  %v1148_v5 = vadd.f32 %v1143_v46, %v1135_v29  ;;  %v1921_v30 = vstv %s1916_s27  ;;  %s2737_s27 = sshll.u32 %s2882_s26, 4  ;;  %s2738_s27 = int_to_ptr.vmem [resolvable:$false] %s2737_s27 }
 0x167   : > { %1950 = vrot.lane.b32.xlu1 %v1945_v36, %s2879_s18  ;;  %1948 = vrot.lane.b32.xlu0 %v1944_v54, %s2879_s18  ;;  %v1515_v40 = vld [vmem:[#allocation2 + $0x28] sm:$0xff]  ;;  %v1514_v43 = vld [vmem:[#allocation2 + $0x20] sm:$0xff]  ;;  %v1923_v23 = vmul.f32 %v3529_v15, %v1921_v30  ;;  %v1922_v14 = vmul.f32 %v3532_v16, %v1921_v30  ;;  %s2048_s29 = scvt.s32.f32 %s3809_s20  ;;  %p2736_p1 = pneg %p2735_p0 }
 0x168   : > { %1151 = vst.msk [vmem:[#allocation2 + $0x8] sm:$0xff] %vm1107_vm2, %v1149_v12  ;;  %1150 = vst.msk [vmem:[#allocation2] sm:$0xff] %vm1107_vm2, %v1148_v5  ;;  %s2739_s20 = scalar_lea.vmem %s2738_s27, 2048  ;;  %p2740_p2 = scmp.lt.s32.totalorder %s3860_s12, %s2738_s27 }
 0x169   : > { %v1335_v34 = vpop.permute.xlu1 %1334  ;;  %v1333_v41 = vpop.permute.xlu0 %1332  ;;  %p2741_p3 = scmp.lt.s32.totalorder %s2739_s20, %s2733_s1 }
 0x16a   : > { %v1339_v22 = vadd.f32 %v1335_v34, %v1326_v27  ;;  %v1338_v56 = vadd.f32 %v1333_v41, %v1325_v19 }
 0x16b   : > { %2016 = vrot.lane.b32.xlu1 %v2011_v47, %s2879_s18  ;;  %2014 = vrot.lane.b32.xlu0 %v2010_v49, %s2879_s18  ;;  %v1704_v58 = vld [vmem:[#allocation2 + $0x38] sm:$0xff]  ;;  %v1703_v17 = vld [vmem:[#allocation2 + $0x30] sm:$0xff]  ;;  %v1987_v49 = vstv %s1982_s28  ;;  %p2742_p4 = por %p2741_p3, %p2740_p2 }
 0x16c   : > { %1341 = vst.msk [vmem:[#allocation2 + $0x18] sm:$0xff] %vm1107_vm2, %v1339_v22  ;;  %1340 = vst.msk [vmem:[#allocation2 + $0x10] sm:$0xff] %vm1107_vm2, %v1338_v56  ;;  %v1989_v15 = vmul.f32 %v3544_v44, %v1987_v49  ;;  %v1988_v16 = vmul.f32 %v3547_v4, %v1987_v49  ;;  %v2053_v56 = vstv %s2048_s29 }
 0x16d   : > { %v1524_v38 = vpop.permute.xlu1 %1523  ;;  %v1522_v61 = vpop.permute.xlu0 %1521  ;;  %v2055_v44 = vmul.f32 %v3560_v33, %v2053_v56  ;;  %v2054_v4 = vmul.f32 %v3563_v37, %v2053_v56  ;;  %p2743_p6 = pnand %p2742_p4, %p2736_p1 }
 0x16e   : > { %v1528_v32 = vadd.f32 %v1524_v38, %v1515_v40  ;;  %v1527_v45 = vadd.f32 %v1522_v61, %v1514_v43  ;;  %v2119_v61 = vstv %s2114_s7 }
 0x16f   : > { %2082 = vrot.lane.b32.xlu1 %v2077_v24, %s2879_s18  ;;  %2080 = vrot.lane.b32.xlu0 %v2076_v31, %s2879_s18  ;;  %v1157_v7 = vld [vmem:[#allocation2 + $0x8] sm:$0xff]  ;;  %v1156_v42 = vld [vmem:[#allocation2] sm:$0xff]  ;;  %v2121_v33 = vmul.f32 %v3574_v48, %v2119_v61  ;;  %v2120_v37 = vmul.f32 %v3577_v53, %v2119_v61 }
 0x170   : > { %1530 = vst.msk [vmem:[#allocation2 + $0x28] sm:$0xff] %vm1107_vm2, %v1528_v32  ;;  %1529 = vst.msk [vmem:[#allocation2 + $0x20] sm:$0xff] %vm1107_vm2, %v1527_v45 }
 0x171   : > { %v1713_v57 = vpop.permute.xlu1 %1712  ;;  %v1711_v60 = vpop.permute.xlu0 %1710 }
 0x172   : > { %v1717_v1 = vadd.f32 %v1713_v57, %v1704_v58  ;;  %v1716_v26 = vadd.f32 %v1711_v60, %v1703_v17 }
 0x173   : > { %1906 = vrot.lane.b32.xlu1 %v1901_v35, %s2879_s18  ;;  %1904 = vrot.lane.b32.xlu0 %v1900_v39, %s2879_s18  ;;  %v1347_v6 = vld [vmem:[#allocation2 + $0x18] sm:$0xff]  ;;  %v1346_v59 = vld [vmem:[#allocation2 + $0x10] sm:$0xff] }
 0x174   : > { %1719 = vst.msk [vmem:[#allocation2 + $0x38] sm:$0xff] %vm1107_vm2, %v1717_v1  ;;  %1718 = vst.msk [vmem:[#allocation2 + $0x30] sm:$0xff] %vm1107_vm2, %v1716_v26 }
 0x175   : > { %v1166_v2 = vpop.permute.xlu1 %1165  ;;  %v1164_v21 = vpop.permute.xlu0 %1163 }
 0x176   : > { %v1170_v9 = vadd.f32 %v1166_v2, %v1157_v7  ;;  %v1169_v10 = vadd.f32 %v1164_v21, %v1156_v42 }
 0x177   : > { %1972 = vrot.lane.b32.xlu1 %v1967_v63, %s2879_s18  ;;  %1970 = vrot.lane.b32.xlu0 %v1966_v8, %s2879_s18  ;;  %v1536_v29 = vld [vmem:[#allocation2 + $0x28] sm:$0xff]  ;;  %v1535_v46 = vld [vmem:[#allocation2 + $0x20] sm:$0xff] }
 0x178   : > { %1172 = vst.msk [vmem:[#allocation2 + $0x8] sm:$0xff] %vm245_vm0, %v1170_v9  ;;  %1171 = vst.msk [vmem:[#allocation2] sm:$0xff] %vm245_vm0, %v1169_v10 }
 0x179   : > { %v1356_v13 = vpop.permute.xlu1 %1355  ;;  %v1354_v36 = vpop.permute.xlu0 %1353 }
 0x17a   : > { %v1360_v54 = vadd.f32 %v1356_v13, %v1347_v6  ;;  %v1359_v62 = vadd.f32 %v1354_v36, %v1346_v59 }
 0x17b   : > { %2038 = vrot.lane.b32.xlu1 %v2033_v25, %s2879_s18  ;;  %2036 = vrot.lane.b32.xlu0 %v2032_v20, %s2879_s18  ;;  %v1725_v34 = vld [vmem:[#allocation2 + $0x38] sm:$0xff]  ;;  %v1724_v27 = vld [vmem:[#allocation2 + $0x30] sm:$0xff] }
 0x17c   : > { %1362 = vst.msk [vmem:[#allocation2 + $0x18] sm:$0xff] %vm245_vm0, %v1360_v54  ;;  %1361 = vst.msk [vmem:[#allocation2 + $0x10] sm:$0xff] %vm245_vm0, %v1359_v62 }
 0x17d   : > { %v1545_v55 = vpop.permute.xlu1 %1544  ;;  %v1543_v12 = vpop.permute.xlu0 %1542 }
 0x17e   : > { %v1549_v5 = vadd.f32 %v1545_v55, %v1536_v29  ;;  %v1548_v47 = vadd.f32 %v1543_v12, %v1535_v46 }
 0x17f   : > { %2104 = vrot.lane.b32.xlu1 %v2099_v3, %s2879_s18  ;;  %2102 = vrot.lane.b32.xlu0 %v2098_v18, %s2879_s18  ;;  %v1178_v31 = vld [vmem:[#allocation2 + $0x8] sm:$0xff]  ;;  %v1177_v50 = vld [vmem:[#allocation2] sm:$0xff] }
 0x180   : > { %1551 = vst.msk [vmem:[#allocation2 + $0x28] sm:$0xff] %vm245_vm0, %v1549_v5  ;;  %1550 = vst.msk [vmem:[#allocation2 + $0x20] sm:$0xff] %vm245_vm0, %v1548_v47 }
 0x181   : > { %v1734_v52 = vpop.permute.xlu1 %1733  ;;  %v1732_v19 = vpop.permute.xlu0 %1731 }
 0x182   : > { %v1738_v41 = vadd.f32 %v1734_v52, %v1725_v34  ;;  %v1737_v22 = vadd.f32 %v1732_v19, %v1724_v27 }
 0x183   : > { %1928 = vrot.lane.b32.xlu1 %v1923_v23, %s2879_s18  ;;  %1926 = vrot.lane.b32.xlu0 %v1922_v14, %s2879_s18  ;;  %v1368_v45 = vld [vmem:[#allocation2 + $0x18] sm:$0xff]  ;;  %v1367_v35 = vld [vmem:[#allocation2 + $0x10] sm:$0xff] }
 0x184   : > { %1740 = vst.msk [vmem:[#allocation2 + $0x38] sm:$0xff] %vm245_vm0, %v1738_v41  ;;  %1739 = vst.msk [vmem:[#allocation2 + $0x30] sm:$0xff] %vm245_vm0, %v1737_v22 }
 0x185   : > { %v1187_v24 = vpop.permute.xlu1 %1186  ;;  %v1185_v38 = vpop.permute.xlu0 %1184 }
 0x186   : > { %v1191_v40 = vadd.f32 %v1187_v24, %v1178_v31  ;;  %v1190_v43 = vadd.f32 %v1185_v38, %v1177_v50 }
 0x187   : > { %1994 = vrot.lane.b32.xlu1 %v1989_v15, %s2879_s18  ;;  %1992 = vrot.lane.b32.xlu0 %v1988_v16, %s2879_s18  ;;  %v1557_v17 = vld [vmem:[#allocation2 + $0x28] sm:$0xff]  ;;  %v1556_v60 = vld [vmem:[#allocation2 + $0x20] sm:$0xff] }
 0x188   : > { %1193 = vst.msk [vmem:[#allocation2 + $0x8] sm:$0xff] %vm245_vm0, %v1191_v40  ;;  %1192 = vst.msk [vmem:[#allocation2] sm:$0xff] %vm245_vm0, %v1190_v43 }
 0x189   : > { %v1377_v32 = vpop.permute.xlu1 %1376  ;;  %v1375_v39 = vpop.permute.xlu0 %1374 }
 0x18a   : > { %v1381_v51 = vadd.f32 %v1377_v32, %v1368_v45  ;;  %v1380_v57 = vadd.f32 %v1375_v39, %v1367_v35 }
 0x18b   : > { %2060 = vrot.lane.b32.xlu1 %v2055_v44, %s2879_s18  ;;  %2058 = vrot.lane.b32.xlu0 %v2054_v4, %s2879_s18  ;;  %v1746_v53 = vld [vmem:[#allocation2 + $0x38] sm:$0xff]  ;;  %v1745_v8 = vld [vmem:[#allocation2 + $0x30] sm:$0xff] }
 0x18c   : > { %1383 = vst.msk [vmem:[#allocation2 + $0x18] sm:$0xff] %vm245_vm0, %v1381_v51  ;;  %1382 = vst.msk [vmem:[#allocation2 + $0x10] sm:$0xff] %vm245_vm0, %v1380_v57 }
 0x18d   : > { %v1566_v58 = vpop.permute.xlu1 %1565  ;;  %v1564_v1 = vpop.permute.xlu0 %1563 }
 0x18e   : > { %v1570_v26 = vadd.f32 %v1566_v58, %v1557_v17  ;;  %v1569_v63 = vadd.f32 %v1564_v1, %v1556_v60 }
 0x18f   : > { %2126 = vrot.lane.b32.xlu1 %v2121_v33, %s2879_s18  ;;  %2124 = vrot.lane.b32.xlu0 %v2120_v37, %s2879_s18  ;;  %s3864_s18 = scalar_lea.sflag [#allocation8], %s213_s30 }
 0x190   : > { %1572 = vst.msk [vmem:[#allocation2 + $0x28] sm:$0xff] %vm245_vm0, %v1570_v26  ;;  %1571 = vst.msk [vmem:[#allocation2 + $0x20] sm:$0xff] %vm245_vm0, %v1569_v63 }
 0x191   : > { %v1755_v48 = vpop.permute.xlu1 %1754  ;;  %v1753_v28 = vpop.permute.xlu0 %1752 }
 0x192   : > { %v1759_v2 = vadd.f32 %v1755_v48, %v1746_v53  ;;  %v1758_v7 = vadd.f32 %v1753_v28, %v1745_v8 }
 0x193   : > { %2746 = shalt.err (!%p2743_p6)
}
 0x194   : > { %s2747_s30 = scalar_lea.hbm %s3855_s25, 1024  ;;  %s2751_s29 = scalar_lea.hbm %s4093_s4, 2048 }
 0x195   : > { %p2748_p7 = scmp.ne.s32.totalorder %s3855_s25, %s2747_s30  ;;  %p2752_p11 = scmp.lt.u32.totalorder %s3855_s25, %s4093_s4 }
 0x196   : > { %p2753_p12 = scmp.lt.u32.totalorder %s2751_s29, %s2747_s30  ;;  %p2755_p0 = scmp.lt.u32.totalorder %s2747_s30, %s3855_s25 }
 0x197   : > { %p2749_p8 = pnand %p2748_p7, %p2973_p5 }
 0x198   : > { %p2754_p13 = por %p2753_p12, %p2752_p11 }
 0x199   : > { %p2750_p10 = pneg %p2749_p8 }
 0x19a   : > { %p2756_p1 = por %p2755_p0, %p2754_p13 }
 0x19c   : > { %p2757_p2 = pnand %p2756_p1, %p2750_p10 }
 0x19e   : > { %2760 = shalt.err (!%p2757_p2)
}
 0x19f   : > { %s2883_s24 = smov 128   ;;  %s2884_s1 = smov 8   ;;  %1761 = vst.msk [vmem:[#allocation2 + $0x38] sm:$0xff] %vm245_vm0, %v1759_v2  ;;  %1760 = vst.msk [vmem:[#allocation2 + $0x30] sm:$0xff] %vm245_vm0, %v1758_v7  ;;  %v1208_v42 = vpop.permute.xlu1 %1207  ;;  %v1199_v21 = vld [vmem:[#allocation2 + $0x8] sm:$0xff]  ;;  %v1198_v9 = vld [vmem:[#allocation2] sm:$0xff]  ;;  %v1206_v10 = vpop.permute.xlu0 %1205 }
 0x1a0   : > { %2623 = dma.vmem_to_hbm [thread:$0]  (%p2973_p5), %s3860_s12, 1024, %s3855_s25, %s3864_s18, %s2883_s24, %s2883_s24, %s2884_s1   ;;  %v1212_v25 = vadd.f32 %v1208_v42, %v1199_v21  ;;  %v1211_v20 = vadd.f32 %v1206_v10, %v1198_v9  ;;  %v1389_v13 = vld [vmem:[#allocation2 + $0x18] sm:$0xff]  ;;  %v1388_v6 = vld [vmem:[#allocation2 + $0x10] sm:$0xff]  ;;  %v1578_v3 = vld [vmem:[#allocation2 + $0x28] sm:$0xff]  ;;  %vm1234_vm3 = vcmask 113664  }
 0x1a1   : > { %v1577_v18 = vld [vmem:[#allocation2 + $0x20] sm:$0xff]  ;;  %s3928_s25 = scalar_lea.vmem [#allocation9], %s3460_s9  ;;  %s3946_s12 = sand.u32 1, %s2364_s15  }
 0x1a2   : > { %1214 = vst.msk [vmem:[#allocation2 + $0x8] sm:$0xff] %vm245_vm0, %v1212_v25  ;;  %1213 = vst.msk [vmem:[#allocation2] sm:$0xff] %vm245_vm0, %v1211_v20  ;;  %s2196_s18 = sshll.u32 %s3928_s25, 4  ;;  %s3963_s27 = scalar_lea.hbm %s4094_s5, %s3847_s8  ;;  %s3965_s18 = int_to_ptr.vmem [resolvable:$true] %s2196_s18 }
 0x1a3   : > { %v1398_v11 = vpop.permute.xlu1 %1397  ;;  %v1396_v59 = vpop.permute.xlu0 %1395  ;;  %s2156_s20 = scalar_lea.sflag [#allocation10], %s3946_s12  ;;  %s2761_s30 = scalar_lea.vmem %s3965_s18, 1024 }
 0x1a4   : > { %v1402_v36 = vadd.f32 %v1398_v11, %v1389_v13  ;;  %v1401_v54 = vadd.f32 %v1396_v59, %v1388_v6  ;;  %p2762_p3 = scmp.ne.s32.totalorder %s3965_s18, %s2761_s30  ;;  %s2885_s28 = smov [#allocation9]  }
 0x1a5   : > { %s2765_s0 = sshll.u32 %s2885_s28, 4  ;;  %s2766_s0 = int_to_ptr.vmem [resolvable:$false] %s2765_s0 }
 0x1a6   : > { %1404 = vst.msk [vmem:[#allocation2 + $0x18] sm:$0xff] %vm245_vm0, %v1402_v36  ;;  %1403 = vst.msk [vmem:[#allocation2 + $0x10] sm:$0xff] %vm245_vm0, %v1401_v54  ;;  %v1767_v12 = vld [vmem:[#allocation2 + $0x38] sm:$0xff]  ;;  %v1766_v5 = vld [vmem:[#allocation2 + $0x30] sm:$0xff]  ;;  %p2763_p4 = pnand %p2762_p3, %p2973_p5  ;;  %s2767_s29 = scalar_lea.vmem %s2766_s0, 2048 }
 0x1a7   : > { %v1587_v62 = vpop.permute.xlu1 %1586  ;;  %v1585_v30 = vpop.permute.xlu0 %1584  ;;  %p2768_p7 = scmp.lt.s32.totalorder %s3965_s18, %s2766_s0  ;;  %p2769_p8 = scmp.lt.s32.totalorder %s2767_s29, %s2761_s30 }
 0x1a8   : > { %v1591_v55 = vadd.f32 %v1587_v62, %v1578_v3  ;;  %v1590_v29 = vadd.f32 %v1585_v30, %v1577_v18  ;;  %p2764_p6 = pneg %p2763_p4 }
 0x1a9   : > { %v1220_v52 = vld [vmem:[#allocation2 + $0x8] sm:$0xff]  ;;  %v1219_v34 = vld [vmem:[#allocation2] sm:$0xff]  ;;  %p2770_p10 = por %p2769_p8, %p2768_p7 }
 0x1aa   : > { %1593 = vst.msk [vmem:[#allocation2 + $0x28] sm:$0xff] %vm245_vm0, %v1591_v55  ;;  %1592 = vst.msk [vmem:[#allocation2 + $0x20] sm:$0xff] %vm245_vm0, %v1590_v29 }
 0x1ab   : > { %v1776_v46 = vpop.permute.xlu1 %1775  ;;  %v1774_v47 = vpop.permute.xlu0 %1773  ;;  %p2771_p11 = pnand %p2770_p10, %p2764_p6 }
 0x1ac   : > { %v1780_v23 = vadd.f32 %v1776_v46, %v1767_v12  ;;  %v1779_v14 = vadd.f32 %v1774_v47, %v1766_v5 }
 0x1ad   : > { %v1410_v15 = vld [vmem:[#allocation2 + $0x18] sm:$0xff]  ;;  %v1409_v16 = vld [vmem:[#allocation2 + $0x10] sm:$0xff] }
 0x1ae   : > { %1782 = vst.msk [vmem:[#allocation2 + $0x38] sm:$0xff] %vm245_vm0, %v1780_v23  ;;  %1781 = vst.msk [vmem:[#allocation2 + $0x30] sm:$0xff] %vm245_vm0, %v1779_v14 }
 0x1af   : > { %v1229_v49 = vpop.permute.xlu1 %1228  ;;  %v1227_v27 = vpop.permute.xlu0 %1226 }
 0x1b0   : > { %v1233_v19 = vadd.f32 %v1229_v49, %v1220_v52  ;;  %v1232_v41 = vadd.f32 %v1227_v27, %v1219_v34 }
 0x1b1   : > { %v1599_v38 = vld [vmem:[#allocation2 + $0x28] sm:$0xff]  ;;  %v1598_v40 = vld [vmem:[#allocation2 + $0x20] sm:$0xff] }
 0x1b2   : > { %1236 = vst.msk [vmem:[#allocation2 + $0x8] sm:$0xff] %vm1234_vm3, %v1233_v19  ;;  %1235 = vst.msk [vmem:[#allocation2] sm:$0xff] %vm1234_vm3, %v1232_v41 }
 0x1b3   : > { %v1419_v22 = vpop.permute.xlu1 %1418  ;;  %v1417_v56 = vpop.permute.xlu0 %1416 }
 0x1b4   : > { %v1423_v24 = vadd.f32 %v1419_v22, %v1410_v15  ;;  %v1422_v31 = vadd.f32 %v1417_v56, %v1409_v16 }
 0x1b5   : > { %v1788_v32 = vld [vmem:[#allocation2 + $0x38] sm:$0xff]  ;;  %v1787_v45 = vld [vmem:[#allocation2 + $0x30] sm:$0xff] }
 0x1b6   : > { %1425 = vst.msk [vmem:[#allocation2 + $0x18] sm:$0xff] %vm1234_vm3, %v1423_v24  ;;  %1424 = vst.msk [vmem:[#allocation2 + $0x10] sm:$0xff] %vm1234_vm3, %v1422_v31 }
 0x1b7   : > { %v1608_v50 = vpop.permute.xlu1 %1607  ;;  %v1606_v43 = vpop.permute.xlu0 %1605 }
 0x1b8   : > { %v1612_v44 = vadd.f32 %v1608_v50, %v1599_v38  ;;  %v1611_v4 = vadd.f32 %v1606_v43, %v1598_v40 }
 0x1b9   : > { %v1242_v33 = vld [vmem:[#allocation2 + $0x8] sm:$0xff]  ;;  %v1241_v37 = vld [vmem:[#allocation2] sm:$0xff] }
 0x1ba   : > { %1614 = vst.msk [vmem:[#allocation2 + $0x28] sm:$0xff] %vm1234_vm3, %v1612_v44  ;;  %1613 = vst.msk [vmem:[#allocation2 + $0x20] sm:$0xff] %vm1234_vm3, %v1611_v4 }
 0x1bb   : > { %v1797_v61 = vpop.permute.xlu1 %1796  ;;  %v1795_v35 = vpop.permute.xlu0 %1794 }
 0x1bc   : > { %v1801_v39 = vadd.f32 %v1797_v61, %v1788_v32  ;;  %v1800_v51 = vadd.f32 %v1795_v35, %v1787_v45 }
 0x1bd   : > { %v1431_v26 = vld [vmem:[#allocation2 + $0x18] sm:$0xff]  ;;  %v1430_v63 = vld [vmem:[#allocation2 + $0x10] sm:$0xff] }
 0x1be   : > { %1803 = vst.msk [vmem:[#allocation2 + $0x38] sm:$0xff] %vm1234_vm3, %v1801_v39  ;;  %1802 = vst.msk [vmem:[#allocation2 + $0x30] sm:$0xff] %vm1234_vm3, %v1800_v51 }
 0x1bf   : > { %v1251_v57 = vpop.permute.xlu1 %1250  ;;  %v1249_v58 = vpop.permute.xlu0 %1248 }
 0x1c0   : > { %v1255_v17 = vadd.f32 %v1251_v57, %v1242_v33  ;;  %v1254_v60 = vadd.f32 %v1249_v58, %v1241_v37 }
 0x1c1   : > { %v1620_v2 = vld [vmem:[#allocation2 + $0x28] sm:$0xff]  ;;  %v1619_v7 = vld [vmem:[#allocation2 + $0x20] sm:$0xff] }
 0x1c2   : > { %1257 = vst.msk [vmem:[#allocation2 + $0x8] sm:$0xff] %vm1234_vm3, %v1255_v17  ;;  %1256 = vst.msk [vmem:[#allocation2] sm:$0xff] %vm1234_vm3, %v1254_v60 }
 0x1c3   : > { %v1440_v1 = vpop.permute.xlu1 %1439  ;;  %v1438_v48 = vpop.permute.xlu0 %1437 }
 0x1c4   : > { %v1444_v53 = vadd.f32 %v1440_v1, %v1431_v26  ;;  %v1443_v8 = vadd.f32 %v1438_v48, %v1430_v63 }
 0x1c5   : > { %v1809_v25 = vld [vmem:[#allocation2 + $0x38] sm:$0xff]  ;;  %v1808_v20 = vld [vmem:[#allocation2 + $0x30] sm:$0xff] }
 0x1c6   : > { %1446 = vst.msk [vmem:[#allocation2 + $0x18] sm:$0xff] %vm1234_vm3, %v1444_v53  ;;  %1445 = vst.msk [vmem:[#allocation2 + $0x10] sm:$0xff] %vm1234_vm3, %v1443_v8 }
 0x1c7   : > { %v1629_v28 = vpop.permute.xlu1 %1628  ;;  %v1627_v42 = vpop.permute.xlu0 %1626 }
 0x1c8   : > { %v1633_v21 = vadd.f32 %v1629_v28, %v1620_v2  ;;  %v1632_v9 = vadd.f32 %v1627_v42, %v1619_v7 }
 0x1c9   : > { %v1263_v36 = vld [vmem:[#allocation2 + $0x8] sm:$0xff]  ;;  %v1262_v54 = vld [vmem:[#allocation2] sm:$0xff] }
 0x1ca   : > { %1635 = vst.msk [vmem:[#allocation2 + $0x28] sm:$0xff] %vm1234_vm3, %v1633_v21  ;;  %1634 = vst.msk [vmem:[#allocation2 + $0x20] sm:$0xff] %vm1234_vm3, %v1632_v9 }
 0x1cb   : > { %v1818_v10 = vpop.permute.xlu1 %1817  ;;  %v1816_v11 = vpop.permute.xlu0 %1815 }
 0x1cc   : > { %v1822_v13 = vadd.f32 %v1818_v10, %v1809_v25  ;;  %v1821_v6 = vadd.f32 %v1816_v11, %v1808_v20 }
 0x1cd   : > { %v1452_v55 = vld [vmem:[#allocation2 + $0x18] sm:$0xff]  ;;  %v1451_v29 = vld [vmem:[#allocation2 + $0x10] sm:$0xff] }
 0x1ce   : > { %1824 = vst.msk [vmem:[#allocation2 + $0x38] sm:$0xff] %vm1234_vm3, %v1822_v13  ;;  %1823 = vst.msk [vmem:[#allocation2 + $0x30] sm:$0xff] %vm1234_vm3, %v1821_v6 }
 0x1cf   : > { %v1272_v59 = vpop.permute.xlu1 %1271  ;;  %v1270_v62 = vpop.permute.xlu0 %1269 }
 0x1d0   : > { %v1276_v3 = vadd.f32 %v1272_v59, %v1263_v36  ;;  %v1275_v18 = vadd.f32 %v1270_v62, %v1262_v54 }
 0x1d1   : > { %v1641_v23 = vld [vmem:[#allocation2 + $0x28] sm:$0xff]  ;;  %v1640_v14 = vld [vmem:[#allocation2 + $0x20] sm:$0xff] }
 0x1d2   : > { %1278 = vst.msk [vmem:[#allocation2 + $0x8] sm:$0xff] %vm1234_vm3, %v1276_v3  ;;  %1277 = vst.msk [vmem:[#allocation2] sm:$0xff] %vm1234_vm3, %v1275_v18 }
 0x1d3   : > { %v1461_v30 = vpop.permute.xlu1 %1460  ;;  %v1459_v46 = vpop.permute.xlu0 %1458 }
 0x1d4   : > { %v1465_v12 = vadd.f32 %v1461_v30, %v1452_v55  ;;  %v1464_v5 = vadd.f32 %v1459_v46, %v1451_v29 }
 0x1d5   : > { %v1830_v22 = vld [vmem:[#allocation2 + $0x38] sm:$0xff]  ;;  %v1829_v15 = vld [vmem:[#allocation2 + $0x30] sm:$0xff] }
 0x1d6   : > { %1467 = vst.msk [vmem:[#allocation2 + $0x18] sm:$0xff] %vm1234_vm3, %v1465_v12  ;;  %1466 = vst.msk [vmem:[#allocation2 + $0x10] sm:$0xff] %vm1234_vm3, %v1464_v5 }
 0x1d7   : > { %v1650_v47 = vpop.permute.xlu1 %1649  ;;  %v1648_v49 = vpop.permute.xlu0 %1647 }
 0x1d8   : > { %v1654_v52 = vadd.f32 %v1650_v47, %v1641_v23  ;;  %v1653_v34 = vadd.f32 %v1648_v49, %v1640_v14 }
 0x1d9   : > { %v1847_v27 = vld [vmem:[#allocation2 + $0x8] sm:$0xff]  ;;  %v1846_v19 = vld [vmem:[#allocation2] sm:$0xff] }
 0x1da   : > { %1656 = vst.msk [vmem:[#allocation2 + $0x28] sm:$0xff] %vm1234_vm3, %v1654_v52  ;;  %1655 = vst.msk [vmem:[#allocation2 + $0x20] sm:$0xff] %vm1234_vm3, %v1653_v34 }
 0x1db   : > { %1863 = vst.msk [vmem:[#allocation2 + $0x8] sm:$0xff] %vm245_vm0, %v2878_v0  ;;  %1862 = vst.msk [vmem:[#allocation2] sm:$0xff] %vm245_vm0, %v2878_v0  ;;  %v1839_v41 = vpop.permute.xlu1 %1838  ;;  %v1837_v16 = vpop.permute.xlu0 %1836 }
 0x1dc   : > { %1854 = vst.msk [vmem:[%s3928_s25] sm:$0xff] %vm245_vm0, %v1846_v19  ;;  %1855 = vst.msk [vmem:[%s3928_s25 + $0x8] sm:$0xff] %vm245_vm0, %v1847_v27  ;;  %v1843_v56 = vadd.f32 %v1839_v41, %v1830_v22  ;;  %v1842_v24 = vadd.f32 %v1837_v16, %v1829_v15 }
 0x1dd   : > { %v1849_v31 = vld [vmem:[#allocation2 + $0x18] sm:$0xff]  ;;  %v1848_v50 = vld [vmem:[#allocation2 + $0x10] sm:$0xff] }
 0x1de   : > { %1845 = vst.msk [vmem:[#allocation2 + $0x38] sm:$0xff] %vm1234_vm3, %v1843_v56  ;;  %1844 = vst.msk [vmem:[#allocation2 + $0x30] sm:$0xff] %vm1234_vm3, %v1842_v24 }
 0x1df   : > { %1857 = vst.msk [vmem:[%s3928_s25 + $0x18] sm:$0xff] %vm245_vm0, %v1849_v31  ;;  %1865 = vst.msk [vmem:[#allocation2 + $0x18] sm:$0xff] %vm245_vm0, %v2878_v0  ;;  %v1885_v38 = vpop.permute.xlu1 %1884  ;;  %v1883_v40 = vpop.permute.xlu0 %1882 }
 0x1e0   : > { %1864 = vst.msk [vmem:[#allocation2 + $0x10] sm:$0xff] %vm245_vm0, %v2878_v0  ;;  %1856 = vst.msk [vmem:[%s3928_s25 + $0x10] sm:$0xff] %vm245_vm0, %v1848_v50 }
 0x1e1   : > { %v1851_v4 = vld [vmem:[#allocation2 + $0x28] sm:$0xff]  ;;  %v1850_v45 = vld [vmem:[#allocation2 + $0x20] sm:$0xff] }
 0x1e2   : > { %v1876_v43 = vld [vmem:[#allocation2 + $0x8] sm:$0xff]  ;;  %v1875_v44 = vld [vmem:[#allocation2] sm:$0xff]  ;;  %1859 = vst.msk [vmem:[%s3928_s25 + $0x28] sm:$0xff] %vm245_vm0, %v1851_v4  ;;  %1867 = vst.msk [vmem:[#allocation2 + $0x28] sm:$0xff] %vm245_vm0, %v2878_v0 }
 0x1e3   : > { %v1889_v61 = vadd.f32 %v1885_v38, %v1876_v43  ;;  %v1888_v32 = vadd.f32 %v1883_v40, %v1875_v44  ;;  %v1951_v35 = vpop.permute.xlu1 %1950  ;;  %v1949_v39 = vpop.permute.xlu0 %1948  ;;  %1866 = vst.msk [vmem:[#allocation2 + $0x20] sm:$0xff] %vm245_vm0, %v2878_v0  ;;  %1858 = vst.msk [vmem:[%s3928_s25 + $0x20] sm:$0xff] %vm245_vm0, %v1850_v45 }
 0x1e5   : > { %1891 = vst.msk [vmem:[#allocation2 + $0x8] sm:$0xff] %vm245_vm0, %v1889_v61  ;;  %1890 = vst.msk [vmem:[#allocation2] sm:$0xff] %vm245_vm0, %v1888_v32  ;;  %v1853_v33 = vld [vmem:[#allocation2 + $0x38] sm:$0xff]  ;;  %v1852_v17 = vld [vmem:[#allocation2 + $0x30] sm:$0xff] }
 0x1e6   : > { %v1942_v51 = vld [vmem:[#allocation2 + $0x18] sm:$0xff]  ;;  %1861 = vst.msk [vmem:[%s3928_s25 + $0x38] sm:$0xff] %vm245_vm0, %v1853_v33  ;;  %1869 = vst.msk [vmem:[#allocation2 + $0x38] sm:$0xff] %vm245_vm0, %v2878_v0 }
 0x1e7   : > { %v1941_v57 = vld [vmem:[#allocation2 + $0x10] sm:$0xff]  ;;  %v1955_v37 = vadd.f32 %v1951_v35, %v1942_v51  ;;  %v2017_v60 = vpop.permute.xlu1 %2016  ;;  %v2015_v1 = vpop.permute.xlu0 %2014  ;;  %1868 = vst.msk [vmem:[#allocation2 + $0x30] sm:$0xff] %vm245_vm0, %v2878_v0  ;;  %1860 = vst.msk [vmem:[%s3928_s25 + $0x30] sm:$0xff] %vm245_vm0, %v1852_v17 }
 0x1e8   : > { %v1954_v58 = vadd.f32 %v1949_v39, %v1941_v57 }
 0x1e9   : > { %1957 = vst.msk [vmem:[#allocation2 + $0x18] sm:$0xff] %vm245_vm0, %v1955_v37 }
 0x1ea   : > { %1956 = vst.msk [vmem:[#allocation2 + $0x10] sm:$0xff] %vm245_vm0, %v1954_v58 }
 0x1eb   : > { %2774 = shalt.err (!%p2771_p11)
}
 0x1ec   : > { %s2775_s7 = scalar_lea.hbm %s3963_s27, 1024  ;;  %s2779_s15 = scalar_lea.hbm %s4094_s5, 2048 }
 0x1ed   : > { %p2776_p12 = scmp.ne.s32.totalorder %s3963_s27, %s2775_s7  ;;  %p2780_p1 = scmp.lt.u32.totalorder %s3963_s27, %s4094_s5 }
 0x1ee   : > { %p2781_p2 = scmp.lt.u32.totalorder %s2779_s15, %s2775_s7  ;;  %p2783_p4 = scmp.lt.u32.totalorder %s2775_s7, %s3963_s27 }
 0x1ef   : > { %p2777_p13 = pnand %p2776_p12, %p2973_p5 }
 0x1f0   : > { %p2782_p3 = por %p2781_p2, %p2780_p1 }
 0x1f1   : > { %p2778_p0 = pneg %p2777_p13 }
 0x1f2   : > { %p2784_p6 = por %p2783_p4, %p2782_p3 }
 0x1f4   : > { %p2785_p7 = pnand %p2784_p6, %p2778_p0 }
 0x1f6   : > { %2788 = shalt.err (!%p2785_p7)
}
 0x1f7   : > { %2624 = dma.vmem_to_hbm [thread:$0]  (%p2973_p5), %s3965_s18, 1024, %s3963_s27, %s2156_s20, %s2883_s24, %s2883_s24, %s2884_s1   ;;  %v2008_v0 = vld [vmem:[#allocation2 + $0x28] sm:$0xff]  ;;  %v2007_v63 = vld [vmem:[#allocation2 + $0x20] sm:$0xff]  ;;  %v2083_v53 = vpop.permute.xlu1 %2082  ;;  %v2081_v8 = vpop.permute.xlu0 %2080  ;;  %v2074_v28 = vld [vmem:[#allocation2 + $0x38] sm:$0xff] }
 0x1f8   : > { %v2021_v26 = vadd.f32 %v2017_v60, %v2008_v0  ;;  %v2020_v48 = vadd.f32 %v2015_v1, %v2007_v63  ;;  %v2087_v2 = vadd.f32 %v2083_v53, %v2074_v28  ;;  %v2073_v7 = vld [vmem:[#allocation2 + $0x30] sm:$0xff]  ;;  %v1898_v9 = vld [vmem:[#allocation2 + $0x8] sm:$0xff]  ;;  %v1897_v10 = vld [vmem:[#allocation2] sm:$0xff]  ;;  %s229_s18 = scalar_lea.vmem [#allocation11], %s3460_s9  ;;  %s4035_s0 = scalar_lea.hbm %s4095_s6, %s3847_s8 }
 0x1f9   : > { %v2086_v42 = vadd.f32 %v2081_v8, %v2073_v7  ;;  %v1964_v6 = vld [vmem:[#allocation2 + $0x18] sm:$0xff]  ;;  %v1963_v59 = vld [vmem:[#allocation2 + $0x10] sm:$0xff]  ;;  %s2215_s9 = sshll.u32 %s229_s18, 4  ;;  %s2886_s7 = smov [#allocation11]   ;;  %s4037_s9 = int_to_ptr.vmem [resolvable:$true] %s2215_s9 }
 0x1fa   : > { %2023 = vst.msk [vmem:[#allocation2 + $0x28] sm:$0xff] %vm245_vm0, %v2021_v26  ;;  %2022 = vst.msk [vmem:[#allocation2 + $0x20] sm:$0xff] %vm245_vm0, %v2020_v48  ;;  %s2789_s29 = scalar_lea.vmem %s4037_s9, 1024  ;;  %s2793_s23 = sshll.u32 %s2886_s7, 4  ;;  %s2794_s23 = int_to_ptr.vmem [resolvable:$false] %s2793_s23 }
 0x1fb   : > { %v1907_v21 = vpop.permute.xlu1 %1906  ;;  %v1905_v25 = vpop.permute.xlu0 %1904  ;;  %2089 = vst.msk [vmem:[#allocation2 + $0x38] sm:$0xff] %vm245_vm0, %v2087_v2  ;;  %2088 = vst.msk [vmem:[#allocation2 + $0x30] sm:$0xff] %vm245_vm0, %v2086_v42  ;;  %p2790_p8 = scmp.ne.s32.totalorder %s4037_s9, %s2789_s29  ;;  %s2795_s8 = scalar_lea.vmem %s2794_s23, 2048 }
 0x1fc   : > { %v1911_v20 = vadd.f32 %v1907_v21, %v1898_v9  ;;  %v1910_v11 = vadd.f32 %v1905_v25, %v1897_v10  ;;  %p2796_p12 = scmp.lt.s32.totalorder %s4037_s9, %s2794_s23  ;;  %p2797_p13 = scmp.lt.s32.totalorder %s2795_s8, %s2789_s29 }
 0x1fd   : > { %p2791_p10 = pnand %p2790_p8, %p2973_p5 }
 0x1fe   : > { %1913 = vst.msk [vmem:[#allocation2 + $0x8] sm:$0xff] %vm245_vm0, %v1911_v20  ;;  %1912 = vst.msk [vmem:[#allocation2] sm:$0xff] %vm245_vm0, %v1910_v11  ;;  %p2798_p0 = por %p2797_p13, %p2796_p12 }
 0x1ff   : > { %v1973_v13 = vpop.permute.xlu1 %1972  ;;  %v1971_v36 = vpop.permute.xlu0 %1970  ;;  %p2792_p11 = pneg %p2791_p10 }
 0x200   : > { %v1977_v54 = vadd.f32 %v1973_v13, %v1964_v6  ;;  %v1976_v62 = vadd.f32 %v1971_v36, %v1963_v59 }
 0x201   : > { %v2030_v18 = vld [vmem:[#allocation2 + $0x28] sm:$0xff]  ;;  %v2029_v30 = vld [vmem:[#allocation2 + $0x20] sm:$0xff]  ;;  %p2799_p1 = pnand %p2798_p0, %p2792_p11 }
 0x202   : > { %1979 = vst.msk [vmem:[#allocation2 + $0x18] sm:$0xff] %vm245_vm0, %v1977_v54  ;;  %1978 = vst.msk [vmem:[#allocation2 + $0x10] sm:$0xff] %vm245_vm0, %v1976_v62  ;;  %v2096_v5 = vld [vmem:[#allocation2 + $0x38] sm:$0xff]  ;;  %v2095_v47 = vld [vmem:[#allocation2 + $0x30] sm:$0xff] }
 0x203   : > { %v2039_v3 = vpop.permute.xlu1 %2038  ;;  %v2037_v55 = vpop.permute.xlu0 %2036 }
 0x204   : > { %v2043_v29 = vadd.f32 %v2039_v3, %v2030_v18  ;;  %v2042_v46 = vadd.f32 %v2037_v55, %v2029_v30 }
 0x205   : > { %v1920_v34 = vld [vmem:[#allocation2 + $0x8] sm:$0xff]  ;;  %v1919_v27 = vld [vmem:[#allocation2] sm:$0xff] }
 0x206   : > { %2045 = vst.msk [vmem:[#allocation2 + $0x28] sm:$0xff] %vm245_vm0, %v2043_v29  ;;  %2044 = vst.msk [vmem:[#allocation2 + $0x20] sm:$0xff] %vm245_vm0, %v2042_v46 }
 0x207   : > { %v2105_v12 = vpop.permute.xlu1 %2104  ;;  %v2103_v23 = vpop.permute.xlu0 %2102 }
 0x208   : > { %v2109_v14 = vadd.f32 %v2105_v12, %v2096_v5  ;;  %v2108_v49 = vadd.f32 %v2103_v23, %v2095_v47 }
 0x209   : > { %v1986_v16 = vld [vmem:[#allocation2 + $0x18] sm:$0xff]  ;;  %v1985_v56 = vld [vmem:[#allocation2 + $0x10] sm:$0xff] }
 0x20a   : > { %2111 = vst.msk [vmem:[#allocation2 + $0x38] sm:$0xff] %vm245_vm0, %v2109_v14  ;;  %2110 = vst.msk [vmem:[#allocation2 + $0x30] sm:$0xff] %vm245_vm0, %v2108_v49 }
 0x20b   : > { %v1929_v52 = vpop.permute.xlu1 %1928  ;;  %v1927_v19 = vpop.permute.xlu0 %1926 }
 0x20c   : > { %v1933_v41 = vadd.f32 %v1929_v52, %v1920_v34  ;;  %v1932_v22 = vadd.f32 %v1927_v19, %v1919_v27 }
 0x20d   : > { %v2052_v40 = vld [vmem:[#allocation2 + $0x28] sm:$0xff]  ;;  %v2051_v43 = vld [vmem:[#allocation2 + $0x20] sm:$0xff] }
 0x20e   : > { %1935 = vst.msk [vmem:[#allocation2 + $0x8] sm:$0xff] %vm245_vm0, %v1933_v41  ;;  %1934 = vst.msk [vmem:[#allocation2] sm:$0xff] %vm245_vm0, %v1932_v22 }
 0x20f   : > { %v1995_v15 = vpop.permute.xlu1 %1994  ;;  %v1993_v24 = vpop.permute.xlu0 %1992 }
 0x210   : > { %v1999_v31 = vadd.f32 %v1995_v15, %v1986_v16  ;;  %v1998_v50 = vadd.f32 %v1993_v24, %v1985_v56 }
 0x211   : > { %v2118_v39 = vld [vmem:[#allocation2 + $0x38] sm:$0xff]  ;;  %v2117_v51 = vld [vmem:[#allocation2 + $0x30] sm:$0xff] }
 0x212   : > { %2001 = vst.msk [vmem:[#allocation2 + $0x18] sm:$0xff] %vm245_vm0, %v1999_v31  ;;  %2000 = vst.msk [vmem:[#allocation2 + $0x10] sm:$0xff] %vm245_vm0, %v1998_v50 }
 0x213   : > { %v2061_v38 = vpop.permute.xlu1 %2060  ;;  %v2059_v44 = vpop.permute.xlu0 %2058 }
 0x214   : > { %v2065_v4 = vadd.f32 %v2061_v38, %v2052_v40  ;;  %v2064_v61 = vadd.f32 %v2059_v44, %v2051_v43 }
 0x215   : > { %v2135_v32 = vld [vmem:[#allocation2 + $0x8] sm:$0xff]  ;;  %v2134_v45 = vld [vmem:[#allocation2] sm:$0xff] }
 0x216   : > { %2143 = vst.msk [vmem:[%s229_s18 + $0x8] sm:$0xff] %vm245_vm0, %v2135_v32  ;;  %2142 = vst.msk [vmem:[%s229_s18] sm:$0xff] %vm245_vm0, %v2134_v45 }
 0x217   : > { %2067 = vst.msk [vmem:[#allocation2 + $0x28] sm:$0xff] %vm245_vm0, %v2065_v4  ;;  %2066 = vst.msk [vmem:[#allocation2 + $0x20] sm:$0xff] %vm245_vm0, %v2064_v61  ;;  %v2127_v35 = vpop.permute.xlu1 %2126  ;;  %v2125_v57 = vpop.permute.xlu0 %2124 }
 0x218   : > { %v2131_v33 = vadd.f32 %v2127_v35, %v2118_v39  ;;  %v2130_v37 = vadd.f32 %v2125_v57, %v2117_v51 }
 0x219   : > { %v2137_v58 = vld [vmem:[#allocation2 + $0x18] sm:$0xff]  ;;  %v2136_v17 = vld [vmem:[#allocation2 + $0x10] sm:$0xff] }
 0x21a   : > { %2145 = vst.msk [vmem:[%s229_s18 + $0x18] sm:$0xff] %vm245_vm0, %v2137_v58  ;;  %2144 = vst.msk [vmem:[%s229_s18 + $0x10] sm:$0xff] %vm245_vm0, %v2136_v17 }
 0x21b   : > { %2133 = vst.msk [vmem:[#allocation2 + $0x38] sm:$0xff] %vm245_vm0, %v2131_v33  ;;  %2132 = vst.msk [vmem:[#allocation2 + $0x30] sm:$0xff] %vm245_vm0, %v2130_v37 }
 0x21e   : > { %v2139_v60 = vld [vmem:[#allocation2 + $0x28] sm:$0xff]  ;;  %v2138_v1 = vld [vmem:[#allocation2 + $0x20] sm:$0xff] }
 0x21f   : > { %2147 = vst.msk [vmem:[%s229_s18 + $0x28] sm:$0xff] %vm245_vm0, %v2139_v60  ;;  %2146 = vst.msk [vmem:[%s229_s18 + $0x20] sm:$0xff] %vm245_vm0, %v2138_v1 }
 0x222   : > { %v2141_v0 = vld [vmem:[#allocation2 + $0x38] sm:$0xff]  ;;  %v2140_v26 = vld [vmem:[#allocation2 + $0x30] sm:$0xff] }
 0x223   : > { %2149 = vst.msk [vmem:[%s229_s18 + $0x38] sm:$0xff] %vm245_vm0, %v2141_v0  ;;  %2148 = vst.msk [vmem:[%s229_s18 + $0x30] sm:$0xff] %vm245_vm0, %v2140_v26 }
 0x224   : > { %2802 = shalt.err (!%p2799_p1)
}
 0x225   : > { %s2803_s25 = scalar_lea.hbm %s4035_s0, 1024  ;;  %s2807_s28 = scalar_lea.hbm %s4095_s6, 2048 }
 0x226   : > { %p2804_p2 = scmp.ne.s32.totalorder %s4035_s0, %s2803_s25  ;;  %p2808_p6 = scmp.lt.u32.totalorder %s4035_s0, %s4095_s6 }
 0x227   : > { %p2809_p7 = scmp.lt.u32.totalorder %s2807_s28, %s2803_s25  ;;  %p2811_p10 = scmp.lt.u32.totalorder %s2803_s25, %s4035_s0 }
 0x228   : > { %p2805_p3 = pnand %p2804_p2, %p2973_p5 }
 0x229   : > { %p2810_p8 = por %p2809_p7, %p2808_p6 }
 0x22a   : > { %p2806_p4 = pneg %p2805_p3 }
 0x22b   : > { %p2812_p11 = por %p2811_p10, %p2810_p8 }
 0x22d   : > { %p2813_p12 = pnand %p2812_p11, %p2806_p4 }
 0x22f   : > { %2816 = shalt.err (!%p2813_p12)
}
 0x230   : > { %2625 = dma.vmem_to_hbm [thread:$0]  (%p2973_p5), %s4037_s9, 1024, %s4035_s0, %s2156_s20, %s2883_s24, %s2883_s24, %s2884_s1  }
 0x231 PF: > { %p2639_p13 = scmp.ge.s32.totalorder %s2873_s14, 2  ;;  %s2230_s30 = sand.u32 1, %s2853_s10  }
 0x232   : > { %s2231_s29 = scalar_lea.sflag [#allocation8], %s2230_s30 }
 0x233   : > { %p2630_p0 = pnand %p2639_p13, %p2982_p9 }
 0x235   : > { %2844 = dma.done.wait (!%p2630_p0), %s2231_s29, 1024  }
 0x236   : > { %2846 = vsyncadd (!%p2630_p0), %s2231_s29, 4294966272  ;;  %s2239_s19 = sand.u32 1, %s2365_s16  }
 0x237   : > { %s2240_s7 = scalar_lea.sflag [#allocation10], %s2239_s19 }
 0x238   : > { %2848 = dma.done.wait (!%p2630_p0), %s2240_s7, 2048  }
 0x239   : > { %2850 = vsyncadd (!%p2630_p0), %s2240_s7, 4294965248  ;;  %s37_s14 = sadd.s32 1, %s2873_s14   ;;  %s4100_s10 = smov %s2857_s2 }
 0x23a   : > { %p34_p5 = scmp.ge.s32.totalorder %s37_s14, 4   ;;  %s4101_s2 = smov %s2861_s11 }
 0x23b   : > { %s4102_s11 = smov %s2988_s22  ;;  %s4103_s12 = smov %s2869_s13 }
 0x23c   : > { %s4104_s13 = smov %s4106_s17  ;;  %36 = sbr.rel (!%p34_p5) target bundleno = 41 (0x29), region = 105 }
 0x243   :  { %2254 = vsyncpa [#allocation8], 1 }
 0x244   :  { %2256 = vsyncpa [#allocation8 + $0x1], 1 }
 0x245   :  { %2257 = vsyncpa [#allocation10], 1 }
 0x246   :  { %2259 = vsyncpa [#allocation10 + $0x1], 1 }

</bundles_post_ra>
